<compile_context>
chip_gen: v6e
topology: v6e:2x2x1
jax: 0.10.0
libtpu: 0.0.40
codegen_flags: <defaults>
</compile_context>

<pallas_src>
import math
import functools

import jax
import jax.numpy as jnp
from jax.experimental import pallas as pl
from jax.experimental.pallas import tpu as pltpu

LN_EPS = 1e-5


# ---------------------------------------------------------------------------
# Hardware-aware knobs
# ---------------------------------------------------------------------------
def _vmem_capacity_bytes():
    try:
        cap = getattr(pltpu.get_tpu_info(), "vmem_capacity_bytes", None)
        if cap:
            return int(cap)
    except Exception:
        pass
    return 64 * 1024 * 1024                      # conservative (v7x-sized) default


def _vmem_limit_bytes():
    cap = _vmem_capacity_bytes()
    # ~48 MiB on v7x (64 MiB physical), ~100 MiB on v5e/v6e (128 MiB physical).
    return int(max(32 * 1024 * 1024, min(cap - 16 * 1024 * 1024, 100 * 1024 * 1024)))


def _device_kind():
    try:
        return jax.devices()[0].device_kind.lower()
    except Exception:
        return ""


def _num_tensorcores():
    kind = _device_kind()
    return 2 if any(t in kind for t in ("7x", "tpu7", "v4", "v5p")) else 1


def _supports_bf16_vpu():
    kind = _device_kind()
    return not any(t in kind for t in ("v5 lite", "v5e", "v5lite", "v4", "v3", "v2"))


def _layer_weight_bytes(E, H):
    mm = (E * 3 * E + E * E + 2 * E * H) * 2     # bf16 matmul weights
    small = (3 * E + E + H + E + 4 * E) * 4      # f32 biases + LayerNorm params
    return mm + small


def _attn_per_sample_bytes(S, E, H):
    # f32 residual state + attn scratch + qkv + h1 + ~2 live score matrices.
    return 4 * (S * (9 * E + 2 * H) + 2 * S * S)


def _pick_batch_tile(B, per_sample_bytes, budget_bytes, num_tc):
    fitting = [d for d in range(1, B + 1)
               if B % d == 0 and d * per_sample_bytes <= budget_bytes]
    if not fitting:
        # TODO(synk): a single sample exceeds the activation budget; such configs
        # would need sequence tiling -- fall back to tile_b=1.
        return 1
    if num_tc > 1:
        # Keep the grid-step count a multiple of the TensorCore count.
        even = [d for d in fitting if (B // d) % num_tc == 0]
        if even:
            return max(even)
    return max(fitting)


def _resident(shape):
    """Full-array block with a constant index_map -> stays VMEM-resident across
    a 1-D grid (Pallas skips re-DMA when the block index is unchanged)."""
    rank = len(shape)
    return pl.BlockSpec(shape, lambda i: (0,) * rank)


# ---------------------------------------------------------------------------
# In-kernel helpers
# ---------------------------------------------------------------------------
def _layernorm(x2d, gamma, beta):
    # PyTorch nn.LayerNorm semantics (biased variance, eps=1e-5); rsqrt -> EUP.
    mu = jnp.mean(x2d, axis=-1, keepdims=True)
    var = jnp.mean((x2d - mu) ** 2, axis=-1, keepdims=True)
    return (x2d - mu) * jax.lax.rsqrt(var + LN_EPS) * gamma + beta


def _erf(x):
    # A&S 7.1.26 polynomial (exp/abs only) so exact (erf-based) nn.GELU semantics
    # are preserved without relying on a lax.erf Mosaic lowering. Runs in x.dtype
    # (bf16 on v6e/v7x, f32 on v5e).
    a1, a2, a3, a4, a5 = 0.254829592, -0.284496736, 1.421413741, -1.453152027, 1.061405429
    p = 0.3275911
    one = jnp.ones_like(x)
    sgn = jnp.where(x >= 0, one, -one)
    ax = jnp.abs(x)
    t = one / (one + p * ax)
    poly = ((((a5 * t + a4) * t + a3) * t + a2) * t + a1) * t
    return sgn * (one - poly * jnp.exp(-ax * ax))


def _gelu_exact(x):
    return 0.5 * x * (1.0 + _erf(x * 0.7071067811865476))


# ---------------------------------------------------------------------------
# Kernel 1: patch-embedding linear + cls token + positional embedding
# ---------------------------------------------------------------------------
def _embed_kernel(p_ref, w_ref, b_ref, cls_ref, pos_cls_ref, pos_pat_ref, o_ref):
    TB, T, P = p_ref.shape
    E = w_ref.shape[1]
    x = p_ref[...].reshape(TB * T, P).astype(jnp.bfloat16)
    y = jnp.dot(x, w_ref[...], preferred_element_type=jnp.float32) + b_ref[...]
    y = y.reshape(TB, T, E) + pos_pat_ref[...][None, :, :]
    cls_row = (cls_ref[...] + pos_cls_ref[...])[None, :, :]            # [1, 1, E]
    # Two direct stores (no concatenated temporary).
    o_ref[:, 0:1, :] = jnp.broadcast_to(cls_row, (TB, 1, E)).astype(o_ref.dtype)
    o_ref[:, 1:, :] = y.astype(o_ref.dtype)


def patch_embed(patches, w_in_t, b_in, cls_tok, pos_cls, pos_pat, *, tile_b, vmem_limit):
    B, T, P = patches.shape
    E = w_in_t.shape[1]
    args = (patches, w_in_t, b_in, cls_tok, pos_cls, pos_pat)
    return pl.pallas_call(
        _embed_kernel,
        out_shape=jax.ShapeDtypeStruct((B, T + 1, E), jnp.bfloat16),
        grid=(B // tile_b,),
        in_specs=[pl.BlockSpec((tile_b, T, P), lambda i: (i, 0, 0))]
                 + [_resident(a.shape) for a in args[1:]],
        out_specs=pl.BlockSpec((tile_b, T + 1, E), lambda i: (i, 0, 0)),
        compiler_params=pltpu.CompilerParams(
            dimension_semantics=("parallel",),
            vmem_limit_bytes=vmem_limit),
    )(*args)


# ---------------------------------------------------------------------------
# Kernel 2: fused transformer stack.
# grid = (batch_tiles, num_layers); per-layer weights streamed along the layer
# axis; the residual stream lives in an f32 VMEM scratch and is written back to
# HBM (bf16) only once per batch tile.
# ---------------------------------------------------------------------------
def _transformer_kernel(x_ref,
                        g1_ref, bt1_ref, wqkv_ref, bqkv_ref, wo_ref, bo_ref,
                        g2_ref, bt2_ref, w1_ref, b1_ref, w2_ref, b2_ref,
                        o_ref, state_sc, attn_sc, *, num_heads, gelu_bf16):
    layer = pl.program_id(1)
    TB, S, E = x_ref.shape
    nh = num_heads
    hd = E // nh

    @pl.when(layer == 0)
    def _():                                     # load the embedded tokens once per batch tile
        state_sc[...] = x_ref[...].reshape(TB * S, E).astype(jnp.float32)

    x2d = state_sc[...]

    # --- pre-LN multi-head self-attention (nn.MultiheadAttention semantics) ---
    xn = _layernorm(x2d, g1_ref[...], bt1_ref[...])

    # Fused QKV projection: one [TB*S, E] x [E, 3E] MXU matmul (bf16 in, f32 acc).
    # 1/sqrt(hd) is already folded into the Q columns of wqkv / bqkv at init.
    qkv = jnp.dot(xn.astype(jnp.bfloat16), wqkv_ref[...],
                  preferred_element_type=jnp.float32) + bqkv_ref[...]
    q = qkv[:, :E]
    k = qkv[:, E:2 * E]
    v = qkv[:, 2 * E:]

    # Static per-head loop; head outputs land in a VMEM scratch at static lane
    # offsets (no list + lane-axis concatenate, less vreg pressure).
    for h in range(nh):
        lo, hi = h * hd, (h + 1) * hd
        qh = q[:, lo:hi].reshape(TB, S, hd).astype(jnp.bfloat16)
        kh = k[:, lo:hi].reshape(TB, S, hd).astype(jnp.bfloat16)
        vh = v[:, lo:hi].reshape(TB, S, hd).astype(jnp.bfloat16)
        s = jnp.einsum('bqd,bkd->bqk', qh, kh, preferred_element_type=jnp.float32)
        s = s - jnp.max(s, axis=-1, keepdims=True)
        p = jnp.exp(s)
        p = p * pl.reciprocal(jnp.sum(p, axis=-1, keepdims=True), approx=True)
        oh = jnp.einsum('bqk,bkd->bqd', p.astype(jnp.bfloat16), vh,
                        preferred_element_type=jnp.float32)
        attn_sc[:, lo:hi] = oh.reshape(TB * S, hd)

    # Single [E, E] output projection (== PyTorch out_proj) on the full slab.
    proj = jnp.dot(attn_sc[...].astype(jnp.bfloat16), wo_ref[...],
                   preferred_element_type=jnp.float32) + bo_ref[...]
    x2d = x2d + proj

    # --- pre-LN GELU MLP ---
    xn2 = _layernorm(x2d, g2_ref[...], bt2_ref[...])
    h1 = jnp.dot(xn2.astype(jnp.bfloat16), w1_ref[...],
                 preferred_element_type=jnp.float32) + b1_ref[...]
    if gelu_bf16:
        h1a = _gelu_exact(h1.astype(jnp.bfloat16))   # bf16 VPU/EUP on v6e/v7x
    else:
        h1a = _gelu_exact(h1)                         # f32 on v5e (no bf16 VPU)
    h2 = jnp.dot(h1a.astype(jnp.bfloat16), w2_ref[...],
                 preferred_element_type=jnp.float32) + b2_ref[...]
    x2d = x2d + h2

    state_sc[...] = x2d                               # residual stream stays f32 in VMEM

    @pl.when(layer == pl.num_programs(1) - 1)
    def _():                                          # one bf16 HBM write per batch tile
        o_ref[...] = x2d.reshape(TB, S, E).astype(o_ref.dtype)


def transformer(x_emb, layers, *, num_heads, tile_b, vmem_limit, gelu_bf16):
    B, S, E = x_emb.shape
    L = layers['wqkv_t'].shape[0]
    weight_args = (layers['ln1_g'], layers['ln1_b'], layers['wqkv_t'], layers['bqkv'],
                   layers['wo_t'], layers['bo'], layers['ln2_g'], layers['ln2_b'],
                   layers['w1_t'], layers['b1'], layers['w2_t'], layers['b2'])

    def wspec(a):   # stacked (L, r, c) weight -> stream block (r, c) along the layer axis
        return pl.BlockSpec((None,) + a.shape[1:], lambda i, l: (l, 0, 0))

    in_specs = [pl.BlockSpec((tile_b, S, E), lambda i, l: (i, 0, 0))]
    in_specs += [wspec(a) for a in weight_args]

    return pl.pallas_call(
        functools.partial(_transformer_kernel, num_heads=num_heads, gelu_bf16=gelu_bf16),
        out_shape=jax.ShapeDtypeStruct((B, S, E), jnp.bfloat16),
        grid=(B // tile_b, L),
        in_specs=in_specs,
        out_specs=pl.BlockSpec((tile_b, S, E), lambda i, l: (i, 0, 0)),
        scratch_shapes=[pltpu.VMEM((tile_b * S, E), jnp.float32),   # residual stream
                        pltpu.VMEM((tile_b * S, E), jnp.float32)],  # concat-heads slab
        compiler_params=pltpu.CompilerParams(
            dimension_semantics=("parallel", "arbitrary"),
            vmem_limit_bytes=vmem_limit),
    )(x_emb, *weight_args)


# ---------------------------------------------------------------------------
# Kernel 3: classification head (LayerNorm + Linear) on the cls token.
# Lane-dense 128-wide padded output; batch-tiled so large B cannot exceed VMEM.
# ---------------------------------------------------------------------------
def _head_kernel(x_ref, g_ref, b_ref, w_ref, bias_ref, o_ref):
    xn = _layernorm(x_ref[...].astype(jnp.float32), g_ref[...], b_ref[...])
    o_ref[...] = jnp.dot(xn.astype(jnp.bfloat16), w_ref[...],
                         preferred_element_type=jnp.float32) + bias_ref[...]


def mlp_head(cls_x, g, b, w_t_pad, bias_pad, num_classes, *, vmem_limit):
    B, E = cls_x.shape
    Cp = w_t_pad.shape[1]
    per_row = 4 * (E + Cp)
    tile_b = _pick_batch_tile(B, per_row, 8 * 1024 * 1024, 1)
    args = (cls_x, g, b, w_t_pad, bias_pad)
    out = pl.pallas_call(
        _head_kernel,
        out_shape=jax.ShapeDtypeStruct((B, Cp), jnp.float32),
        grid=(B // tile_b,),
        in_specs=[pl.BlockSpec((tile_b, E), lambda i: (i, 0))]
                 + [_resident(a.shape) for a in args[1:]],
        out_specs=pl.BlockSpec((tile_b, Cp), lambda i: (i, 0)),
        compiler_params=pltpu.CompilerParams(
            dimension_semantics=("parallel",),
            vmem_limit_bytes=vmem_limit),
    )(*args)
    return out[:, :num_classes]


# ---------------------------------------------------------------------------
# Plain-JAX glue
# ---------------------------------------------------------------------------
def img_to_patch(x, patch_size):
    B, C, H, W = x.shape
    p = patch_size
    x = x.reshape(B, C, H // p, p, W // p, p)
    x = x.transpose(0, 2, 4, 1, 3, 5)
    return x.reshape(B, (H // p) * (W // p), C * p * p)


def init_params(key, *, embed_dim, hidden_dim, num_channels, num_heads,
                num_layers, num_classes, patch_size, num_patches):
    E, H = embed_dim, hidden_dim
    P = num_channels * patch_size ** 2
    hd = E // num_heads
    scale = 1.0 / math.sqrt(hd)
    keys = jax.random.split(key, 4 + num_layers)

    def linear_init(k, fan_in, fan_out):
        kw, kb = jax.random.split(k)
        bound = 1.0 / math.sqrt(fan_in)
        w = jax.random.uniform(kw, (fan_out, fan_in), jnp.float32, -bound, bound)
        b = jax.random.uniform(kb, (fan_out,), jnp.float32, -bound, bound)
        return w, b

    w_in, b_in = linear_init(keys[0], P, E)
    cls_tok = jax.random.normal(keys[1], (1, E), jnp.float32)
    pos_emb = jax.random.normal(keys[2], (1 + num_patches, E), jnp.float32)

    acc = {k: [] for k in ('ln1_g', 'ln1_b', 'wqkv_t', 'bqkv', 'wo_t', 'bo',
                           'ln2_g', 'ln2_b', 'w1_t', 'b1', 'w2_t', 'b2')}
    for l in range(num_layers):
        lk = jax.random.split(keys[3 + l], 4)
        # nn.MultiheadAttention defaults: xavier_uniform in_proj, zero biases.
        xav = math.sqrt(6.0 / (3 * E + E))
        wqkv = jax.random.uniform(lk[0], (3 * E, E), jnp.float32, -xav, xav)
        bqkv = jnp.zeros((3 * E,), jnp.float32)
        # Fold 1/sqrt(hd) into the Q rows/bias (PyTorch scales q after the biased in_proj).
        wqkv = wqkv.at[:E, :].multiply(scale)
        bqkv = bqkv.at[:E].multiply(scale)
        wo, _ = linear_init(lk[1], E, E)
        bo = jnp.zeros((E,), jnp.float32)
        w1, b1 = linear_init(lk[2], E, H)
        w2, b2 = linear_init(lk[3], H, E)

        acc['ln1_g'].append(jnp.ones((1, E), jnp.float32))
        acc['ln1_b'].append(jnp.zeros((1, E), jnp.float32))
        acc['wqkv_t'].append(wqkv.T.astype(jnp.bfloat16))      # columns = [q | k | v]
        acc['bqkv'].append(bqkv[None, :])
        acc['wo_t'].append(wo.T.astype(jnp.bfloat16))
        acc['bo'].append(bo[None, :])
        acc['ln2_g'].append(jnp.ones((1, E), jnp.float32))
        acc['ln2_b'].append(jnp.zeros((1, E), jnp.float32))
        acc['w1_t'].append(w1.T.astype(jnp.bfloat16))
        acc['b1'].append(b1[None, :])
        acc['w2_t'].append(w2.T.astype(jnp.bfloat16))
        acc['b2'].append(b2[None, :])

    layers = {k: jnp.stack(v, axis=0) for k, v in acc.items()}   # leading layer axis

    wh, bh = linear_init(keys[3 + num_layers], E, num_classes)
    c_pad = max(128, ((num_classes + 127) // 128) * 128)          # lane-dense head output
    wh_t_pad = jnp.zeros((E, c_pad), jnp.float32).at[:, :num_classes].set(wh.T)
    bh_pad = jnp.zeros((1, c_pad), jnp.float32).at[:, :num_classes].set(bh[None, :])

    return dict(
        w_in_t=w_in.T.astype(jnp.bfloat16), b_in=b_in[None, :],
        cls=cls_tok, pos_cls=pos_emb[0:1], pos_patch=pos_emb[1:],
        layers=layers,
        head_g=jnp.ones((1, E), jnp.float32), head_b=jnp.zeros((1, E), jnp.float32),
        head_w_t=wh_t_pad.astype(jnp.bfloat16), head_bias=bh_pad,
    )


@functools.partial(jax.jit, static_argnames=("patch_size", "num_heads", "num_classes"))
def vision_transformer_forward(params, x, *, patch_size, num_heads, num_classes):
    patches = img_to_patch(x, patch_size)                 # [B, T, C*p*p]
    B, T, _ = patches.shape
    E = params['cls'].shape[1]
    H = params['layers']['w1_t'].shape[2]
    S = T + 1

    vmem_limit = _vmem_limit_bytes()
    num_tc = _num_tensorcores()
    gelu_bf16 = _supports_bf16_vpu()
    act_budget = max(4 * 1024 * 1024,
                     (vmem_limit - 2 * _layer_weight_bytes(E, H)) // 3)
    tile_b = _pick_batch_tile(B, _attn_per_sample_bytes(S, E, H), act_budget, num_tc)

    pos_pat = params['pos_patch'][:T]
    h = patch_embed(patches, params['w_in_t'], params['b_in'], params['cls'],
                    params['pos_cls'], pos_pat, tile_b=tile_b, vmem_limit=vmem_limit)
    # nn.Dropout with p=0.0 is the identity -> omitted.
    h = transformer(h, params['layers'], num_heads=num_heads, tile_b=tile_b,
                    vmem_limit=vmem_limit, gelu_bf16=gelu_bf16)
    cls = h[:, 0, :]                                      # seq position 0 == cls token
    return mlp_head(cls, params['head_g'], params['head_b'],
                    params['head_w_t'], params['head_bias'], num_classes,
                    vmem_limit=vmem_limit)


if __name__ == "__main__":
    cfg = dict(embed_dim=32, hidden_dim=64, num_channels=4, num_heads=4,
               num_layers=2, num_classes=10, patch_size=4, num_patches=16)
    key = jax.random.PRNGKey(0)
    kp, kx = jax.random.split(key)
    params = init_params(kp, **cfg)
    x = jax.random.normal(kx, (2, cfg['num_channels'], 16, 16), jnp.float32)

    out = vision_transformer_forward(
        params, x, patch_size=cfg['patch_size'],
        num_heads=cfg['num_heads'], num_classes=cfg['num_classes'])
    out = jax.block_until_ready(out)
    assert out.shape == (2, cfg['num_classes'])
    assert bool(jnp.all(jnp.isfinite(out)))
    print("KERNEL_OK")
</pallas_src>

<mosaic_0001>
module attributes {stable_mosaic.version = 11 : i64} {
  func.func @_embed_kernel(%arg0: i32, %arg1: memref<2x16x64xf32, #tpu.memory_space<vmem>>, %arg2: memref<64x32xbf16, #tpu.memory_space<vmem>>, %arg3: memref<1x32xf32, #tpu.memory_space<vmem>>, %arg4: memref<1x32xf32, #tpu.memory_space<vmem>>, %arg5: memref<1x32xf32, #tpu.memory_space<vmem>>, %arg6: memref<16x32xf32, #tpu.memory_space<vmem>>, %arg7: memref<2x17x32xbf16, #tpu.memory_space<vmem>>) attributes {dimension_semantics = [#tpu.dimension_semantics<parallel>], iteration_bounds = array<i64: 1>, scalar_prefetch = 0 : i64, scratch_operands = 0 : i64, tpu.core_type = #tpu.core_type<tc>, window_params = [{transform_indices = @transform_0, window_bounds = array<i64: 2, 16, 64>}, {pipeline_mode = #tpu.pipeline_mode<synchronous>, transform_indices = @transform_1, window_bounds = array<i64: 64, 32>}, {pipeline_mode = #tpu.pipeline_mode<synchronous>, transform_indices = @transform_2, window_bounds = array<i64: 1, 32>}, {pipeline_mode = #tpu.pipeline_mode<synchronous>, transform_indices = @transform_3, window_bounds = array<i64: 1, 32>}, {pipeline_mode = #tpu.pipeline_mode<synchronous>, transform_indices = @transform_4, window_bounds = array<i64: 1, 32>}, {pipeline_mode = #tpu.pipeline_mode<synchronous>, transform_indices = @transform_5, window_bounds = array<i64: 16, 32>}, {transform_indices = @transform_6, window_bounds = array<i64: 2, 17, 32>}]} {
    %c0 = arith.constant 0 : index
    %c0_0 = arith.constant 0 : index
    %c0_1 = arith.constant 0 : index
    %0 = vector.load %arg1[%c0, %c0_0, %c0_1] : memref<2x16x64xf32, #tpu.memory_space<vmem>>, vector<2x16x64xf32>
    %1 = vector.shape_cast %0 : vector<2x16x64xf32> to vector<32x64xf32>
    %2 = arith.truncf %1 : vector<32x64xf32> to vector<32x64xbf16>
    %c0_2 = arith.constant 0 : index
    %c0_3 = arith.constant 0 : index
    %3 = vector.load %arg2[%c0_2, %c0_3] : memref<64x32xbf16, #tpu.memory_space<vmem>>, vector<64x32xbf16>
    %cst = arith.constant dense<0.000000e+00> : vector<32x32xf32>
    %4 = tpu.matmul %2, %3, %cst {dimension_numbers = #tpu.dot_dimension_numbers<[1], [0], [0], [1], [0, 0, 1, 1], [], []>} : vector<32x64xbf16>, vector<64x32xbf16>, vector<32x32xf32> -> vector<32x32xf32>
    %c0_4 = arith.constant 0 : index
    %c0_5 = arith.constant 0 : index
    %5 = vector.load %arg3[%c0_4, %c0_5] : memref<1x32xf32, #tpu.memory_space<vmem>>, vector<1x32xf32>
    %6 = vector.broadcast %5 : vector<1x32xf32> to vector<32x32xf32>
    %7 = arith.addf %4, %6 : vector<32x32xf32>
    %8 = vector.shape_cast %7 : vector<32x32xf32> to vector<2x16x32xf32>
    %c0_6 = arith.constant 0 : index
    %c0_7 = arith.constant 0 : index
    %9 = vector.load %arg6[%c0_6, %c0_7] : memref<16x32xf32, #tpu.memory_space<vmem>>, vector<16x32xf32>
    %10 = vector.shape_cast %9 : vector<16x32xf32> to vector<1x16x32xf32>
    %11 = vector.broadcast %10 : vector<1x16x32xf32> to vector<2x16x32xf32>
    %12 = arith.addf %8, %11 : vector<2x16x32xf32>
    %c0_8 = arith.constant 0 : index
    %c0_9 = arith.constant 0 : index
    %13 = vector.load %arg4[%c0_8, %c0_9] : memref<1x32xf32, #tpu.memory_space<vmem>>, vector<1x32xf32>
    %c0_10 = arith.constant 0 : index
    %c0_11 = arith.constant 0 : index
    %14 = vector.load %arg5[%c0_10, %c0_11] : memref<1x32xf32, #tpu.memory_space<vmem>>, vector<1x32xf32>
    %15 = arith.addf %13, %14 : vector<1x32xf32>
    %16 = vector.shape_cast %15 : vector<1x32xf32> to vector<1x1x32xf32>
    %17 = vector.shape_cast %16 : vector<1x1x32xf32> to vector<1x1x32xf32>
    %18 = vector.broadcast %17 : vector<1x1x32xf32> to vector<2x1x32xf32>
    %19 = arith.truncf %18 : vector<2x1x32xf32> to vector<2x1x32xbf16>
    %c0_12 = arith.constant 0 : index
    %c0_13 = arith.constant 0 : index
    %c0_14 = arith.constant 0 : index
    %20 = vector.load %arg7[%c0_12, %c0_13, %c0_14] : memref<2x17x32xbf16, #tpu.memory_space<vmem>>, vector<2x1x32xbf16>
    tpu.vector_store %arg7[%c0_12, %c0_13, %c0_14], %19 {strides = array<i32>} : memref<2x17x32xbf16, #tpu.memory_space<vmem>>, vector<2x1x32xbf16>,
    %21 = arith.truncf %12 : vector<2x16x32xf32> to vector<2x16x32xbf16>
    %c0_15 = arith.constant 0 : index
    %c1 = arith.constant 1 : index
    %c0_16 = arith.constant 0 : index
    %22 = vector.load %arg7[%c0_15, %c1, %c0_16] : memref<2x17x32xbf16, #tpu.memory_space<vmem>>, vector<2x16x32xbf16>
    tpu.vector_store %arg7[%c0_15, %c1, %c0_16], %21 {strides = array<i32>} : memref<2x17x32xbf16, #tpu.memory_space<vmem>>, vector<2x16x32xbf16>,
    return
  }
  func.func @transform_0(%arg0: i32) -> (i32, i32, i32) {
    %c0_i32 = arith.constant 0 : i32
    %c0_i32_0 = arith.constant 0 : i32
    %c0_i32_1 = arith.constant 0 : i32
    return %arg0, %c0_i32, %c0_i32_0 : i32, i32, i32
  }
  func.func @transform_1(%arg0: i32) -> (i32, i32) {
    %c0_i32 = arith.constant 0 : i32
    %c0_i32_0 = arith.constant 0 : i32
    %c0_i32_1 = arith.constant 0 : i32
    return %c0_i32, %c0_i32_0 : i32, i32
  }
  func.func @transform_2(%arg0: i32) -> (i32, i32) {
    %c0_i32 = arith.constant 0 : i32
    %c0_i32_0 = arith.constant 0 : i32
    %c0_i32_1 = arith.constant 0 : i32
    return %c0_i32, %c0_i32_0 : i32, i32
  }
  func.func @transform_3(%arg0: i32) -> (i32, i32) {
    %c0_i32 = arith.constant 0 : i32
    %c0_i32_0 = arith.constant 0 : i32
    %c0_i32_1 = arith.constant 0 : i32
    return %c0_i32, %c0_i32_0 : i32, i32
  }
  func.func @transform_4(%arg0: i32) -> (i32, i32) {
    %c0_i32 = arith.constant 0 : i32
    %c0_i32_0 = arith.constant 0 : i32
    %c0_i32_1 = arith.constant 0 : i32
    return %c0_i32, %c0_i32_0 : i32, i32
  }
  func.func @transform_5(%arg0: i32) -> (i32, i32) {
    %c0_i32 = arith.constant 0 : i32
    %c0_i32_0 = arith.constant 0 : i32
    %c0_i32_1 = arith.constant 0 : i32
    return %c0_i32, %c0_i32_0 : i32, i32
  }
  func.func @transform_6(%arg0: i32) -> (i32, i32, i32) {
    %c0_i32 = arith.constant 0 : i32
    %c0_i32_0 = arith.constant 0 : i32
    %c0_i32_1 = arith.constant 0 : i32
    return %arg0, %c0_i32, %c0_i32_0 : i32, i32, i32
  }
}

module attributes {stable_mosaic.version = 11 : i64} {
  func.func @_transformer_kernel(%arg0: i32, %arg1: i32, %arg2: memref<2x17x32xbf16, #tpu.memory_space<vmem>>, %arg3: memref<1x1x32xf32, #tpu.memory_space<vmem>>, %arg4: memref<1x1x32xf32, #tpu.memory_space<vmem>>, %arg5: memref<1x32x96xbf16, #tpu.memory_space<vmem>>, %arg6: memref<1x1x96xf32, #tpu.memory_space<vmem>>, %arg7: memref<1x32x32xbf16, #tpu.memory_space<vmem>>, %arg8: memref<1x1x32xf32, #tpu.memory_space<vmem>>, %arg9: memref<1x1x32xf32, #tpu.memory_space<vmem>>, %arg10: memref<1x1x32xf32, #tpu.memory_space<vmem>>, %arg11: memref<1x32x64xbf16, #tpu.memory_space<vmem>>, %arg12: memref<1x1x64xf32, #tpu.memory_space<vmem>>, %arg13: memref<1x64x32xbf16, #tpu.memory_space<vmem>>, %arg14: memref<1x1x32xf32, #tpu.memory_space<vmem>>, %arg15: memref<2x17x32xbf16, #tpu.memory_space<vmem>>, %arg16: memref<34x32xf32, #tpu.memory_space<vmem>>, %arg17: memref<34x32xf32, #tpu.memory_space<vmem>>) attributes {dimension_semantics = [#tpu.dimension_semantics<parallel>, #tpu.dimension_semantics<arbitrary>], iteration_bounds = array<i64: 1, 2>, scalar_prefetch = 0 : i64, scratch_operands = 2 : i64, tpu.core_type = #tpu.core_type<tc>, window_params = [{transform_indices = @transform_0, window_bounds = array<i64: 2, 17, 32>}, {transform_indices = @transform_1, window_bounds = array<i64: 1, 1, 32>}, {transform_indices = @transform_2, window_bounds = array<i64: 1, 1, 32>}, {transform_indices = @transform_3, window_bounds = array<i64: 1, 32, 96>}, {transform_indices = @transform_4, window_bounds = array<i64: 1, 1, 96>}, {transform_indices = @transform_5, window_bounds = array<i64: 1, 32, 32>}, {transform_indices = @transform_6, window_bounds = array<i64: 1, 1, 32>}, {transform_indices = @transform_7, window_bounds = array<i64: 1, 1, 32>}, {transform_indices = @transform_8, window_bounds = array<i64: 1, 1, 32>}, {transform_indices = @transform_9, window_bounds = array<i64: 1, 32, 64>}, {transform_indices = @transform_10, window_bounds = array<i64: 1, 1, 64>}, {transform_indices = @transform_11, window_bounds = array<i64: 1, 64, 32>}, {transform_indices = @transform_12, window_bounds = array<i64: 1, 1, 32>}, {transform_indices = @transform_13, window_bounds = array<i64: 2, 17, 32>}]} {
    %c0_i32 = arith.constant 0 : i32
    %0 = arith.cmpi eq, %arg1, %c0_i32 : i32
    %1 = arith.extui %0 : i1 to i32
    %c0_i32_0 = arith.constant 0 : i32
    %2 = arith.cmpi ne, %1, %c0_i32_0 : i32
    scf.if %2 {
      %c0_90 = arith.constant 0 : index
      %c0_91 = arith.constant 0 : index
      %c0_92 = arith.constant 0 : index
      %233 = vector.load %arg2[%c0_90, %c0_91, %c0_92] : memref<2x17x32xbf16, #tpu.memory_space<vmem>>, vector<2x17x32xbf16>
      %234 = vector.shape_cast %233 : vector<2x17x32xbf16> to vector<34x32xbf16>
      %235 = arith.extf %234 : vector<34x32xbf16> to vector<34x32xf32>
      %c0_93 = arith.constant 0 : index
      %c0_94 = arith.constant 0 : index
      %236 = vector.load %arg16[%c0_93, %c0_94] : memref<34x32xf32, #tpu.memory_space<vmem>>, vector<34x32xf32>
      tpu.vector_store %arg16[%c0_93, %c0_94], %235 {strides = array<i32>} : memref<34x32xf32, #tpu.memory_space<vmem>>, vector<34x32xf32>,
    } else {
    }
    %c0 = arith.constant 0 : index
    %c0_1 = arith.constant 0 : index
    %3 = vector.load %arg16[%c0, %c0_1] : memref<34x32xf32, #tpu.memory_space<vmem>>, vector<34x32xf32>
    %c0_2 = arith.constant 0 : index
    %c0_3 = arith.constant 0 : index
    %c0_4 = arith.constant 0 : index
    %4 = vector.load %arg3[%c0_2, %c0_3, %c0_4] : memref<1x1x32xf32, #tpu.memory_space<vmem>>, vector<1x1x32xf32>
    %5 = vector.shape_cast %4 : vector<1x1x32xf32> to vector<1x32xf32>
    %c0_5 = arith.constant 0 : index
    %c0_6 = arith.constant 0 : index
    %c0_7 = arith.constant 0 : index
    %6 = vector.load %arg4[%c0_5, %c0_6, %c0_7] : memref<1x1x32xf32, #tpu.memory_space<vmem>>, vector<1x1x32xf32>
    %7 = vector.shape_cast %6 : vector<1x1x32xf32> to vector<1x32xf32>
    %cst = arith.constant dense<0.000000e+00> : vector<34xf32>
    %8 = vector.multi_reduction <add>, %3, %cst [1] : vector<34x32xf32> to vector<34xf32>
    %9 = vector.shape_cast %8 : vector<34xf32> to vector<34x1xf32>
    %cst_8 = arith.constant 3.200000e+01 : f32
    %10 = vector.broadcast %cst_8 : f32 to vector<34x1xf32>
    %11 = arith.divf %9, %10 : vector<34x1xf32>
    %12 = vector.broadcast %11 : vector<34x1xf32> to vector<34x32xf32>
    %13 = arith.subf %3, %12 : vector<34x32xf32>
    %14 = arith.mulf %13, %13 : vector<34x32xf32>
    %cst_9 = arith.constant dense<0.000000e+00> : vector<34xf32>
    %15 = vector.multi_reduction <add>, %14, %cst_9 [1] : vector<34x32xf32> to vector<34xf32>
    %16 = vector.shape_cast %15 : vector<34xf32> to vector<34x1xf32>
    %cst_10 = arith.constant 3.200000e+01 : f32
    %17 = vector.broadcast %cst_10 : f32 to vector<34x1xf32>
    %18 = arith.divf %16, %17 : vector<34x1xf32>
    %19 = vector.broadcast %11 : vector<34x1xf32> to vector<34x32xf32>
    %20 = arith.subf %3, %19 : vector<34x32xf32>
    %cst_11 = arith.constant 9.99999974E-6 : f32
    %21 = vector.broadcast %cst_11 : f32 to vector<34x1xf32>
    %22 = arith.addf %18, %21 : vector<34x1xf32>
    %23 = math.rsqrt %22 : vector<34x1xf32>
    %24 = vector.broadcast %23 : vector<34x1xf32> to vector<34x32xf32>
    %25 = arith.mulf %20, %24 : vector<34x32xf32>
    %26 = vector.broadcast %5 : vector<1x32xf32> to vector<34x32xf32>
    %27 = arith.mulf %25, %26 : vector<34x32xf32>
    %28 = vector.broadcast %7 : vector<1x32xf32> to vector<34x32xf32>
    %29 = arith.addf %27, %28 : vector<34x32xf32>
    %30 = arith.truncf %29 : vector<34x32xf32> to vector<34x32xbf16>
    %c0_12 = arith.constant 0 : index
    %c0_13 = arith.constant 0 : index
    %c0_14 = arith.constant 0 : index
    %31 = vector.load %arg5[%c0_12, %c0_13, %c0_14] : memref<1x32x96xbf16, #tpu.memory_space<vmem>>, vector<1x32x96xbf16>
    %32 = vector.shape_cast %31 : vector<1x32x96xbf16> to vector<32x96xbf16>
    %cst_15 = arith.constant dense<0.000000e+00> : vector<34x96xf32>
    %33 = tpu.matmul %30, %32, %cst_15 {dimension_numbers = #tpu.dot_dimension_numbers<[1], [0], [0], [1], [0, 0, 1, 1], [], []>} : vector<34x32xbf16>, vector<32x96xbf16>, vector<34x96xf32> -> vector<34x96xf32>
    %c0_16 = arith.constant 0 : index
    %c0_17 = arith.constant 0 : index
    %c0_18 = arith.constant 0 : index
    %34 = vector.load %arg6[%c0_16, %c0_17, %c0_18] : memref<1x1x96xf32, #tpu.memory_space<vmem>>, vector<1x1x96xf32>
    %35 = vector.shape_cast %34 : vector<1x1x96xf32> to vector<1x96xf32>
    %36 = vector.broadcast %35 : vector<1x96xf32> to vector<34x96xf32>
    %37 = arith.addf %33, %36 : vector<34x96xf32>
    %38 = vector.extract_strided_slice %37 {offsets = [0, 0], sizes = [34, 32], strides = [1, 1]} : vector<34x96xf32> to vector<34x32xf32>
    %39 = vector.extract_strided_slice %37 {offsets = [0, 32], sizes = [34, 32], strides = [1, 1]} : vector<34x96xf32> to vector<34x32xf32>
    %40 = vector.extract_strided_slice %37 {offsets = [0, 64], sizes = [34, 32], strides = [1, 1]} : vector<34x96xf32> to vector<34x32xf32>
    %41 = vector.extract_strided_slice %38 {offsets = [0, 0], sizes = [34, 8], strides = [1, 1]} : vector<34x32xf32> to vector<34x8xf32>
    %42 = vector.shape_cast %41 : vector<34x8xf32> to vector<2x17x8xf32>
    %43 = arith.truncf %42 : vector<2x17x8xf32> to vector<2x17x8xbf16>
    %44 = vector.extract_strided_slice %39 {offsets = [0, 0], sizes = [34, 8], strides = [1, 1]} : vector<34x32xf32> to vector<34x8xf32>
    %45 = vector.shape_cast %44 : vector<34x8xf32> to vector<2x17x8xf32>
    %46 = arith.truncf %45 : vector<2x17x8xf32> to vector<2x17x8xbf16>
    %47 = vector.extract_strided_slice %40 {offsets = [0, 0], sizes = [34, 8], strides = [1, 1]} : vector<34x32xf32> to vector<34x8xf32>
    %48 = vector.shape_cast %47 : vector<34x8xf32> to vector<2x17x8xf32>
    %49 = arith.truncf %48 : vector<2x17x8xf32> to vector<2x17x8xbf16>
    "tpu.trace_start"() <{level = 10 : i32, message = "bqd,bkd->bqk"}> : () -> ()
    %cst_19 = arith.constant dense<0.000000e+00> : vector<2x17x17xf32>
    %50 = tpu.matmul %43, %46, %cst_19 {dimension_numbers = #tpu.dot_dimension_numbers<[2], [2], [1], [1], [0, 0, 0, 1, 1, 1], [0], [0]>} : vector<2x17x8xbf16>, vector<2x17x8xbf16>, vector<2x17x17xf32> -> vector<2x17x17xf32>
    "tpu.trace_stop"() : () -> ()
    %cst_20 = arith.constant dense<0xFF800000> : vector<2x17xf32>
    %51 = vector.multi_reduction <maximumf>, %50, %cst_20 [2] : vector<2x17x17xf32> to vector<2x17xf32>
    %52 = vector.shape_cast %51 : vector<2x17xf32> to vector<2x17x1xf32>
    %53 = vector.broadcast %52 : vector<2x17x1xf32> to vector<2x17x17xf32>
    %54 = arith.subf %50, %53 : vector<2x17x17xf32>
    %55 = math.exp %54 : vector<2x17x17xf32>
    %cst_21 = arith.constant dense<0.000000e+00> : vector<2x17xf32>
    %56 = vector.multi_reduction <add>, %55, %cst_21 [2] : vector<2x17x17xf32> to vector<2x17xf32>
    %57 = vector.shape_cast %56 : vector<2x17xf32> to vector<2x17x1xf32>
    %58 = tpu.reciprocal %57 {approx = true} : vector<2x17x1xf32> -> vector<2x17x1xf32>
    %59 = vector.broadcast %58 : vector<2x17x1xf32> to vector<2x17x17xf32>
    %60 = arith.mulf %55, %59 : vector<2x17x17xf32>
    %61 = arith.truncf %60 : vector<2x17x17xf32> to vector<2x17x17xbf16>
    "tpu.trace_start"() <{level = 10 : i32, message = "bqk,bkd->bqd"}> : () -> ()
    %cst_22 = arith.constant dense<0.000000e+00> : vector<2x17x8xf32>
    %62 = tpu.matmul %61, %49, %cst_22 {dimension_numbers = #tpu.dot_dimension_numbers<[2], [1], [1], [2], [0, 0, 0, 1, 1, 2], [0], [0]>} : vector<2x17x17xbf16>, vector<2x17x8xbf16>, vector<2x17x8xf32> -> vector<2x17x8xf32>
    "tpu.trace_stop"() : () -> ()
    %63 = vector.shape_cast %62 : vector<2x17x8xf32> to vector<34x8xf32>
    %c0_23 = arith.constant 0 : index
    %c0_24 = arith.constant 0 : index
    %64 = vector.load %arg17[%c0_23, %c0_24] : memref<34x32xf32, #tpu.memory_space<vmem>>, vector<34x8xf32>
    tpu.vector_store %arg17[%c0_23, %c0_24], %63 {strides = array<i32>} : memref<34x32xf32, #tpu.memory_space<vmem>>, vector<34x8xf32>,
    %65 = vector.extract_strided_slice %38 {offsets = [0, 8], sizes = [34, 8], strides = [1, 1]} : vector<34x32xf32> to vector<34x8xf32>
    %66 = vector.shape_cast %65 : vector<34x8xf32> to vector<2x17x8xf32>
    %67 = arith.truncf %66 : vector<2x17x8xf32> to vector<2x17x8xbf16>
    %68 = vector.extract_strided_slice %39 {offsets = [0, 8], sizes = [34, 8], strides = [1, 1]} : vector<34x32xf32> to vector<34x8xf32>
    %69 = vector.shape_cast %68 : vector<34x8xf32> to vector<2x17x8xf32>
    %70 = arith.truncf %69 : vector<2x17x8xf32> to vector<2x17x8xbf16>
    %71 = vector.extract_strided_slice %40 {offsets = [0, 8], sizes = [34, 8], strides = [1, 1]} : vector<34x32xf32> to vector<34x8xf32>
    %72 = vector.shape_cast %71 : vector<34x8xf32> to vector<2x17x8xf32>
    %73 = arith.truncf %72 : vector<2x17x8xf32> to vector<2x17x8xbf16>
    "tpu.trace_start"() <{level = 10 : i32, message = "bqd,bkd->bqk"}> : () -> ()
    %cst_25 = arith.constant dense<0.000000e+00> : vector<2x17x17xf32>
    %74 = tpu.matmul %67, %70, %cst_25 {dimension_numbers = #tpu.dot_dimension_numbers<[2], [2], [1], [1], [0, 0, 0, 1, 1, 1], [0], [0]>} : vector<2x17x8xbf16>, vector<2x17x8xbf16>, vector<2x17x17xf32> -> vector<2x17x17xf32>
    "tpu.trace_stop"() : () -> ()
    %cst_26 = arith.constant dense<0xFF800000> : vector<2x17xf32>
    %75 = vector.multi_reduction <maximumf>, %74, %cst_26 [2] : vector<2x17x17xf32> to vector<2x17xf32>
    %76 = vector.shape_cast %75 : vector<2x17xf32> to vector<2x17x1xf32>
    %77 = vector.broadcast %76 : vector<2x17x1xf32> to vector<2x17x17xf32>
    %78 = arith.subf %74, %77 : vector<2x17x17xf32>
    %79 = math.exp %78 : vector<2x17x17xf32>
    %cst_27 = arith.constant dense<0.000000e+00> : vector<2x17xf32>
    %80 = vector.multi_reduction <add>, %79, %cst_27 [2] : vector<2x17x17xf32> to vector<2x17xf32>
    %81 = vector.shape_cast %80 : vector<2x17xf32> to vector<2x17x1xf32>
    %82 = tpu.reciprocal %81 {approx = true} : vector<2x17x1xf32> -> vector<2x17x1xf32>
    %83 = vector.broadcast %82 : vector<2x17x1xf32> to vector<2x17x17xf32>
    %84 = arith.mulf %79, %83 : vector<2x17x17xf32>
    %85 = arith.truncf %84 : vector<2x17x17xf32> to vector<2x17x17xbf16>
    "tpu.trace_start"() <{level = 10 : i32, message = "bqk,bkd->bqd"}> : () -> ()
    %cst_28 = arith.constant dense<0.000000e+00> : vector<2x17x8xf32>
    %86 = tpu.matmul %85, %73, %cst_28 {dimension_numbers = #tpu.dot_dimension_numbers<[2], [1], [1], [2], [0, 0, 0, 1, 1, 2], [0], [0]>} : vector<2x17x17xbf16>, vector<2x17x8xbf16>, vector<2x17x8xf32> -> vector<2x17x8xf32>
    "tpu.trace_stop"() : () -> ()
    %87 = vector.shape_cast %86 : vector<2x17x8xf32> to vector<34x8xf32>
    %c0_29 = arith.constant 0 : index
    %c8 = arith.constant 8 : index
    %88 = vector.load %arg17[%c0_29, %c8] : memref<34x32xf32, #tpu.memory_space<vmem>>, vector<34x8xf32>
    tpu.vector_store %arg17[%c0_29, %c8], %87 {strides = array<i32>} : memref<34x32xf32, #tpu.memory_space<vmem>>, vector<34x8xf32>,
    %89 = vector.extract_strided_slice %38 {offsets = [0, 16], sizes = [34, 8], strides = [1, 1]} : vector<34x32xf32> to vector<34x8xf32>
    %90 = vector.shape_cast %89 : vector<34x8xf32> to vector<2x17x8xf32>
    %91 = arith.truncf %90 : vector<2x17x8xf32> to vector<2x17x8xbf16>
    %92 = vector.extract_strided_slice %39 {offsets = [0, 16], sizes = [34, 8], strides = [1, 1]} : vector<34x32xf32> to vector<34x8xf32>
    %93 = vector.shape_cast %92 : vector<34x8xf32> to vector<2x17x8xf32>
    %94 = arith.truncf %93 : vector<2x17x8xf32> to vector<2x17x8xbf16>
    %95 = vector.extract_strided_slice %40 {offsets = [0, 16], sizes = [34, 8], strides = [1, 1]} : vector<34x32xf32> to vector<34x8xf32>
    %96 = vector.shape_cast %95 : vector<34x8xf32> to vector<2x17x8xf32>
    %97 = arith.truncf %96 : vector<2x17x8xf32> to vector<2x17x8xbf16>
    "tpu.trace_start"() <{level = 10 : i32, message = "bqd,bkd->bqk"}> : () -> ()
    %cst_30 = arith.constant dense<0.000000e+00> : vector<2x17x17xf32>
    %98 = tpu.matmul %91, %94, %cst_30 {dimension_numbers = #tpu.dot_dimension_numbers<[2], [2], [1], [1], [0, 0, 0, 1, 1, 1], [0], [0]>} : vector<2x17x8xbf16>, vector<2x17x8xbf16>, vector<2x17x17xf32> -> vector<2x17x17xf32>
    "tpu.trace_stop"() : () -> ()
    %cst_31 = arith.constant dense<0xFF800000> : vector<2x17xf32>
    %99 = vector.multi_reduction <maximumf>, %98, %cst_31 [2] : vector<2x17x17xf32> to vector<2x17xf32>
    %100 = vector.shape_cast %99 : vector<2x17xf32> to vector<2x17x1xf32>
    %101 = vector.broadcast %100 : vector<2x17x1xf32> to vector<2x17x17xf32>
    %102 = arith.subf %98, %101 : vector<2x17x17xf32>
    %103 = math.exp %102 : vector<2x17x17xf32>
    %cst_32 = arith.constant dense<0.000000e+00> : vector<2x17xf32>
    %104 = vector.multi_reduction <add>, %103, %cst_32 [2] : vector<2x17x17xf32> to vector<2x17xf32>
    %105 = vector.shape_cast %104 : vector<2x17xf32> to vector<2x17x1xf32>
    %106 = tpu.reciprocal %105 {approx = true} : vector<2x17x1xf32> -> vector<2x17x1xf32>
    %107 = vector.broadcast %106 : vector<2x17x1xf32> to vector<2x17x17xf32>
    %108 = arith.mulf %103, %107 : vector<2x17x17xf32>
    %109 = arith.truncf %108 : vector<2x17x17xf32> to vector<2x17x17xbf16>
    "tpu.trace_start"() <{level = 10 : i32, message = "bqk,bkd->bqd"}> : () -> ()
    %cst_33 = arith.constant dense<0.000000e+00> : vector<2x17x8xf32>
    %110 = tpu.matmul %109, %97, %cst_33 {dimension_numbers = #tpu.dot_dimension_numbers<[2], [1], [1], [2], [0, 0, 0, 1, 1, 2], [0], [0]>} : vector<2x17x17xbf16>, vector<2x17x8xbf16>, vector<2x17x8xf32> -> vector<2x17x8xf32>
    "tpu.trace_stop"() : () -> ()
    %111 = vector.shape_cast %110 : vector<2x17x8xf32> to vector<34x8xf32>
    %c0_34 = arith.constant 0 : index
    %c16 = arith.constant 16 : index
    %112 = vector.load %arg17[%c0_34, %c16] : memref<34x32xf32, #tpu.memory_space<vmem>>, vector<34x8xf32>
    tpu.vector_store %arg17[%c0_34, %c16], %111 {strides = array<i32>} : memref<34x32xf32, #tpu.memory_space<vmem>>, vector<34x8xf32>,
    %113 = vector.extract_strided_slice %38 {offsets = [0, 24], sizes = [34, 8], strides = [1, 1]} : vector<34x32xf32> to vector<34x8xf32>
    %114 = vector.shape_cast %113 : vector<34x8xf32> to vector<2x17x8xf32>
    %115 = arith.truncf %114 : vector<2x17x8xf32> to vector<2x17x8xbf16>
    %116 = vector.extract_strided_slice %39 {offsets = [0, 24], sizes = [34, 8], strides = [1, 1]} : vector<34x32xf32> to vector<34x8xf32>
    %117 = vector.shape_cast %116 : vector<34x8xf32> to vector<2x17x8xf32>
    %118 = arith.truncf %117 : vector<2x17x8xf32> to vector<2x17x8xbf16>
    %119 = vector.extract_strided_slice %40 {offsets = [0, 24], sizes = [34, 8], strides = [1, 1]} : vector<34x32xf32> to vector<34x8xf32>
    %120 = vector.shape_cast %119 : vector<34x8xf32> to vector<2x17x8xf32>
    %121 = arith.truncf %120 : vector<2x17x8xf32> to vector<2x17x8xbf16>
    "tpu.trace_start"() <{level = 10 : i32, message = "bqd,bkd->bqk"}> : () -> ()
    %cst_35 = arith.constant dense<0.000000e+00> : vector<2x17x17xf32>
    %122 = tpu.matmul %115, %118, %cst_35 {dimension_numbers = #tpu.dot_dimension_numbers<[2], [2], [1], [1], [0, 0, 0, 1, 1, 1], [0], [0]>} : vector<2x17x8xbf16>, vector<2x17x8xbf16>, vector<2x17x17xf32> -> vector<2x17x17xf32>
    "tpu.trace_stop"() : () -> ()
    %cst_36 = arith.constant dense<0xFF800000> : vector<2x17xf32>
    %123 = vector.multi_reduction <maximumf>, %122, %cst_36 [2] : vector<2x17x17xf32> to vector<2x17xf32>
    %124 = vector.shape_cast %123 : vector<2x17xf32> to vector<2x17x1xf32>
    %125 = vector.broadcast %124 : vector<2x17x1xf32> to vector<2x17x17xf32>
    %126 = arith.subf %122, %125 : vector<2x17x17xf32>
    %127 = math.exp %126 : vector<2x17x17xf32>
    %cst_37 = arith.constant dense<0.000000e+00> : vector<2x17xf32>
    %128 = vector.multi_reduction <add>, %127, %cst_37 [2] : vector<2x17x17xf32> to vector<2x17xf32>
    %129 = vector.shape_cast %128 : vector<2x17xf32> to vector<2x17x1xf32>
    %130 = tpu.reciprocal %129 {approx = true} : vector<2x17x1xf32> -> vector<2x17x1xf32>
    %131 = vector.broadcast %130 : vector<2x17x1xf32> to vector<2x17x17xf32>
    %132 = arith.mulf %127, %131 : vector<2x17x17xf32>
    %133 = arith.truncf %132 : vector<2x17x17xf32> to vector<2x17x17xbf16>
    "tpu.trace_start"() <{level = 10 : i32, message = "bqk,bkd->bqd"}> : () -> ()
    %cst_38 = arith.constant dense<0.000000e+00> : vector<2x17x8xf32>
    %134 = tpu.matmul %133, %121, %cst_38 {dimension_numbers = #tpu.dot_dimension_numbers<[2], [1], [1], [2], [0, 0, 0, 1, 1, 2], [0], [0]>} : vector<2x17x17xbf16>, vector<2x17x8xbf16>, vector<2x17x8xf32> -> vector<2x17x8xf32>
    "tpu.trace_stop"() : () -> ()
    %135 = vector.shape_cast %134 : vector<2x17x8xf32> to vector<34x8xf32>
    %c0_39 = arith.constant 0 : index
    %c24 = arith.constant 24 : index
    %136 = vector.load %arg17[%c0_39, %c24] : memref<34x32xf32, #tpu.memory_space<vmem>>, vector<34x8xf32>
    tpu.vector_store %arg17[%c0_39, %c24], %135 {strides = array<i32>} : memref<34x32xf32, #tpu.memory_space<vmem>>, vector<34x8xf32>,
    %c0_40 = arith.constant 0 : index
    %c0_41 = arith.constant 0 : index
    %137 = vector.load %arg17[%c0_40, %c0_41] : memref<34x32xf32, #tpu.memory_space<vmem>>, vector<34x32xf32>
    %138 = arith.truncf %137 : vector<34x32xf32> to vector<34x32xbf16>
    %c0_42 = arith.constant 0 : index
    %c0_43 = arith.constant 0 : index
    %c0_44 = arith.constant 0 : index
    %139 = vector.load %arg7[%c0_42, %c0_43, %c0_44] : memref<1x32x32xbf16, #tpu.memory_space<vmem>>, vector<1x32x32xbf16>
    %140 = vector.shape_cast %139 : vector<1x32x32xbf16> to vector<32x32xbf16>
    %cst_45 = arith.constant dense<0.000000e+00> : vector<34x32xf32>
    %141 = tpu.matmul %138, %140, %cst_45 {dimension_numbers = #tpu.dot_dimension_numbers<[1], [0], [0], [1], [0, 0, 1, 1], [], []>} : vector<34x32xbf16>, vector<32x32xbf16>, vector<34x32xf32> -> vector<34x32xf32>
    %c0_46 = arith.constant 0 : index
    %c0_47 = arith.constant 0 : index
    %c0_48 = arith.constant 0 : index
    %142 = vector.load %arg8[%c0_46, %c0_47, %c0_48] : memref<1x1x32xf32, #tpu.memory_space<vmem>>, vector<1x1x32xf32>
    %143 = vector.shape_cast %142 : vector<1x1x32xf32> to vector<1x32xf32>
    %144 = vector.broadcast %143 : vector<1x32xf32> to vector<34x32xf32>
    %145 = arith.addf %141, %144 : vector<34x32xf32>
    %146 = arith.addf %3, %145 : vector<34x32xf32>
    %c0_49 = arith.constant 0 : index
    %c0_50 = arith.constant 0 : index
    %c0_51 = arith.constant 0 : index
    %147 = vector.load %arg9[%c0_49, %c0_50, %c0_51] : memref<1x1x32xf32, #tpu.memory_space<vmem>>, vector<1x1x32xf32>
    %148 = vector.shape_cast %147 : vector<1x1x32xf32> to vector<1x32xf32>
    %c0_52 = arith.constant 0 : index
    %c0_53 = arith.constant 0 : index
    %c0_54 = arith.constant 0 : index
    %149 = vector.load %arg10[%c0_52, %c0_53, %c0_54] : memref<1x1x32xf32, #tpu.memory_space<vmem>>, vector<1x1x32xf32>
    %150 = vector.shape_cast %149 : vector<1x1x32xf32> to vector<1x32xf32>
    %cst_55 = arith.constant dense<0.000000e+00> : vector<34xf32>
    %151 = vector.multi_reduction <add>, %146, %cst_55 [1] : vector<34x32xf32> to vector<34xf32>
    %152 = vector.shape_cast %151 : vector<34xf32> to vector<34x1xf32>
    %cst_56 = arith.constant 3.200000e+01 : f32
    %153 = vector.broadcast %cst_56 : f32 to vector<34x1xf32>
    %154 = arith.divf %152, %153 : vector<34x1xf32>
    %155 = vector.broadcast %154 : vector<34x1xf32> to vector<34x32xf32>
    %156 = arith.subf %146, %155 : vector<34x32xf32>
    %157 = arith.mulf %156, %156 : vector<34x32xf32>
    %cst_57 = arith.constant dense<0.000000e+00> : vector<34xf32>
    %158 = vector.multi_reduction <add>, %157, %cst_57 [1] : vector<34x32xf32> to vector<34xf32>
    %159 = vector.shape_cast %158 : vector<34xf32> to vector<34x1xf32>
    %cst_58 = arith.constant 3.200000e+01 : f32
    %160 = vector.broadcast %cst_58 : f32 to vector<34x1xf32>
    %161 = arith.divf %159, %160 : vector<34x1xf32>
    %162 = vector.broadcast %154 : vector<34x1xf32> to vector<34x32xf32>
    %163 = arith.subf %146, %162 : vector<34x32xf32>
    %cst_59 = arith.constant 9.99999974E-6 : f32
    %164 = vector.broadcast %cst_59 : f32 to vector<34x1xf32>
    %165 = arith.addf %161, %164 : vector<34x1xf32>
    %166 = math.rsqrt %165 : vector<34x1xf32>
    %167 = vector.broadcast %166 : vector<34x1xf32> to vector<34x32xf32>
    %168 = arith.mulf %163, %167 : vector<34x32xf32>
    %169 = vector.broadcast %148 : vector<1x32xf32> to vector<34x32xf32>
    %170 = arith.mulf %168, %169 : vector<34x32xf32>
    %171 = vector.broadcast %150 : vector<1x32xf32> to vector<34x32xf32>
    %172 = arith.addf %170, %171 : vector<34x32xf32>
    %173 = arith.truncf %172 : vector<34x32xf32> to vector<34x32xbf16>
    %c0_60 = arith.constant 0 : index
    %c0_61 = arith.constant 0 : index
    %c0_62 = arith.constant 0 : index
    %174 = vector.load %arg11[%c0_60, %c0_61, %c0_62] : memref<1x32x64xbf16, #tpu.memory_space<vmem>>, vector<1x32x64xbf16>
    %175 = vector.shape_cast %174 : vector<1x32x64xbf16> to vector<32x64xbf16>
    %cst_63 = arith.constant dense<0.000000e+00> : vector<34x64xf32>
    %176 = tpu.matmul %173, %175, %cst_63 {dimension_numbers = #tpu.dot_dimension_numbers<[1], [0], [0], [1], [0, 0, 1, 1], [], []>} : vector<34x32xbf16>, vector<32x64xbf16>, vector<34x64xf32> -> vector<34x64xf32>
    %c0_64 = arith.constant 0 : index
    %c0_65 = arith.constant 0 : index
    %c0_66 = arith.constant 0 : index
    %177 = vector.load %arg12[%c0_64, %c0_65, %c0_66] : memref<1x1x64xf32, #tpu.memory_space<vmem>>, vector<1x1x64xf32>
    %178 = vector.shape_cast %177 : vector<1x1x64xf32> to vector<1x64xf32>
    %179 = vector.broadcast %178 : vector<1x64xf32> to vector<34x64xf32>
    %180 = arith.addf %176, %179 : vector<34x64xf32>
    %181 = arith.truncf %180 : vector<34x64xf32> to vector<34x64xbf16>
    %cst_67 = arith.constant 5.000000e-01 : bf16
    %182 = vector.broadcast %cst_67 : bf16 to vector<34x64xbf16>
    %183 = arith.mulf %182, %181 : vector<34x64xbf16>
    %cst_68 = arith.constant 7.070310e-01 : bf16
    %184 = vector.broadcast %cst_68 : bf16 to vector<34x64xbf16>
    %185 = arith.mulf %181, %184 : vector<34x64xbf16>
    %cst_69 = arith.constant 1.000000e+00 : bf16
    %186 = vector.broadcast %cst_69 : bf16 to vector<34x64xbf16>
    %cst_70 = arith.constant 0.000000e+00 : bf16
    %187 = vector.broadcast %cst_70 : bf16 to vector<34x64xbf16>
    %188 = arith.cmpf oge, %185, %187 : vector<34x64xbf16>
    %cst_71 = arith.constant 0.000000e+00 : bf16
    %189 = vector.broadcast %cst_71 : bf16 to vector<34x64xbf16>
    %190 = arith.subf %189, %186 : vector<34x64xbf16>
    %191 = arith.select %188, %186, %190 : vector<34x64xi1>, vector<34x64xbf16>
    %192 = math.absf %185 : vector<34x64xbf16>
    %cst_72 = arith.constant 3.281250e-01 : bf16
    %193 = vector.broadcast %cst_72 : bf16 to vector<34x64xbf16>
    %194 = arith.mulf %193, %192 : vector<34x64xbf16>
    %195 = arith.addf %186, %194 : vector<34x64xbf16>
    %196 = arith.divf %186, %195 : vector<34x64xbf16>
    %cst_73 = arith.constant 1.062500e+00 : bf16
    %197 = vector.broadcast %cst_73 : bf16 to vector<34x64xbf16>
    %198 = arith.mulf %197, %196 : vector<34x64xbf16>
    %cst_74 = arith.constant -1.453130e+00 : bf16
    %199 = vector.broadcast %cst_74 : bf16 to vector<34x64xbf16>
    %200 = arith.addf %198, %199 : vector<34x64xbf16>
    %201 = arith.mulf %200, %196 : vector<34x64xbf16>
    %cst_75 = arith.constant 1.421880e+00 : bf16
    %202 = vector.broadcast %cst_75 : bf16 to vector<34x64xbf16>
    %203 = arith.addf %201, %202 : vector<34x64xbf16>
    %204 = arith.mulf %203, %196 : vector<34x64xbf16>
    %cst_76 = arith.constant -2.851560e-01 : bf16
    %205 = vector.broadcast %cst_76 : bf16 to vector<34x64xbf16>
    %206 = arith.addf %204, %205 : vector<34x64xbf16>
    %207 = arith.mulf %206, %196 : vector<34x64xbf16>
    %cst_77 = arith.constant 2.539060e-01 : bf16
    %208 = vector.broadcast %cst_77 : bf16 to vector<34x64xbf16>
    %209 = arith.addf %207, %208 : vector<34x64xbf16>
    %210 = arith.mulf %209, %196 : vector<34x64xbf16>
    %cst_78 = arith.constant 0.000000e+00 : bf16
    %211 = vector.broadcast %cst_78 : bf16 to vector<34x64xbf16>
    %212 = arith.subf %211, %192 : vector<34x64xbf16>
    %213 = arith.mulf %212, %192 : vector<34x64xbf16>
    %214 = math.exp %213 : vector<34x64xbf16>
    %215 = arith.mulf %210, %214 : vector<34x64xbf16>
    %216 = arith.subf %186, %215 : vector<34x64xbf16>
    %217 = arith.mulf %191, %216 : vector<34x64xbf16>
    %cst_79 = arith.constant 1.000000e+00 : bf16
    %218 = vector.broadcast %cst_79 : bf16 to vector<34x64xbf16>
    %219 = arith.addf %218, %217 : vector<34x64xbf16>
    %220 = arith.mulf %183, %219 : vector<34x64xbf16>
    %c0_80 = arith.constant 0 : index
    %c0_81 = arith.constant 0 : index
    %c0_82 = arith.constant 0 : index
    %221 = vector.load %arg13[%c0_80, %c0_81, %c0_82] : memref<1x64x32xbf16, #tpu.memory_space<vmem>>, vector<1x64x32xbf16>
    %222 = vector.shape_cast %221 : vector<1x64x32xbf16> to vector<64x32xbf16>
    %cst_83 = arith.constant dense<0.000000e+00> : vector<34x32xf32>
    %223 = tpu.matmul %220, %222, %cst_83 {dimension_numbers = #tpu.dot_dimension_numbers<[1], [0], [0], [1], [0, 0, 1, 1], [], []>} : vector<34x64xbf16>, vector<64x32xbf16>, vector<34x32xf32> -> vector<34x32xf32>
    %c0_84 = arith.constant 0 : index
    %c0_85 = arith.constant 0 : index
    %c0_86 = arith.constant 0 : index
    %224 = vector.load %arg14[%c0_84, %c0_85, %c0_86] : memref<1x1x32xf32, #tpu.memory_space<vmem>>, vector<1x1x32xf32>
    %225 = vector.shape_cast %224 : vector<1x1x32xf32> to vector<1x32xf32>
    %226 = vector.broadcast %225 : vector<1x32xf32> to vector<34x32xf32>
    %227 = arith.addf %223, %226 : vector<34x32xf32>
    %228 = arith.addf %146, %227 : vector<34x32xf32>
    %c0_87 = arith.constant 0 : index
    %c0_88 = arith.constant 0 : index
    %229 = vector.load %arg16[%c0_87, %c0_88] : memref<34x32xf32, #tpu.memory_space<vmem>>, vector<34x32xf32>
    tpu.vector_store %arg16[%c0_87, %c0_88], %228 {strides = array<i32>} : memref<34x32xf32, #tpu.memory_space<vmem>>, vector<34x32xf32>,
    %c1_i32 = arith.constant 1 : i32
    %230 = arith.cmpi eq, %arg1, %c1_i32 : i32
    %231 = arith.extui %230 : i1 to i32
    %c0_i32_89 = arith.constant 0 : i32
    %232 = arith.cmpi ne, %231, %c0_i32_89 : i32
    scf.if %232 {
      %233 = vector.shape_cast %228 : vector<34x32xf32> to vector<2x17x32xf32>
      %234 = arith.truncf %233 : vector<2x17x32xf32> to vector<2x17x32xbf16>
      %c0_90 = arith.constant 0 : index
      %c0_91 = arith.constant 0 : index
      %c0_92 = arith.constant 0 : index
      %235 = vector.load %arg15[%c0_90, %c0_91, %c0_92] : memref<2x17x32xbf16, #tpu.memory_space<vmem>>, vector<2x17x32xbf16>
      tpu.vector_store %arg15[%c0_90, %c0_91, %c0_92], %234 {strides = array<i32>} : memref<2x17x32xbf16, #tpu.memory_space<vmem>>, vector<2x17x32xbf16>,
    } else {
    }
    return
  }
  func.func @transform_0(%arg0: i32, %arg1: i32) -> (i32, i32, i32) {
    %c0_i32 = arith.constant 0 : i32
    %c0_i32_0 = arith.constant 0 : i32
    %c0_i32_1 = arith.constant 0 : i32
    return %arg0, %c0_i32, %c0_i32_0 : i32, i32, i32
  }
  func.func @transform_1(%arg0: i32, %arg1: i32) -> (i32, i32, i32) {
    %c0_i32 = arith.constant 0 : i32
    %c0_i32_0 = arith.constant 0 : i32
    %c0_i32_1 = arith.constant 0 : i32
    return %arg1, %c0_i32, %c0_i32_0 : i32, i32, i32
  }
  func.func @transform_2(%arg0: i32, %arg1: i32) -> (i32, i32, i32) {
    %c0_i32 = arith.constant 0 : i32
    %c0_i32_0 = arith.constant 0 : i32
    %c0_i32_1 = arith.constant 0 : i32
    return %arg1, %c0_i32, %c0_i32_0 : i32, i32, i32
  }
  func.func @transform_3(%arg0: i32, %arg1: i32) -> (i32, i32, i32) {
    %c0_i32 = arith.constant 0 : i32
    %c0_i32_0 = arith.constant 0 : i32
    %c0_i32_1 = arith.constant 0 : i32
    return %arg1, %c0_i32, %c0_i32_0 : i32, i32, i32
  }
  func.func @transform_4(%arg0: i32, %arg1: i32) -> (i32, i32, i32) {
    %c0_i32 = arith.constant 0 : i32
    %c0_i32_0 = arith.constant 0 : i32
    %c0_i32_1 = arith.constant 0 : i32
    return %arg1, %c0_i32, %c0_i32_0 : i32, i32, i32
  }
  func.func @transform_5(%arg0: i32, %arg1: i32) -> (i32, i32, i32) {
    %c0_i32 = arith.constant 0 : i32
    %c0_i32_0 = arith.constant 0 : i32
    %c0_i32_1 = arith.constant 0 : i32
    return %arg1, %c0_i32, %c0_i32_0 : i32, i32, i32
  }
  func.func @transform_6(%arg0: i32, %arg1: i32) -> (i32, i32, i32) {
    %c0_i32 = arith.constant 0 : i32
    %c0_i32_0 = arith.constant 0 : i32
    %c0_i32_1 = arith.constant 0 : i32
    return %arg1, %c0_i32, %c0_i32_0 : i32, i32, i32
  }
  func.func @transform_7(%arg0: i32, %arg1: i32) -> (i32, i32, i32) {
    %c0_i32 = arith.constant 0 : i32
    %c0_i32_0 = arith.constant 0 : i32
    %c0_i32_1 = arith.constant 0 : i32
    return %arg1, %c0_i32, %c0_i32_0 : i32, i32, i32
  }
  func.func @transform_8(%arg0: i32, %arg1: i32) -> (i32, i32, i32) {
    %c0_i32 = arith.constant 0 : i32
    %c0_i32_0 = arith.constant 0 : i32
    %c0_i32_1 = arith.constant 0 : i32
    return %arg1, %c0_i32, %c0_i32_0 : i32, i32, i32
  }
  func.func @transform_9(%arg0: i32, %arg1: i32) -> (i32, i32, i32) {
    %c0_i32 = arith.constant 0 : i32
    %c0_i32_0 = arith.constant 0 : i32
    %c0_i32_1 = arith.constant 0 : i32
    return %arg1, %c0_i32, %c0_i32_0 : i32, i32, i32
  }
  func.func @transform_10(%arg0: i32, %arg1: i32) -> (i32, i32, i32) {
    %c0_i32 = arith.constant 0 : i32
    %c0_i32_0 = arith.constant 0 : i32
    %c0_i32_1 = arith.constant 0 : i32
    return %arg1, %c0_i32, %c0_i32_0 : i32, i32, i32
  }
  func.func @transform_11(%arg0: i32, %arg1: i32) -> (i32, i32, i32) {
    %c0_i32 = arith.constant 0 : i32
    %c0_i32_0 = arith.constant 0 : i32
    %c0_i32_1 = arith.constant 0 : i32
    return %arg1, %c0_i32, %c0_i32_0 : i32, i32, i32
  }
  func.func @transform_12(%arg0: i32, %arg1: i32) -> (i32, i32, i32) {
    %c0_i32 = arith.constant 0 : i32
    %c0_i32_0 = arith.constant 0 : i32
    %c0_i32_1 = arith.constant 0 : i32
    return %arg1, %c0_i32, %c0_i32_0 : i32, i32, i32
  }
  func.func @transform_13(%arg0: i32, %arg1: i32) -> (i32, i32, i32) {
    %c0_i32 = arith.constant 0 : i32
    %c0_i32_0 = arith.constant 0 : i32
    %c0_i32_1 = arith.constant 0 : i32
    return %arg0, %c0_i32, %c0_i32_0 : i32, i32, i32
  }
}

module attributes {stable_mosaic.version = 11 : i64} {
  func.func @_head_kernel(%arg0: i32, %arg1: memref<2x32xbf16, #tpu.memory_space<vmem>>, %arg2: memref<1x32xf32, #tpu.memory_space<vmem>>, %arg3: memref<1x32xf32, #tpu.memory_space<vmem>>, %arg4: memref<32x128xbf16, #tpu.memory_space<vmem>>, %arg5: memref<1x128xf32, #tpu.memory_space<vmem>>, %arg6: memref<2x128xf32, #tpu.memory_space<vmem>>) attributes {dimension_semantics = [#tpu.dimension_semantics<parallel>], iteration_bounds = array<i64: 1>, scalar_prefetch = 0 : i64, scratch_operands = 0 : i64, tpu.core_type = #tpu.core_type<tc>, window_params = [{transform_indices = @transform_0, window_bounds = array<i64: 2, 32>}, {pipeline_mode = #tpu.pipeline_mode<synchronous>, transform_indices = @transform_1, window_bounds = array<i64: 1, 32>}, {pipeline_mode = #tpu.pipeline_mode<synchronous>, transform_indices = @transform_2, window_bounds = array<i64: 1, 32>}, {pipeline_mode = #tpu.pipeline_mode<synchronous>, transform_indices = @transform_3, window_bounds = array<i64: 32, 128>}, {pipeline_mode = #tpu.pipeline_mode<synchronous>, transform_indices = @transform_4, window_bounds = array<i64: 1, 128>}, {transform_indices = @transform_5, window_bounds = array<i64: 2, 128>}]} {
    %c0 = arith.constant 0 : index
    %c0_0 = arith.constant 0 : index
    %0 = vector.load %arg1[%c0, %c0_0] : memref<2x32xbf16, #tpu.memory_space<vmem>>, vector<2x32xbf16>
    %1 = arith.extf %0 : vector<2x32xbf16> to vector<2x32xf32>
    %c0_1 = arith.constant 0 : index
    %c0_2 = arith.constant 0 : index
    %2 = vector.load %arg2[%c0_1, %c0_2] : memref<1x32xf32, #tpu.memory_space<vmem>>, vector<1x32xf32>
    %c0_3 = arith.constant 0 : index
    %c0_4 = arith.constant 0 : index
    %3 = vector.load %arg3[%c0_3, %c0_4] : memref<1x32xf32, #tpu.memory_space<vmem>>, vector<1x32xf32>
    %cst = arith.constant dense<0.000000e+00> : vector<2xf32>
    %4 = vector.multi_reduction <add>, %1, %cst [1] : vector<2x32xf32> to vector<2xf32>
    %5 = vector.shape_cast %4 : vector<2xf32> to vector<2x1xf32>
    %cst_5 = arith.constant 3.200000e+01 : f32
    %6 = vector.broadcast %cst_5 : f32 to vector<2x1xf32>
    %7 = arith.divf %5, %6 : vector<2x1xf32>
    %8 = vector.broadcast %7 : vector<2x1xf32> to vector<2x32xf32>
    %9 = arith.subf %1, %8 : vector<2x32xf32>
    %10 = arith.mulf %9, %9 : vector<2x32xf32>
    %cst_6 = arith.constant dense<0.000000e+00> : vector<2xf32>
    %11 = vector.multi_reduction <add>, %10, %cst_6 [1] : vector<2x32xf32> to vector<2xf32>
    %12 = vector.shape_cast %11 : vector<2xf32> to vector<2x1xf32>
    %cst_7 = arith.constant 3.200000e+01 : f32
    %13 = vector.broadcast %cst_7 : f32 to vector<2x1xf32>
    %14 = arith.divf %12, %13 : vector<2x1xf32>
    %15 = vector.broadcast %7 : vector<2x1xf32> to vector<2x32xf32>
    %16 = arith.subf %1, %15 : vector<2x32xf32>
    %cst_8 = arith.constant 9.99999974E-6 : f32
    %17 = vector.broadcast %cst_8 : f32 to vector<2x1xf32>
    %18 = arith.addf %14, %17 : vector<2x1xf32>
    %19 = math.rsqrt %18 : vector<2x1xf32>
    %20 = vector.broadcast %19 : vector<2x1xf32> to vector<2x32xf32>
    %21 = arith.mulf %16, %20 : vector<2x32xf32>
    %22 = vector.broadcast %2 : vector<1x32xf32> to vector<2x32xf32>
    %23 = arith.mulf %21, %22 : vector<2x32xf32>
    %24 = vector.broadcast %3 : vector<1x32xf32> to vector<2x32xf32>
    %25 = arith.addf %23, %24 : vector<2x32xf32>
    %26 = arith.truncf %25 : vector<2x32xf32> to vector<2x32xbf16>
    %c0_9 = arith.constant 0 : index
    %c0_10 = arith.constant 0 : index
    %27 = vector.load %arg4[%c0_9, %c0_10] : memref<32x128xbf16, #tpu.memory_space<vmem>>, vector<32x128xbf16>
    %cst_11 = arith.constant dense<0.000000e+00> : vector<2x128xf32>
    %28 = tpu.matmul %26, %27, %cst_11 {dimension_numbers = #tpu.dot_dimension_numbers<[1], [0], [0], [1], [0, 0, 1, 1], [], []>} : vector<2x32xbf16>, vector<32x128xbf16>, vector<2x128xf32> -> vector<2x128xf32>
    %c0_12 = arith.constant 0 : index
    %c0_13 = arith.constant 0 : index
    %29 = vector.load %arg5[%c0_12, %c0_13] : memref<1x128xf32, #tpu.memory_space<vmem>>, vector<1x128xf32>
    %30 = vector.broadcast %29 : vector<1x128xf32> to vector<2x128xf32>
    %31 = arith.addf %28, %30 : vector<2x128xf32>
    %c0_14 = arith.constant 0 : index
    %c0_15 = arith.constant 0 : index
    %32 = vector.load %arg6[%c0_14, %c0_15] : memref<2x128xf32, #tpu.memory_space<vmem>>, vector<2x128xf32>
    tpu.vector_store %arg6[%c0_14, %c0_15], %31 {strides = array<i32>} : memref<2x128xf32, #tpu.memory_space<vmem>>, vector<2x128xf32>,
    return
  }
  func.func @transform_0(%arg0: i32) -> (i32, i32) {
    %c0_i32 = arith.constant 0 : i32
    %c0_i32_0 = arith.constant 0 : i32
    return %arg0, %c0_i32 : i32, i32
  }
  func.func @transform_1(%arg0: i32) -> (i32, i32) {
    %c0_i32 = arith.constant 0 : i32
    %c0_i32_0 = arith.constant 0 : i32
    %c0_i32_1 = arith.constant 0 : i32
    return %c0_i32, %c0_i32_0 : i32, i32
  }
  func.func @transform_2(%arg0: i32) -> (i32, i32) {
    %c0_i32 = arith.constant 0 : i32
    %c0_i32_0 = arith.constant 0 : i32
    %c0_i32_1 = arith.constant 0 : i32
    return %c0_i32, %c0_i32_0 : i32, i32
  }
  func.func @transform_3(%arg0: i32) -> (i32, i32) {
    %c0_i32 = arith.constant 0 : i32
    %c0_i32_0 = arith.constant 0 : i32
    %c0_i32_1 = arith.constant 0 : i32
    return %c0_i32, %c0_i32_0 : i32, i32
  }
  func.func @transform_4(%arg0: i32) -> (i32, i32) {
    %c0_i32 = arith.constant 0 : i32
    %c0_i32_0 = arith.constant 0 : i32
    %c0_i32_1 = arith.constant 0 : i32
    return %c0_i32, %c0_i32_0 : i32, i32
  }
  func.func @transform_5(%arg0: i32) -> (i32, i32) {
    %c0_i32 = arith.constant 0 : i32
    %c0_i32_0 = arith.constant 0 : i32
    return %arg0, %c0_i32 : i32, i32
  }
}

</mosaic_0001>

<bundles_post_ra>
// kernel: vision_transformer_forward.3
= control target key start
LH: loop header
LB: loop body
LE: loop exit
PB: predicated region body
PF: predicated region fallthrough
CT: control target
= control target key end

     0   :  { %vm69_vm0 = vcmask 523264   ;;  %vm135_vm1 = vcmask 253952   ;;  %vm136_vm2 = vsmask.f32 256  ;;  %vm198_vm4 = vcmask 257024   ;;  %s406_s1 = inlined_call_operand.vmem [shape: bf16[64,32], index: 1, kind: input, shape index: {}]   ;;  %s407_s0 = inlined_call_operand.vmem [shape: f32[2,16,64], index: 0, kind: input, shape index: {}]   ;;  %s408_s3 = inlined_call_operand.vmem [shape: f32[1,32], index: 3, kind: input, shape index: {}]   ;;  %s409_s4 = inlined_call_operand.vmem [shape: f32[1,32], index: 4, kind: input, shape index: {}]   ;;  %s410_s6 = inlined_call_operand.vmem [shape: bf16[2,17,32], index: 6, kind: output, shape index: {}]   ;;  %s411_s2 = inlined_call_operand.vmem [shape: f32[1,32], index: 2, kind: input, shape index: {}]   ;;  %s412_s5 = inlined_call_operand.vmem [shape: f32[16,32], index: 5, kind: input, shape index: {}]  }
   0x1   :  { %v253_v0 = vld [vmem:[%s406_s1 + $0x18] sm:$0xff]   ;;  %v254_v1 = vld [vmem:[%s406_s1 + $0x10] sm:$0xff]   ;;  %v255_v2 = vld [vmem:[%s406_s1 + $0x8] sm:$0xff]   ;;  %vm199_vm5 = vsmask.f32 7938 }
   0x2   :  { %241 = vmatprep.subr.bf16.mxu0 %v253_v0  ;;  %v24_v3 = vld [vmem:[%s407_s0] sm:$0xff]  ;;  %v25_v4 = vld [vmem:[%s407_s0 + $0x8] sm:$0xff]  ;;  %v26_v7 = vld [vmem:[%s407_s0 + $0x10] sm:$0xff]  ;;  %vm156_vm7 = vsmask.f32 4368 }
   0x3   :  { %242 = vmatpush3.bf16.msra.mxu0 %v253_v0  ;;  %v28_v5 = vpack.c.bf16 %v25_v4, %v24_v3  ;;  %v256_v6 = vld [vmem:[%s406_s1] sm:$0xff]   ;;  %v27_v8 = vld [vmem:[%s407_s0 + $0x18] sm:$0xff]  ;;  %vm323_vm3 = vmand %vm135_vm1, %vm136_vm2 }
   0x4   :  { %243 = vmatprep.subr.bf16.mxu0 %v254_v1  ;;  %v29_v9 = vpack.c.bf16 %v27_v8, %v26_v7  ;;  %v131_v10 = vld [vmem:[%s408_s3] sm:$0x1]  ;;  %v141_v15 = vld [vmem:[%s410_s6 + $0xc] sm:$0x1]  ;;  %vm353_vm6 = vmand %vm198_vm4, %vm199_vm5 }
   0x5   :  { %249 = vmatprep.mubr.msk.bf16.mxu0 %vm69_vm0, %v28_v5  ;;  %v132_v11 = vld [vmem:[%s409_s4] sm:$0x1]  ;;  %v126_v27 = vld [vmem:[%s412_s5 + $0x8] sm:$0xff]  ;;  %vm369_vm8 = vmor %vm136_vm2, %vm156_vm7 }
   0x6   :  { %v133_v12 = vadd.f32 %v132_v11, %v131_v10  ;;  %v138_v17 = vld [vmem:[%s410_s6] sm:$0x1]  ;;  %v213_v54 = vld [vmem:[%s410_s6 + $0x14] sm:$0x1]  ;;  %v206_v0 = vld [vmem:[%s410_s6 + $0x8] sm:$0x1] }
   0x7   :  { %244 = vmatpush3.bf16.msra.mxu0 %v254_v1  ;;  %v220_v19 = vld [vmem:[%s411_s2] ss:$0 sm:$0xff] }
   0x8   :  { %245 = vmatprep.subr.bf16.mxu0 %v255_v2  ;;  %v134_v13 = vpack.c.bf16 %v133_v12, %v133_v12  ;;  %v125_v21 = vld [vmem:[%s412_s5] sm:$0xff] }
   0xa   :  { %v142_v16 = vsel %vm323_vm3, %v134_v13, %v141_v15  ;;  %v139_v18 = vsel %vm323_vm3, %v134_v13, %v138_v17 }
   0xb   :  { %246 = vmatpush3.bf16.msra.mxu0 %v255_v2  ;;  %143 = vst [vmem:[%s410_s6 + $0xc] sm:$0x1] %v142_v16  ;;  %140 = vst [vmem:[%s410_s6] sm:$0x1] %v139_v18 }
   0xc   :  { %247 = vmatprep.subr.bf16.mxu0 %v256_v6 }
   0xf   :  { %248 = vmatpush3.bf16.msra.mxu0 %v256_v6 }
  0x12   :  { %250 = vmatmul.mubr.msk.bf16.vlgmr.msra.gmra.mxu0 %vm69_vm0, %v29_v9  ;;  %v209_v41 = vld [vmem:[%s410_s6 + $0xc] sm:$0xf]  ;;  %v201_v47 = vld [vmem:[%s410_s6] sm:$0xf] }
  0xd2   :  { %v251_v20 = vpop.f32.mrf.mxu0 }
  0xd3   :  { %v119_v22 = vadd.f32 %v251_v20, %v220_v19 }
  0xd4   :  { %v110_v23 = vpop.f32.mrf.mxu0 }
  0xd5   :  { %v129_v24 = vadd.f32 %v125_v21, %v119_v22  ;;  %v111_v25 = vadd.f32 %v220_v19, %v110_v23 }
  0xd6   :  { %v252_v26 = vpop.f32.mrf.mxu0 }
  0xd7   :  { %v233_v28 = vpack.c.bf16 %v129_v24, %v129_v24  ;;  %v127_v29 = vadd.f32 %v125_v21, %v111_v25  ;;  %v122_v30 = vadd.f32 %v252_v26, %v220_v19 }
  0xd8   :  { %v113_v31 = vpop.f32.mrf.mxu0 }
  0xd9   :  { %v176_v32 = vshrl.u32 %v233_v28, 16  ;;  %v231_v33 = vpack.c.bf16 %v127_v29, %v127_v29  ;;  %v130_v34 = vadd.f32 %v126_v27, %v122_v30  ;;  %v114_v35 = vadd.f32 %v220_v19, %v113_v31 }
  0xda   :  { %v179_v37 = vshll.u32 %v233_v28, 16 }
  0xdb   :  { %v178_v36 = vrot.slane %v176_v32, 7  ;;  %v159_v38 = vshrl.u32 %v231_v33, 16  ;;  %v234_v39 = vpack.c.bf16 %v130_v34, %v130_v34  ;;  %v128_v42 = vadd.f32 %v126_v27, %v114_v35 }
  0xdc   :  { %v162_v45 = vshll.u32 %v231_v33, 16 }
  0xdd   :  { %v181_v43 = vor.u32 %v179_v37, %v178_v36  ;;  %v161_v44 = vrot.slane %v159_v38, 7  ;;  %v184_v46 = vshrl.u32 %v234_v39, 16  ;;  %v232_v48 = vpack.c.bf16 %v128_v42, %v128_v42 }
  0xde   :  { %v187_v52 = vshll.u32 %v234_v39, 16  ;;  %v182_v56 = vrot.slane %v178_v36, 4 }
  0xdf   :  { %v210_v49 = vsel %vm353_vm6, %v181_v43, %v209_v41  ;;  %v164_v50 = vor.u32 %v162_v45, %v161_v44  ;;  %v186_v51 = vrot.slane %v184_v46, 7  ;;  %v167_v55 = vshrl.u32 %v232_v48, 16 }
  0xe0   :  { %211 = vst [vmem:[%s410_s6 + $0xc] sm:$0xf] %v210_v49  ;;  %v170_v61 = vshll.u32 %v232_v48, 16  ;;  %v165_v1 = vrot.slane %v161_v44, 4 }
  0xe1   :  { %v202_v57 = vsel %vm353_vm6, %v164_v50, %v201_v47  ;;  %v189_v58 = vor.u32 %v187_v52, %v186_v51  ;;  %v191_v59 = vrot.slane %v186_v51, 4  ;;  %v169_v60 = vrot.slane %v167_v55, 7 }
  0xe2   :  { %203 = vst [vmem:[%s410_s6] sm:$0xf] %v202_v57 }
  0xe3   :  { %v190_v62 = vsel %vm369_vm8, %v182_v56, %v189_v58  ;;  %v214_v63 = vsel %vm323_vm3, %v191_v59, %v213_v54  ;;  %v172_v2 = vor.u32 %v170_v61, %v169_v60  ;;  %v174_v3 = vrot.slane %v169_v60, 4 }
  0xe4   :  { %212 = vst.msk [vmem:[%s410_s6 + $0x10] sm:$0xf] %vm198_vm4, %v190_v62  ;;  %215 = vst [vmem:[%s410_s6 + $0x14] sm:$0x1] %v214_v63 }
  0xe5   :  { %v173_v4 = vsel %vm369_vm8, %v165_v1, %v172_v2  ;;  %v207_v5 = vsel %vm323_vm3, %v174_v3, %v206_v0 }
  0xe6   :  { %205 = vst.msk [vmem:[%s410_s6 + $0x4] sm:$0xf] %vm198_vm4, %v173_v4  ;;  %208 = vst [vmem:[%s410_s6 + $0x8] sm:$0x1] %v207_v5 }

// kernel: vision_transformer_forward.5
= control target key start
LH: loop header
LB: loop body
LE: loop exit
PB: predicated region body
PF: predicated region fallthrough
CT: control target
= control target key end

     0   :  { %vm26_vm0 = vcmask 254976   ;;  %s238_s0 = inlined_call_operand.vmem [shape: bf16[2,32], index: 0, kind: input, shape index: {}]   ;;  %s239_s1 = inlined_call_operand.vmem [shape: f32[1,32], index: 1, kind: input, shape index: {}]   ;;  %s240_s2 = inlined_call_operand.vmem [shape: f32[1,32], index: 2, kind: input, shape index: {}]   ;;  %s241_s3 = inlined_call_operand.vmem [shape: bf16[32,128], index: 3, kind: input, shape index: {}]   ;;  %s242_s4 = inlined_call_operand.vmem [shape: f32[1,128], index: 4, kind: input, shape index: {}]   ;;  %s243_s5 = inlined_call_operand.hbm [shape: f32[2,128], index: 5, kind: output, shape index: {}]  }
   0x1   :  { %v22_v0 = vld [vmem:[%s238_s0] sm:$0x1] }
   0x2   :  { %v23_v1 = vunpack.c.l.bf16 %v22_v0 }
   0x3   :  { %10 = vsyncpa [#allocation3], 0  ;;  %v158_v8 = vld [vmem:[%s241_s3 + $0x8] sm:$0xff]   ;;  %v184_v9 = vmov 0.0   ;;  %vm185_vm1 = vmmov 0   ;;  %v159_v10 = vld [vmem:[%s241_s3] sm:$0xff]  }
   0x4   :  { %v27_v2 = vsel %vm26_vm0, %v23_v1, 0.0  ;;  %147 = vmatprep.subr.bf16.mxu0 %v184_v9  ;;  %151 = vmatprep.mubr.msk.bf16.mxu0 %vm185_vm1, %v184_v9  ;;  %v138_v15 = vld [vmem:[%s239_s1] ss:$0 sm:$0xff]  ;;  %vm79_vm2 = vcmask 261120   ;;  %s186_s28 = smov [#allocation2]  }
   0x5   :  { %28 = vadd.xlane.f32.xlu0 %v27_v2  ;;  %148 = vmatpush3.bf16.msra.mxu0 %v158_v8  ;;  %v139_v17 = vld [vmem:[%s240_s2] ss:$0 sm:$0xff]  ;;  %s130_s29 = sshll.u32 %s186_s28, 4  ;;  %s131_s29 = int_to_ptr.vmem [resolvable:$true] %s130_s29 }
   0x6   :  { %149 = vmatprep.subr.bf16.mxu0 %v184_v9  ;;  %v140_v21 = vld [vmem:[%s242_s4] ss:$0 sm:$0xff]  ;;  %s162_s1 = scalar_lea.vmem %s131_s29, 32  ;;  %p167_p1 = scmp.lt.s32.totalorder %s131_s29, %s131_s29 }
   0x7   :  { %p163_p0 = scmp.ne.s32.totalorder %s131_s29, %s162_s1  ;;  %p168_p2 = scmp.lt.s32.totalorder %s162_s1, %s162_s1 }
   0x9   :  { %150 = vmatpush3.bf16.msra.mxu0 %v159_v10  ;;  %p169_p3 = por %p168_p2, %p167_p1 }
   0xb   :  { %p170_p4 = pnand %p169_p3, %p163_p0 }
  0x8e   :  { %v29_v3 = vpop.xlane.xlu0 %28 }
  0x8f   :  { %v31_v4 = vmul.f32 0.03125, %v29_v3 }
  0x91   :  { %v32_v5 = vsub.f32 %v23_v1, %v31_v4 }
  0x93   :  { %v33_v6 = vmul.f32 %v32_v5, %v32_v5 }
  0x95   :  { %v34_v7 = vsel %vm26_vm0, %v33_v6, 0.0 }
  0x96   :  { %35 = vadd.xlane.f32.xlu0 %v34_v7 }
 0x11f   :  { %v36_v11 = vpop.xlane.xlu0 %35 }
 0x120   :  { %v37_v12 = vmul.f32 0.03125, %v36_v11 }
 0x122   :  { %v38_v13 = vadd.f32 1e-05, %v37_v12 }
 0x124   :  { %160 = vrsqrt.f32 %v38_v13 }
 0x131   :  { %v161_v14 = vpop.eup %160 }
 0x132   :  { %v40_v16 = vmul.f32 %v161_v14, %v32_v5 }
 0x134   :  { %v47_v18 = vmul.f32 %v138_v15, %v40_v16 }
 0x136   :  { %v54_v19 = vadd.f32 %v139_v17, %v47_v18 }
 0x138   :  { %v55_v20 = vpack.c.bf16 %v54_v19, %v54_v19 }
 0x13a   :  { %152 = vmatmul.mubr.msk.bf16.vlgmr.msra.gmra.mxu0 %vm79_vm2, %v55_v20 }
 0x1fa   :  { %v117_v22 = vpop.f32.mrf.mxu0 }
 0x1fb   :  { %v118_v23 = vadd.f32 %v140_v21, %v117_v22 }
 0x1fc   :  { %v153_v24 = vpop.f32.mrf.mxu0 }
 0x1fd   :  { %123 = vst [vmem:[#allocation2] sm:$0x3] %v118_v23 }
 0x1fe   :  { %v120_v25 = vpop.f32.mrf.mxu0 }
 0x1ff   :  { %173 = shalt.err (!%p170_p4)
}
 0x200   :  { %133 = dma.vmem_to_hbm [thread:$0]  %s131_s29, 32, %s243_s5, [#allocation3]   ;;  %v154_v26 = vpop.f32.mrf.mxu0 }
 0x201   :  { %182 = dma.done.wait [#allocation3], 32  }
 0x202   :  { %183 = vsyncadd [#allocation3], 4294967264 }
 0x203   :  { %137 = vsyncpa [#allocation3], 1 }

// kernel: vision_transformer_forward.4
= control target key start
LH: loop header
LB: loop body
LE: loop exit
PB: predicated region body
PF: predicated region fallthrough
CT: control target
= control target key end

     0   :  { %s6694_s25 = smov 0   ;;  %s6696_s26 = smov 0   ;;  %s7776_s0 = inlined_call_operand.vmem [shape: bf16[2,17,32], index: 0, kind: input, shape index: {}]   ;;  %s7777_s1 = inlined_call_operand.vmem [shape: f32[2,1,32], index: 1, kind: input, shape index: {}]   ;;  %s7778_s2 = inlined_call_operand.vmem [shape: f32[2,1,32], index: 2, kind: input, shape index: {}]   ;;  %s7779_s3 = inlined_call_operand.vmem [shape: bf16[2,32,96], index: 3, kind: input, shape index: {}]   ;;  %s7780_s4 = inlined_call_operand.vmem [shape: f32[2,1,96], index: 4, kind: input, shape index: {}]   ;;  %s7781_s5 = inlined_call_operand.vmem [shape: bf16[2,32,32], index: 5, kind: input, shape index: {}]   ;;  %s7782_s6 = inlined_call_operand.vmem [shape: f32[2,1,32], index: 6, kind: input, shape index: {}]   ;;  %s7783_s7 = inlined_call_operand.vmem [shape: f32[2,1,32], index: 7, kind: input, shape index: {}]   ;;  %s7784_s8 = inlined_call_operand.vmem [shape: f32[2,1,32], index: 8, kind: input, shape index: {}]   ;;  %s7785_s9 = inlined_call_operand.vmem [shape: bf16[2,32,64], index: 9, kind: input, shape index: {}]   ;;  %s7786_s10 = inlined_call_operand.vmem [shape: f32[2,1,64], index: 10, kind: input, shape index: {}]   ;;  %s7787_s11 = inlined_call_operand.vmem [shape: bf16[2,64,32], index: 11, kind: input, shape index: {}]   ;;  %s7788_s12 = inlined_call_operand.vmem [shape: f32[2,1,32], index: 12, kind: input, shape index: {}]   ;;  %s7789_s13 = inlined_call_operand.vmem [shape: bf16[2,17,32], index: 13, kind: output, shape index: {}]  }
   0x1   :  { %7794 = sst [smem:[#allocation8_spill]] %s7779_s3  ;;  %s6698_s27 = smov 0  }
   0x2   :  { %7795 = sst [smem:[#allocation9_spill]] %s7781_s5 }
   0x3   :  { %7796 = sst [smem:[#allocation10_spill]] %s7789_s13 }
   0x4 LB: > { %7797 = sst [smem:[#allocation4_spill]] %s6597_s26  ;;  %s32_s28 = sadd.s32 1, %s6597_s26  ;;  %s6601_s27 = sphi %s6698_s27, %s23_s27   ;;  %s6597_s26 = sphi %s6696_s26, %s7813_s26   ;;  %s6593_s25 = sphi %s6694_s25, %s7812_s25  }
   0x5   : > { %7798 = sst [smem:[#allocation5_spill]] %s6601_s27  ;;  %p5961_p0 = scmp.ge.s32.totalorder %s6601_s27, 1 }
   0x6   : > { %p33_p1 = scmp.ge.s32.totalorder %s32_s28, 2  ;;  %p505_p2 = scmp.lt.s32.totalorder %s6601_s27, 3 }
   0x8   : > { %s7815_s28 = smov (%p33_p1, %s32_s28), 0  ;;  %p506_p3 = pnand %p5961_p0, %p505_p2 }
   0x9   : > { %7799 = sst [smem:[#allocation6_spill]] %s7815_s28 }
   0xa   : > { %509 = sbr.rel (%p506_p3) target bundleno = 4327 (0x10e7), region = 72 }
   0xf   : > { %p602_p4 = scmp.lt.s32.totalorder %s6593_s25, 1  ;;  %s7800_s3 = sld [smem:[#allocation8_spill]] }
  0x10   : > { %s7801_s5 = sld [smem:[#allocation9_spill]]  ;;  %p5970_p5 = scmp.ne.s32.totalorder %s6593_s25, 0 }
  0x11   : > { %s6716_s29 = scalar_select %p602_p4, %s6593_s25, 1 }
  0x13   : > { %s6083_s19 = sshll.u32 %s6716_s29, 4  ;;  %s626_s13 = scalar_lea.vmem %s7783_s7, %s6716_s29 }
  0x14   : > { %s629_s22 = scalar_lea.vmem %s7784_s8, %s6716_s29  ;;  %s645_s20 = scalar_lea.vmem %s7788_s12, %s6716_s29 }
  0x15   : > { %s6734_s30 = scalar_lea.vmem %s7800_s3, %s6083_s19  ;;  %s6756_s3 = scalar_lea.vmem %s7785_s9, %s6083_s19 }
  0x16   : > { %s6739_s26 = scalar_lea.vmem %s7801_s5, %s6083_s19  ;;  %s637_s5 = scalar_lea.vmem %s7786_s10, %s6716_s29 }
  0x17   : > { %7802 = sst [smem:[#allocation7_spill]] %s6739_s26  ;;  %s6086_s26 = sshll.u32 %s6716_s29, 5 }
  0x18   : > { %s6766_s16 = scalar_lea.vmem %s7787_s11, %s6086_s26  ;;  %667 = sbr.rel (%p5970_p5) target bundleno = 61 (0x3d), region = 76 }
  0x1d   : > { %v5971_v0 = vld.sshfl [vmem:[%s7776_s0] sm:$0x33 pattern:$0x75316420]  ;;  %v691_v1 = vlaneseq  ;;  %v6603_v2 = vmov 1966171168  }
  0x1e   : > { %v689_v3 = vunpack.c.l.s4 %v6603_v2  ;;  %v6604_v5 = vmov 1935823168   ;;  %v5972_v7 = vld.sshfl [vmem:[%s7776_s0 + $0x4] sm:$0x33 pattern:$0x75316420]  ;;  %v687_v8 = vcombine.high %v5971_v0, %v5971_v0 }
  0x1f   : > { %v692_v4 = vshrl.u32 %v691_v1, 7  ;;  %v858_v6 = vunpack.c.l.s4 %v6604_v5  ;;  %v711_v10 = vcombine.high %v5972_v7, %v5972_v7  ;;  %v5973_v11 = vld.sshfl [vmem:[%s7776_s0 + $0x8] sm:$0x1 pattern:$0x75316420]  ;;  %vm975_vm0 = vcmask 261120  }
  0x20   : > { %v690_v9 = vunpack.c.0.s8 %v689_v3  ;;  %v5974_v13 = vld.sshfl [vmem:[%s7776_s0 + $0xc] sm:$0x33 pattern:$0x75316420]  ;;  %vm980_vm1 = vcmask 254976  }
  0x21   : > { %v859_v12 = vunpack.c.0.s8 %v858_v6  ;;  %v749_v15 = vcombine.high %v5974_v13, %v5974_v13  ;;  %v5975_v16 = vld.sshfl [vmem:[%s7776_s0 + $0x10] sm:$0x33 pattern:$0x75316420] }
  0x22   : > { %v6785_v14 = vsub.s32 %v690_v9, %v692_v4  ;;  %v773_v18 = vcombine.high %v5975_v16, %v5975_v16  ;;  %v5976_v55 = vld.sshfl [vmem:[%s7776_s0 + $0x14] sm:$0x1 pattern:$0x75316420] }
  0x23   : > { %v6790_v17 = vsub.s32 %v859_v12, %v692_v4 }
  0x24   : > { %v694_v19 = vrot.slane %v5971_v0, %v6785_v14  ;;  %v701_v20 = vrot.slane %v687_v8, %v6785_v14  ;;  %v718_v21 = vrot.slane %v5972_v7, %v6785_v14  ;;  %v725_v22 = vrot.slane %v711_v10, %v6785_v14 }
  0x25   : > { %v741_v23 = vrot.slane %v5973_v11, %v6785_v14  ;;  %v756_v24 = vrot.slane %v5974_v13, %v6785_v14  ;;  %v763_v25 = vrot.slane %v749_v15, %v6785_v14  ;;  %v780_v26 = vrot.slane %v5975_v16, %v6785_v14 }
  0x26   : > { %v702_v27 = vcombine.high %v694_v19, %v694_v19  ;;  %v703_v28 = vcombine.high %v701_v20, %v701_v20  ;;  %v726_v29 = vcombine.high %v718_v21, %v718_v21  ;;  %v727_v30 = vcombine.high %v725_v22, %v725_v22 }
  0x27   : > { %v764_v31 = vcombine.high %v756_v24, %v756_v24  ;;  %v765_v32 = vcombine.high %v763_v25, %v763_v25  ;;  %v822_v33 = vunpack.i.h.s16 %v756_v24  ;;  %v824_v34 = vunpack.i.h.s16 %v763_v25 }
  0x28   : > { %v855_v35 = vcombine.low %v694_v19, %v702_v27  ;;  %v856_v36 = vcombine.low %v701_v20, %v703_v28  ;;  %v879_v37 = vcombine.low %v718_v21, %v726_v29  ;;  %v880_v38 = vcombine.low %v725_v22, %v727_v30 }
  0x29   : > { %v826_v39 = vunpack.i.h.s16 %v764_v31  ;;  %v5977_v40 = vpack.i.b16 %v756_v24, %v741_v23  ;;  %v5978_v41 = vpack.i.b16 %v763_v25, %v822_v33  ;;  %v5979_v42 = vpack.i.b16 %v764_v31, %v824_v34 }
  0x2a   : > { %v863_v43 = vrot.slane %v855_v35, %v6790_v17  ;;  %v870_v44 = vrot.slane %v856_v36, %v6790_v17  ;;  %v887_v45 = vrot.slane %v879_v37, %v6790_v17  ;;  %v894_v46 = vrot.slane %v880_v38, %v6790_v17 }
  0x2b   : > { %v5980_v47 = vpack.i.b16 %v765_v32, %v826_v39  ;;  %v903_v48 = vcombine.low %v5977_v40, %v5979_v42  ;;  %v787_v49 = vrot.slane %v773_v18, %v6785_v14  ;;  %v788_v50 = vcombine.high %v780_v26, %v780_v26 }
  0x2c   : > { %v871_v51 = vcombine.low %v863_v43, %v870_v44  ;;  %v895_v52 = vcombine.low %v887_v45, %v894_v46  ;;  %v828_v53 = vunpack.i.h.s16 %v765_v32  ;;  %v830_v54 = vunpack.i.h.s16 %v780_v26 }
  0x2d   : > { %v904_v56 = vcombine.low %v5978_v41, %v5980_v47  ;;  %v911_v57 = vrot.slane %v903_v48, %v6790_v17  ;;  %v789_v58 = vcombine.high %v787_v49, %v787_v49  ;;  %v832_v59 = vunpack.i.h.s16 %v787_v49 }
  0x2e   : > { %v878_v60 = vrot.slane %v871_v51, %v6790_v17  ;;  %v902_v61 = vrot.slane %v895_v52, %v6790_v17  ;;  %v834_v62 = vunpack.i.h.s16 %v788_v50  ;;  %v5981_v63 = vpack.i.b16 %v780_v26, %v828_v53 }
  0x2f   : > { %v918_v0 = vrot.slane %v904_v56, %v6790_v17  ;;  %v5982_v1 = vpack.i.b16 %v787_v49, %v830_v54  ;;  %v5983_v2 = vpack.i.b16 %v788_v50, %v832_v59  ;;  %v803_v3 = vrot.slane %v5976_v55, %v6785_v14 }
  0x30   : > { %v970_v4 = vunpack.c.l.bf16 %v878_v60  ;;  %v971_v5 = vunpack.c.l.bf16 %v902_v61  ;;  %v5984_v6 = vpack.i.b16 %v789_v58, %v834_v62  ;;  %v836_v7 = vunpack.i.h.s16 %v789_v58 }
  0x31   : > { %v919_v8 = vcombine.low %v911_v57, %v918_v0  ;;  %v927_v9 = vcombine.low %v5981_v63, %v5983_v2 }
  0x32   : > { %976 = vst.msk [vmem:[#allocation2] sm:$0xff] %vm975_vm0, %v970_v4  ;;  %977 = vst.msk [vmem:[#allocation2 + $0x8] sm:$0xff] %vm975_vm0, %v971_v5  ;;  %v928_v10 = vcombine.low %v5982_v1, %v5984_v6  ;;  %v5985_v11 = vpack.i.b16 %v803_v3, %v836_v7 }
  0x33   : > { %v926_v12 = vrot.slane %v919_v8, %v6790_v17  ;;  %v935_v13 = vrot.slane %v927_v9, %v6790_v17 }
  0x34   : > { %v942_v15 = vrot.slane %v928_v10, %v6790_v17  ;;  %v957_v14 = vrot.slane %v5985_v11, %v6790_v17 }
  0x35   : > { %v972_v16 = vunpack.c.l.bf16 %v926_v12 }
  0x36   : > { %v943_v18 = vcombine.low %v935_v13, %v942_v15  ;;  %v964_v19 = vrot.slane %v957_v14, %v6790_v17 }
  0x37   : > { %978 = vst.msk [vmem:[#allocation2 + $0x10] sm:$0xff] %vm975_vm0, %v972_v16 }
  0x38   : > { %v950_v20 = vrot.slane %v943_v18, %v6790_v17  ;;  %v974_v21 = vunpack.c.l.bf16 %v964_v19 }
  0x3a   : > { %v973_v22 = vunpack.c.l.bf16 %v950_v20  ;;  %981 = vst.msk [vmem:[#allocation2 + $0x20] sm:$0x3] %vm980_vm1, %v974_v21 }
  0x3c   : > { %979 = vst.msk [vmem:[#allocation2 + $0x18] sm:$0xff] %vm975_vm0, %v973_v22 }
  0x3d PF: > { %v982_v23 = vld [vmem:[#allocation2] sm:$0xff]  ;;  %vm989_vm2 = vcmask 261120   ;;  %v983_v25 = vld [vmem:[#allocation2 + $0x8] sm:$0xff]  ;;  %vm1002_vm3 = vcmask 254976   ;;  %v6605_v58 = vmov 0.0   ;;  %vm6606_vm4 = vmmov 0   ;;  %s7803_s23 = scalar_lea.vmem %s7777_s1, %s6716_s29  ;;  %s7804_s28 = scalar_lea.vmem %s7778_s2, %s6716_s29 }
  0x3e   : > { %v984_v24 = vld [vmem:[#allocation2 + $0x10] sm:$0xff]  ;;  %v990_v26 = vsel %vm989_vm2, %v982_v23, 0.0  ;;  %v993_v28 = vsel %vm989_vm2, %v983_v25, 0.0  ;;  %v6436_v57 = vld [vmem:[%s6734_s30 + $0x8] sm:$0xff]   ;;  %6179 = vmatprep.subr.bf16.mxu1 %v6605_v58  ;;  %6183 = vmatprep.mubr.msk.bf16.mxu1 %vm6606_vm4, %v6605_v58  ;;  %v6437_v59 = vld [vmem:[%s6734_s30] sm:$0xff]   ;;  %s7805_s15 = scalar_lea.vmem %s7780_s4, %s6716_s29  ;;  %vm1633_vm5 = vcmask 64512  }
  0x3f   : > { %v996_v27 = vsel %vm989_vm2, %v984_v24, 0.0  ;;  %991 = vadd.xlane.f32.xlu0 %v990_v26  ;;  %6180 = vmatpush3.bf16.msra.mxu1 %v6436_v57  ;;  %v5986_v13 = vld [vmem:[%s7803_s23] ss:$0 sm:$0xff]  ;;  %s6608_s18 = smov 96   ;;  %vm1760_vm6 = vcmask 138240   ;;  %vm1767_vm7 = vcmask 131072  }
  0x40   : > { %997 = vadd.xlane.f32.xlu1 %v996_v27  ;;  %6181 = vmatprep.subr.bf16.mxu1 %v6605_v58  ;;  %v5987_v19 = vld [vmem:[%s7804_s28] ss:$0 sm:$0xff]  ;;  %s6609_s17 = smov 64   ;;  %s6610_s21 = smov 88   ;;  %vm1843_vm8 = vcmask 1040384   ;;  %vm2409_vm9 = vcmask 58368  }
  0x41   : > { %v986_v30 = vld [vmem:[#allocation2 + $0x20] sm:$0x3]  ;;  %s6612_s30 = smov 120   ;;  %s6613_s19 = smov 56   ;;  %vm3197_vm10 = vcmask 130112   ;;  %vm3990_vm11 = vcmask 195712  }
  0x42   : > { %v1003_v31 = vsel %vm1002_vm3, %v986_v30, 0.0  ;;  %s6614_s23 = smov 80   ;;  %s6615_s26 = smov 112   ;;  %vm4783_vm12 = vcmask 261312   ;;  %vm3202_vm13 = vcmask 123968   ;;  %vm3995_vm14 = vcmask 189568  }
  0x43   : > { %v985_v29 = vld [vmem:[#allocation2 + $0x18] sm:$0xff]  ;;  %994 = vadd.xlane.f32.xlu0 %v993_v28  ;;  %6182 = vmatpush3.bf16.msra.mxu1 %v6437_v59  ;;  %s6616_s24 = smov 48   ;;  %s6617_s28 = smov 72   ;;  %vm4788_vm15 = vcmask 255168   ;;  %vm5197_vm1 = vcmask 523264  }
  0x44   : > { %v999_v17 = vsel %vm989_vm2, %v985_v29, 0.0  ;;  %s6618_s14 = smov 104   ;;  %s6619_s27 = smov 40  }
  0x45   : > { %1000 = vadd.xlane.f32.xlu1 %v999_v17  ;;  %p6068_p6 = scmp.ne.s32.totalorder %s6593_s25, 1 }
  0x47   : > { %1004 = vadd.xlane.f32.xlu0 %v1003_v31 }
  0xc8   : > { %v992_v32 = vpop.xlane.xlu0 %991 }
  0xc9   : > { %v998_v33 = vpop.xlane.xlu1 %997  ;;  %v1007_v34 = vmul.f32 0.03125, %v992_v32 }
  0xca   : > { %v1009_v35 = vmul.f32 0.03125, %v998_v33 }
  0xcb   : > { %v1012_v36 = vsub.f32 %v982_v23, %v1007_v34 }
  0xcc   : > { %v6828_v37 = vsub.f32 %v984_v24, %v1009_v35  ;;  %v995_v38 = vpop.xlane.xlu0 %994 }
  0xcd   : > { %v1008_v40 = vmul.f32 0.03125, %v995_v38  ;;  %v1017_v42 = vmul.f32 %v1012_v36, %v1012_v36  ;;  %v1179_v38 = vlaneseq }
  0xce   : > { %v1001_v39 = vpop.xlane.xlu1 %1000  ;;  %v1019_v43 = vmul.f32 %v6828_v37, %v6828_v37 }
  0xcf   : > { %v1010_v41 = vmul.f32 0.03125, %v1001_v39  ;;  %v1013_v44 = vsub.f32 %v983_v25, %v1008_v40  ;;  %v1022_v46 = vsel %vm989_vm2, %v1017_v42, 0.0  ;;  %v1180_v40 = vshrl.u32 %v1179_v38, 7 }
  0xd0   : > { %1023 = vadd.xlane.f32.xlu1 %v1022_v46  ;;  %v1005_v47 = vpop.xlane.xlu0 %1004  ;;  %v1028_v49 = vsel %vm989_vm2, %v1019_v43, 0.0 }
  0xd1   : > { %v1015_v45 = vsub.f32 %v985_v29, %v1010_v41  ;;  %v1011_v48 = vmul.f32 0.03125, %v1005_v47  ;;  %v1018_v50 = vmul.f32 %v1013_v44, %v1013_v44  ;;  %v6866_v41 = vld [vmem:[%s7805_s15] ss:$0 sm:$0xff]  ;;  %s6620_s15 = smov 8  }
  0xd3   : > { %v1020_v51 = vmul.f32 %v1015_v45, %v1015_v45  ;;  %v1016_v52 = vsub.f32 %v986_v30, %v1011_v48  ;;  %v1025_v53 = vsel %vm989_vm2, %v1018_v50, 0.0 }
  0xd4   : > { %1029 = vadd.xlane.f32.xlu1 %v1028_v49  ;;  %1026 = vadd.xlane.f32.xlu0 %v1025_v53 }
  0xd5   : > { %v1031_v54 = vsel %vm989_vm2, %v1020_v51, 0.0  ;;  %v1021_v55 = vmul.f32 %v1016_v52, %v1016_v52 }
  0xd7   : > { %v1034_v56 = vsel %vm1002_vm3, %v1021_v55, 0.0 }
  0xd8   : > { %1032 = vadd.xlane.f32.xlu0 %v1031_v54  ;;  %1035 = vadd.xlane.f32.xlu1 %v1034_v56 }
 0x159   : > { %v1024_v60 = vpop.xlane.xlu1 %1023 }
 0x15a   : > { %v1037_v61 = vmul.f32 0.03125, %v1024_v60 }
 0x15c   : > { %v1042_v62 = vadd.f32 1e-05, %v1037_v61 }
 0x15d   : > { %v1030_v63 = vpop.xlane.xlu1 %1029  ;;  %v1027_v0 = vpop.xlane.xlu0 %1026 }
 0x15e   : > { %6446 = vrsqrt.f32 %v1042_v62  ;;  %v1039_v1 = vmul.f32 0.03125, %v1030_v63  ;;  %v1038_v2 = vmul.f32 0.03125, %v1027_v0 }
 0x160   : > { %v1043_v3 = vadd.f32 1e-05, %v1038_v2  ;;  %v1044_v4 = vadd.f32 1e-05, %v1039_v1 }
 0x161   : > { %v1036_v5 = vpop.xlane.xlu1 %1035  ;;  %v1033_v6 = vpop.xlane.xlu0 %1032 }
 0x162   : > { %v1040_v7 = vmul.f32 0.03125, %v1033_v6  ;;  %6448 = vrsqrt.f32 %v1043_v3  ;;  %v1041_v8 = vmul.f32 0.03125, %v1036_v5 }
 0x163   : > { %6450 = vrsqrt.f32 %v1044_v4 }
 0x164   : > { %v1045_v9 = vadd.f32 1e-05, %v1040_v7  ;;  %v1046_v10 = vadd.f32 1e-05, %v1041_v8 }
 0x166   : > { %6452 = vrsqrt.f32 %v1045_v9 }
 0x167   : > { %6454 = vrsqrt.f32 %v1046_v10 }
 0x16b   : > { %v6447_v11 = vpop.eup %6446 }
 0x16c   : > { %v1052_v12 = vmul.f32 %v6447_v11, %v1012_v36  ;;  %v6607_v36 = vmov 1966171168  }
 0x16e   : > { %v1063_v16 = vmul.f32 %v5986_v13, %v1052_v12 }
 0x16f   : > { %v6449_v15 = vpop.eup %6448 }
 0x170   : > { %v1053_v14 = vmul.f32 %v6449_v15, %v1013_v44  ;;  %v6451_v18 = vpop.eup %6450  ;;  %v1074_v22 = vadd.f32 %v5987_v19, %v1063_v16 }
 0x171   : > { %v1054_v24 = vmul.f32 %v6451_v18, %v6828_v37  ;;  %v1177_v37 = vunpack.c.l.s4 %v6607_v36 }
 0x172   : > { %v1064_v20 = vmul.f32 %v5986_v13, %v1053_v14 }
 0x173   : > { %v6453_v21 = vpop.eup %6452  ;;  %v1065_v29 = vmul.f32 %v5986_v13, %v1054_v24  ;;  %v1178_v39 = vunpack.c.0.s8 %v1177_v37 }
 0x174   : > { %v1075_v23 = vadd.f32 %v5987_v19, %v1064_v20  ;;  %v1055_v25 = vmul.f32 %v6453_v21, %v1015_v45  ;;  %v6455_v28 = vpop.eup %6454 }
 0x175   : > { %v1056_v17 = vmul.f32 %v6455_v28, %v1016_v52  ;;  %v1076_v31 = vadd.f32 %v5987_v19, %v1065_v29  ;;  %v6868_v42 = vsub.s32 %v1178_v39, %v1180_v40 }
 0x176   : > { %v1079_v26 = vpack.c.bf16 %v1075_v23, %v1074_v22  ;;  %v1066_v27 = vmul.f32 %v5986_v13, %v1055_v25 }
 0x177   : > { %v1067_v33 = vmul.f32 %v5986_v13, %v1056_v17 }
 0x178   : > { %6184 = vmatmul.mubr.msk.bf16.vlgmr.msra.gmra.mxu1 %vm989_vm2, %v1079_v26  ;;  %v1077_v30 = vadd.f32 %v5987_v19, %v1066_v27 }
 0x179   : > { %6187 = vmatprep.mubr.msk.bf16.mxu1 %vm6606_vm4, %v6605_v58  ;;  %v1078_v34 = vadd.f32 %v5987_v19, %v1067_v33 }
 0x17a   : > { %v1080_v32 = vpack.c.bf16 %v1077_v30, %v1076_v31 }
 0x17b   : > { %v1081_v35 = vpack.c.bf16 %v1078_v34, %v1078_v34 }
 0x180   : > { %6188 = vmatmul.mubr.msk.bf16.gmra.mxu1 %vm989_vm2, %v1080_v32 }
 0x181   : > { %6191 = vmatprep.mubr.msk.bf16.mxu1 %vm6606_vm4, %v6605_v58 }
 0x188   : > { %6192 = vmatmul.mubr.msk.bf16.gmra.mxu1 %vm989_vm2, %v1081_v35 }
 0x238   : > { %v1148_v43 = vpop.f32.mrf.mxu1 }
 0x239   : > { %v1149_v44 = vadd.f32 %v6866_v41, %v1148_v43 }
 0x23a   : > { %v6185_v45 = vpop.f32.mrf.mxu1 }
 0x23b   : > { %v1175_v46 = vcombine.high %v1149_v44, %v1149_v44  ;;  %v1182_v47 = vrot.slane %v1149_v44, %v6868_v42 }
 0x23c   : > { %v1151_v48 = vpop.f32.mrf.mxu1 }
 0x23d   : > { %v1189_v49 = vrot.slane %v1175_v46, %v6868_v42  ;;  %v1190_v50 = vcombine.high %v1182_v47, %v1182_v47  ;;  %v1152_v51 = vadd.f32 %v6866_v41, %v1151_v48  ;;  %v1198_v54 = vrot.slane %v1182_v47, %v6868_v42 }
 0x23e   : > { %v6186_v52 = vpop.f32.mrf.mxu1 }
 0x23f   : > { %v1191_v53 = vcombine.high %v1189_v49, %v1189_v49  ;;  %v1212_v55 = vrot.slane %v1190_v50, %v6868_v42  ;;  %v1224_v56 = vcombine.high %v1152_v51, %v1152_v51  ;;  %v1205_v57 = vrot.slane %v1189_v49, %v6868_v42 }
 0x240   : > { %v1231_v59 = vrot.slane %v1152_v51, %v6868_v42  ;;  %v1156_v60 = vpop.f32.mrf.mxu1 }
 0x241   : > { %v1219_v61 = vrot.slane %v1191_v53, %v6868_v42  ;;  %v1393_v62 = vcombine.low %v1198_v54, %v1212_v55  ;;  %v5994_v63 = vcombine.high %v1198_v54, %v1212_v55  ;;  %v1238_v0 = vrot.slane %v1224_v56, %v6868_v42 }
 0x242   : > { %v1239_v1 = vcombine.high %v1231_v59, %v1231_v59  ;;  %v1157_v2 = vadd.f32 %v6866_v41, %v1156_v60  ;;  %v6189_v3 = vpop.f32.mrf.mxu1  ;;  %v1247_v7 = vrot.slane %v1231_v59, %v6868_v42 }
 0x243   : > { %v1395_v4 = vcombine.low %v1205_v57, %v1219_v61  ;;  %v5995_v5 = vcombine.high %v1205_v57, %v1219_v61  ;;  %v1403_v6 = vrot.slane %v1393_v62, %v6868_v42  ;;  %v1410_v8 = vrot.slane %v5994_v63, %v6868_v42 }
 0x244   : > { %v1240_v9 = vcombine.high %v1238_v0, %v1238_v0  ;;  %v1261_v10 = vrot.slane %v1239_v1, %v6868_v42  ;;  %v1273_v11 = vcombine.high %v1157_v2, %v1157_v2  ;;  %v1159_v12 = vpop.f32.mrf.mxu1  ;;  %v1254_v14 = vrot.slane %v1238_v0, %v6868_v42 }
 0x245   : > { %v1417_v13 = vrot.slane %v1395_v4, %v6868_v42  ;;  %v1424_v15 = vrot.slane %v5995_v5, %v6868_v42  ;;  %v1280_v16 = vrot.slane %v1157_v2, %v6868_v42  ;;  %v1425_v17 = vcombine.low %v1403_v6, %v1410_v8 }
 0x246   : > { %v1268_v18 = vrot.slane %v1240_v9, %v6868_v42  ;;  %v1442_v19 = vcombine.low %v1247_v7, %v1261_v10  ;;  %v5996_v20 = vcombine.high %v1247_v7, %v1261_v10  ;;  %v1287_v21 = vrot.slane %v1273_v11, %v6868_v42  ;;  %v6190_v22 = vpop.f32.mrf.mxu1 }
 0x247   : > { %v1426_v23 = vcombine.low %v1417_v13, %v1424_v15  ;;  %v1288_v24 = vcombine.high %v1280_v16, %v1280_v16  ;;  %v1296_v25 = vrot.slane %v1280_v16, %v6868_v42  ;;  %v1433_v45 = vrot.slane %v1425_v17, %v6868_v42 }
 0x248   : > { %v1444_v26 = vcombine.low %v1254_v14, %v1268_v18  ;;  %v5997_v27 = vcombine.high %v1254_v14, %v1268_v18  ;;  %v1452_v28 = vrot.slane %v1442_v19, %v6868_v42  ;;  %v1459_v29 = vrot.slane %v5996_v20, %v6868_v42  ;;  %v1164_v30 = vpop.f32.mrf.mxu1 }
 0x249   : > { %v1289_v31 = vcombine.high %v1287_v21, %v1287_v21  ;;  %v1303_v32 = vrot.slane %v1287_v21, %v6868_v42  ;;  %v1310_v33 = vrot.slane %v1288_v24, %v6868_v42  ;;  %v1440_v38 = vrot.slane %v1426_v23, %v6868_v42 }
 0x24a   : > { %v1466_v34 = vrot.slane %v1444_v26, %v6868_v42  ;;  %v1473_v35 = vrot.slane %v5997_v27, %v6868_v42  ;;  %v1474_v36 = vcombine.low %v1452_v28, %v1459_v29  ;;  %v6193_v37 = vpop.f32.mrf.mxu1  ;;  %v1497_v43 = vrot.slane %v1296_v25, %v6868_v42 }
 0x24b   : > { %v1317_v40 = vrot.slane %v1289_v31, %v6868_v42  ;;  %v1319_v46 = vcombine.high %v1303_v32, %v1303_v32  ;;  %v1320_v47 = vcombine.high %v1310_v33, %v1310_v33  ;;  %v1160_v48 = vadd.f32 %v6866_v41, %v1159_v12 }
 0x24c   : > { %v1475_v39 = vcombine.low %v1466_v34, %v1473_v35  ;;  %v1167_v44 = vpop.f32.mrf.mxu1  ;;  %v1482_v49 = vrot.slane %v1474_v36, %v6868_v42  ;;  %v1504_v51 = vrot.slane %v1497_v43, %v6868_v42  ;;  %v1165_v52 = vadd.f32 %v6866_v41, %v1164_v30 }
 0x24d   : > { %v1441_v54 = vcombine.low %v1433_v45, %v1440_v38  ;;  %v1318_v55 = vcombine.high %v1296_v25, %v1296_v25  ;;  %v1322_v56 = vcombine.high %v1160_v48, %v1160_v48  ;;  %v1329_v57 = vrot.slane %v1160_v48, %v6868_v42 }
 0x24e   : > { %v1489_v50 = vrot.slane %v1475_v39, %v6868_v42  ;;  %v6194_v53 = vpop.f32.mrf.mxu1  ;;  %v6908_v60 = vpack.c.bf16 %v1504_v51, %v1504_v51  ;;  %v1321_v61 = vcombine.high %v1317_v40, %v1317_v40  ;;  %v1377_v62 = vrot.slane %v1165_v52, %v6868_v42 }
 0x24f   : > { %v1506_v63 = vcombine.low %v1320_v47, %v1303_v32  ;;  %v1336_v0 = vrot.slane %v1322_v56, %v6868_v42  ;;  %v1337_v1 = vcombine.high %v1329_v57, %v1329_v57  ;;  %v1345_v2 = vrot.slane %v1329_v57, %v6868_v42 }
 0x250   : > { %v1490_v59 = vcombine.low %v1482_v49, %v1489_v50  ;;  %v1507_v41 = vcombine.low %v1317_v40, %v1319_v46  ;;  %v1378_v4 = vcombine.high %v1377_v62, %v1377_v62  ;;  %1631 = vrot.lane.b32.xlu0 %v6908_v60, %s6608_s18  ;;  %v1505_v5 = vcombine.low %v1310_v33, %v1318_v55 }
 0x251   : > { %v1338_v6 = vcombine.high %v1336_v0, %v1336_v0  ;;  %v1352_v7 = vrot.slane %v1336_v0, %v6868_v42  ;;  %v1359_v8 = vrot.slane %v1337_v1, %v6868_v42  ;;  %v1367_v9 = vcombine.high %v1345_v2, %v1345_v2 }
 0x252   : > { %v6913_v3 = vpack.c.bf16 %v1490_v59, %v1441_v54  ;;  %v1508_v10 = vcombine.low %v1321_v61, %v1345_v2  ;;  %v1392_v11 = vrot.slane %v1378_v4, %v6868_v42  ;;  %v1522_v12 = vrot.slane %v1506_v63, %v6868_v42 }
 0x253   : > { %v1366_v13 = vrot.slane %v1338_v6, %v6868_v42  ;;  %v1368_v15 = vcombine.high %v1352_v7, %v1352_v7  ;;  %v1369_v14 = vcombine.high %v1359_v8, %v1359_v8  ;;  %v1529_v16 = vrot.slane %v1507_v41, %v6868_v42 }
 0x254   : > { %1629 = vrot.lane.b32.xlu1 %v6913_v3, %s6608_s18  ;;  %6199 = vmatprep.mubr.msk.bf16.mxu1 %vm1633_vm5, %v6913_v3  ;;  %v1536_v18 = vrot.slane %v1508_v10, %v6868_v42  ;;  %v1554_v19 = vcombine.low %v1359_v8, %v1367_v9  ;;  %v1609_v20 = vrot.slane %v1392_v11, %v6868_v42 }
 0x255   : > { %v1555_v21 = vcombine.low %v1369_v14, %v1352_v7  ;;  %v1556_v22 = vcombine.low %v1366_v13, %v1368_v15  ;;  %v1370_v23 = vcombine.high %v1366_v13, %v1366_v13  ;;  %v1385_v24 = vrot.slane %v1377_v62, %v6868_v42 }
 0x256   : > { %v1515_v25 = vrot.slane %v1505_v5, %v6868_v42  ;;  %v1616_v26 = vrot.slane %v1609_v20, %v6868_v42  ;;  %v1538_v27 = vcombine.low %v1529_v16, %v1536_v18  ;;  %v1564_v28 = vrot.slane %v1554_v19, %v6868_v42 }
 0x257   : > { %v1571_v29 = vrot.slane %v1555_v21, %v6868_v42  ;;  %v1557_v30 = vcombine.low %v1370_v23, %v1385_v24  ;;  %v1578_v33 = vrot.slane %v1556_v22, %v6868_v42  ;;  %v6611_v24 = vmov 0  }
 0x258   : > { %v6934_v17 = vpack.c.bf16 %v1616_v26, %v1616_v26  ;;  %v1537_v31 = vcombine.low %v1515_v25, %v1522_v12  ;;  %v1552_v35 = vrot.slane %v1538_v27, %v6868_v42  ;;  %v6981_v25 = vsel %vm1843_vm8, 65535, %v6611_v24 }
 0x259   : > { %v1586_v32 = vcombine.low %v1564_v28, %v1571_v29  ;;  %v1585_v34 = vrot.slane %v1557_v30, %v6868_v42 }
 0x25a   : > { %1698 = vrot.lane.b32.xlu1 %v6934_v17, %s6608_s18  ;;  %v1545_v37 = vrot.slane %v1537_v31, %v6868_v42 }
 0x25b   : > { %v1587_v36 = vcombine.low %v1578_v33, %v1585_v34  ;;  %v1594_v38 = vrot.slane %v1586_v32, %v6868_v42 }
 0x25c   : > { %v1553_v40 = vcombine.low %v1545_v37, %v1552_v35 }
 0x25d   : > { %v1601_v39 = vrot.slane %v1587_v36, %v6868_v42 }
 0x25f   : > { %v1602_v43 = vcombine.low %v1594_v38, %v1601_v39 }
 0x261   : > { %v6944_v44 = vpack.c.bf16 %v1602_v43, %v1553_v40 }
 0x263   : > { %6207 = vmatprep.mubr.msk.bf16.mxu0 %vm1633_vm5, %v6944_v44  ;;  %1696 = vrot.lane.b32.xlu1 %v6944_v44, %s6608_s18  ;;  %s6621_s18 = smov 16  }
 0x2c2   : > { %v1632_v45 = vpop.permute.xlu0 %1631 }
 0x2c3   : > { %6375 = vmatprep.subr.msk.bf16.mxu1 %vm1633_vm5, %v1632_v45  ;;  %v1644_v46 = vsel %vm1633_vm5, %v1632_v45, 0 }
 0x2c4   : > { %6196 = vmatpush3.bf16.xpose.msra.mxu1 %v1644_v46 }
 0x2c6   : > { %v1630_v47 = vpop.permute.xlu1 %1629 }
 0x2c7   : > { %6376 = vmatprep.subr.msk.bf16.mxu1 %vm1633_vm5, %v1630_v47  ;;  %v1641_v48 = vsel %vm1633_vm5, %v1630_v47, 0 }
 0x2cc   : > { %6198 = vmatpush3.bf16.xpose.msra.mxu1 %v1641_v48  ;;  %v1699_v49 = vpop.permute.xlu1 %1698 }
 0x2cd   : > { %6377 = vmatprep.subr.msk.bf16.mxu0 %vm1633_vm5, %v1699_v49  ;;  %v1710_v50 = vsel %vm1633_vm5, %v1699_v49, 0 }
 0x2ce   : > { %6204 = vmatpush3.bf16.xpose.msra.mxu0 %v1710_v50 }
 0x2d3   : > { %6200 = vmatmul.mubr.msk.bf16.vlgmr.msra.gmra.mxu1 %vm1633_vm5, %v6908_v60 }
 0x2d5   : > { %v1697_v51 = vpop.permute.xlu1 %1696 }
 0x2d6   : > { %6378 = vmatprep.subr.msk.bf16.mxu0 %vm1633_vm5, %v1697_v51  ;;  %v1707_v52 = vsel %vm1633_vm5, %v1697_v51, 0 }
 0x2d7   : > { %6206 = vmatpush3.bf16.xpose.msra.mxu0 %v1707_v52 }
 0x2de   : > { %6208 = vmatmul.mubr.msk.bf16.vlgmr.msra.gmra.mxu0 %vm1633_vm5, %v6934_v17 }
 0x393   : > { %v6201_v53 = vpop.f32.mrf.mxu1 }
 0x394   : > { %v1768_v59 = vsel %vm1767_vm7, %v6201_v53, -inf }
 0x395   : > { %v1680_v54 = vpop.f32.mrf.mxu1 }
 0x396   : > { %v1761_v55 = vsel %vm1760_vm6, %v1680_v54, -inf }
 0x397   : > { %1762 = vmax.xlane.f32.xlu0 %v1761_v55  ;;  %v6202_v56 = vpop.f32.mrf.mxu1 }
 0x399   : > { %v1683_v57 = vpop.f32.mrf.mxu1 }
 0x39a   : > { %v1764_v61 = vsel %vm1760_vm6, %v1683_v57, -inf }
 0x39b   : > { %1769 = vmax.xlane.f32.xlu0 %v1768_v59  ;;  %1765 = vmax.xlane.f32.xlu1 %v1764_v61 }
 0x39e   : > { %v6209_v62 = vpop.f32.mrf.mxu0 }
 0x39f   : > { %v1777_v63 = vsel %vm1767_vm7, %v6209_v62, -inf }
 0x3a0   : > { %v1746_v0 = vpop.f32.mrf.mxu0  ;;  %1778 = vmax.xlane.f32.xlu1 %v1777_v63 }
 0x3a1   : > { %v1771_v1 = vsel %vm1760_vm6, %v1746_v0, -inf }
 0x3a2   : > { %v6210_v2 = vpop.f32.mrf.mxu0  ;;  %1772 = vmax.xlane.f32.xlu0 %v1771_v1 }
 0x3a4   : > { %v6967_v41 = vpop.f32.mrf.mxu0 }
 0x3a5   : > { %v1774_v4 = vsel %vm1760_vm6, %v6967_v41, -inf }
 0x3a6   : > { %1775 = vmax.xlane.f32.xlu0 %v1774_v4 }
 0x3b1   : > { %1832 = vrot.lane.b32.xlu1 %v6913_v3, %s6609_s17 }
 0x3b5   : > { %1899 = vrot.lane.b32.xlu1 %v6934_v17, %s6609_s17 }
 0x3b9   : > { %2417 = vrot.lane.b32.xlu1 %v6908_v60, %s6610_s21 }
 0x3bc   : > { %1834 = vrot.lane.b32.xlu0 %v6908_v60, %s6609_s17 }
 0x3bd   : > { %2415 = vrot.lane.b32.xlu1 %v6913_v3, %s6610_s21 }
 0x420   : > { %v1763_v5 = vpop.xlane.xlu0 %1762 }
 0x421   : > { %v1780_v6 = vsub.f32 %v1680_v54, %v1763_v5 }
 0x423   : > { %v1786_v11 = vmul.f32 1.442695, %v1780_v6 }
 0x424   : > { %v1770_v7 = vpop.xlane.xlu0 %1769  ;;  %v1766_v8 = vpop.xlane.xlu1 %1765 }
 0x425   : > { %v1782_v9 = vsub.f32 %v6201_v53, %v1770_v7  ;;  %v1781_v10 = vsub.f32 %v1683_v57, %v1766_v8 }
 0x427   : > { %v1790_v12 = vmul.f32 1.442695, %v1782_v9  ;;  %v1788_v13 = vmul.f32 1.442695, %v1781_v10 }
 0x429   : > { %6456 = vpow2.f32 %v1790_v12  ;;  %v1779_v15 = vpop.xlane.xlu1 %1778 }
 0x42a   : > { %6458 = vpow2.f32 %v1788_v13  ;;  %v1785_v14 = vsub.f32 %v6209_v62, %v1779_v15 }
 0x42b   : > { %6460 = vpow2.f32 %v1786_v11  ;;  %v1773_v16 = vpop.xlane.xlu0 %1772 }
 0x42c   : > { %v1796_v18 = vmul.f32 1.442695, %v1785_v14  ;;  %v1783_v19 = vsub.f32 %v1746_v0, %v1773_v16 }
 0x42d   : > { %v1833_v20 = vpop.permute.xlu1 %1832 }
 0x42e   : > { %6462 = vpow2.f32 %v1796_v18  ;;  %v1792_v21 = vmul.f32 1.442695, %v1783_v19 }
 0x42f   : > { %v1776_v22 = vpop.xlane.xlu0 %1775 }
 0x430   : > { %6464 = vpow2.f32 %v1792_v21  ;;  %v1784_v46 = vsub.f32 %v6967_v41, %v1776_v22 }
 0x431   : > { %v1900_v23 = vpop.permute.xlu1 %1899 }
 0x432   : > { %v1909_v36 = vand.u32 %v1900_v23, %v6981_v25  ;;  %v1794_v47 = vmul.f32 1.442695, %v1784_v46 }
 0x433   : > { %v1835_v26 = vpop.permute.xlu0 %1834 }
 0x434   : > { %v1847_v27 = vand.u32 %v6981_v25, %v1835_v26  ;;  %6466 = vpow2.f32 %v1794_v47 }
 0x435   : > { %v2418_v28 = vpop.permute.xlu1 %2417 }
 0x436   : > { %v6457_v29 = vpop.eup %6456  ;;  %6211 = vmatprep.subr.bf16.mxu1 %v1847_v27  ;;  %6379 = vmatprep.subr.msk.bf16.mxu0 %vm1633_vm5, %v2418_v28  ;;  %v2429_v30 = vsel %vm1633_vm5, %v2418_v28, 0 }
 0x437   : > { %v6459_v31 = vpop.eup %6458  ;;  %6212 = vmatpush3.bf16.msra.mxu1 %v1847_v27  ;;  %6228 = vmatpush3.bf16.xpose.msra.mxu0 %v2429_v30  ;;  %v1804_v32 = vsel %vm1767_vm7, %v6457_v29, 0.0 }
 0x438   : > { %v6461_v33 = vpop.eup %6460  ;;  %6213 = vmatprep.subr.bf16.mxu1 %v1833_v20  ;;  %1805 = vadd.xlane.f32.xlu0 %v1804_v32  ;;  %v1801_v34 = vsel %vm1760_vm6, %v6459_v31, 0.0 }
 0x439   : > { %1802 = vadd.xlane.f32.xlu1 %v1801_v34  ;;  %v2416_v35 = vpop.permute.xlu1 %2415  ;;  %v1798_v38 = vsel %vm1760_vm6, %v6461_v33, 0.0 }
 0x43a   : > { %6380 = vmatprep.subr.msk.bf16.mxu0 %vm1633_vm5, %v2416_v35  ;;  %v2426_v43 = vsel %vm1633_vm5, %v2416_v35, 0 }
 0x43b   : > { %v6463_v37 = vpop.eup %6462  ;;  %6214 = vmatpush3.bf16.msra.mxu1 %v1833_v20 }
 0x43c   : > { %6219 = vmatprep.subr.bf16.mxu1 %v1909_v36  ;;  %1799 = vadd.xlane.f32.xlu0 %v1798_v38  ;;  %v1813_v39 = vsel %vm1767_vm7, %v6463_v37, 0.0 }
 0x43d   : > { %v6465_v40 = vpop.eup %6464  ;;  %1814 = vadd.xlane.f32.xlu1 %v1813_v39 }
 0x43e   : > { %v1807_v45 = vsel %vm1760_vm6, %v6465_v40, 0.0 }
 0x43f   : > { %6230 = vmatpush3.bf16.xpose.msra.mxu0 %v2426_v43 }
 0x441   : > { %1808 = vadd.xlane.f32.xlu1 %v1807_v45  ;;  %v6467_v48 = vpop.eup %6466 }
 0x442   : > { %v1810_v49 = vsel %vm1760_vm6, %v6467_v48, 0.0 }
 0x452   : > { %2411 = vrot.lane.b32.xlu1 %v6913_v3, %s6612_s30  ;;  %1897 = vrot.lane.b32.xlu0 %v6944_v44, %s6609_s17  ;;  %s7806_s17 = sld [smem:[#allocation7_spill]] }
 0x456   : > { %2483 = vrot.lane.b32.xlu1 %v6944_v44, %s6610_s21 }
 0x45a   : > { %2481 = vrot.lane.b32.xlu1 %v6934_v17, %s6612_s30 }
 0x471   : > { %1811 = vadd.xlane.f32.xlu0 %v1810_v49 }
 0x487   : > { %2485 = vrot.lane.b32.xlu0 %v6934_v17, %s6610_s21  ;;  %s6622_s21 = smov 24  }
 0x48b   : > { %2413 = vrot.lane.b32.xlu0 %v6908_v60, %s6612_s30 }
 0x48f   : > { %2479 = vrot.lane.b32.xlu0 %v6944_v44, %s6612_s30 }
 0x4c1   : > { %v1806_v50 = vpop.xlane.xlu0 %1805 }
 0x4c2   : > { %v1803_v51 = vpop.xlane.xlu1 %1802  ;;  %6468 = vrcp.f32 %v1806_v50 }
 0x4c3   : > { %6470 = vrcp.f32 %v1803_v51 }
 0x4c5   : > { %v1800_v52 = vpop.xlane.xlu0 %1799 }
 0x4c6   : > { %6472 = vrcp.f32 %v1800_v52  ;;  %v1815_v53 = vpop.xlane.xlu1 %1814 }
 0x4c7   : > { %6474 = vrcp.f32 %v1815_v53 }
 0x4c9   : > { %v1898_v2 = vpop.permute.xlu0 %1897 }
 0x4ca   : > { %v1809_v54 = vpop.xlane.xlu1 %1808 }
 0x4cb   : > { %6476 = vrcp.f32 %v1809_v54 }
 0x4ce   : > { %v2412_v55 = vpop.permute.xlu1 %2411 }
 0x4cf   : > { %6231 = vmatprep.mubr.msk.bf16.mxu0 %vm1633_vm5, %v2412_v55  ;;  %v6469_v56 = vpop.eup %6468 }
 0x4d0   : > { %v6471_v57 = vpop.eup %6470  ;;  %v1824_v61 = vmul.f32 %v6469_v56, %v6457_v29 }
 0x4d1   : > { %v1823_v63 = vmul.f32 %v6471_v57, %v6459_v31 }
 0x4d2   : > { %v1829_v1 = vpack.c.bf16 %v1824_v61, %v1824_v61  ;;  %v2484_v16 = vpop.permute.xlu1 %2483 }
 0x4d3   : > { %v6473_v59 = vpop.eup %6472  ;;  %v2494_v18 = vsel %vm1633_vm5, %v2484_v16, 0 }
 0x4d4   : > { %v1822_v62 = vmul.f32 %v6473_v59, %v6461_v33  ;;  %v6475_v6 = vpop.eup %6474 }
 0x4d5   : > { %v1827_v9 = vmul.f32 %v6475_v6, %v6463_v37 }
 0x4d6   : > { %v1828_v0 = vpack.c.bf16 %v1823_v63, %v1822_v62  ;;  %v2482_v19 = vpop.permute.xlu1 %2481 }
 0x4d7   : > { %v1831_v13 = vpack.c.bf16 %v1827_v9, %v1827_v9 }
 0x4d8   : > { %6215 = vmatprep.mubr.msk.bf16.mxu1 %vm1760_vm6, %v1828_v0  ;;  %v6477_v7 = vpop.eup %6476 }
 0x4d9   : > { %6216 = vmatmul.mubr.msk.bf16.vlgmr.msra.gmra.mxu1 %vm1760_vm6, %v1829_v1  ;;  %v1825_v10 = vmul.f32 %v6477_v7, %v6465_v40 }
 0x4da   : > { %6220 = vmatpush3.bf16.msra.mxu1 %v1909_v36 }
 0x4db   : > { %6221 = vmatprep.subr.bf16.mxu1 %v1898_v2 }
 0x4de   : > { %6222 = vmatpush3.bf16.msra.mxu1 %v1898_v2 }
 0x4fa   : > { %v1812_v41 = vpop.xlane.xlu0 %1811 }
 0x4fb   : > { %6478 = vrcp.f32 %v1812_v41 }
 0x4fe   : > { %v2486_v4 = vpop.permute.xlu0 %2485 }
 0x4ff   : > { %6381 = vmatprep.subr.msk.bf16.mxu1 %vm1633_vm5, %v2486_v4  ;;  %v2497_v15 = vsel %vm1633_vm5, %v2486_v4, 0 }
 0x502   : > { %v2414_v5 = vpop.permute.xlu0 %2413 }
 0x503   : > { %6232 = vmatmul.mubr.msk.bf16.vlgmr.msra.gmra.mxu0 %vm1633_vm5, %v2414_v5 }
 0x506   : > { %v2480_v14 = vpop.permute.xlu0 %2479 }
 0x508   : > { %v6479_v8 = vpop.eup %6478 }
 0x509   : > { %v1826_v11 = vmul.f32 %v6479_v8, %v6467_v48 }
 0x50b   : > { %v1830_v12 = vpack.c.bf16 %v1826_v11, %v1825_v10 }
 0x50d   : > { %6223 = vmatprep.mubr.msk.bf16.mxu1 %vm1760_vm6, %v1830_v12 }
 0x50e   : > { %6224 = vmatmul.mubr.msk.bf16.vlgmr.msra.gmra.mxu1 %vm1760_vm6, %v1831_v13 }
 0x50f   : > { %6236 = vmatpush3.bf16.xpose.msra.mxu1 %v2497_v15  ;;  %6239 = vmatprep.mubr.msk.bf16.mxu1 %vm1633_vm5, %v2480_v14 }
 0x510   : > { %6382 = vmatprep.subr.msk.bf16.mxu1 %vm1633_vm5, %v2484_v16 }
 0x517   : > { %6238 = vmatpush3.bf16.xpose.msra.mxu1 %v2494_v18 }
 0x51e   : > { %6240 = vmatmul.mubr.msk.bf16.vlgmr.msra.gmra.mxu1 %vm1633_vm5, %v2482_v19 }
 0x599   : > { %v7018_v20 = vpop.f32.mrf.mxu1 }
 0x59a   : > { %v2069_v19 = vrot.slane %v7018_v20, %v6868_v42 }
 0x59b   : > { %v1883_v21 = vpop.f32.mrf.mxu1 }
 0x59c   : > { %v1965_v22 = vcombine.high %v1883_v21, %v1883_v21  ;;  %v1972_v23 = vrot.slane %v1883_v21, %v6868_v42 }
 0x59d   : > { %v6218_v24 = vpop.f32.mrf.mxu1 }
 0x59e   : > { %v1979_v26 = vrot.slane %v1965_v22, %v6868_v42  ;;  %v1980_v27 = vcombine.high %v1972_v23, %v1972_v23  ;;  %v1988_v30 = vrot.slane %v1972_v23, %v6868_v42 }
 0x59f   : > { %v1886_v28 = vpop.f32.mrf.mxu1 }
 0x5a0   : > { %v1981_v29 = vcombine.high %v1979_v26, %v1979_v26  ;;  %v2002_v31 = vrot.slane %v1980_v27, %v6868_v42  ;;  %v2014_v32 = vcombine.high %v1886_v28, %v1886_v28  ;;  %v1995_v33 = vrot.slane %v1979_v26, %v6868_v42 }
 0x5a1   : > { %v2021_v34 = vrot.slane %v1886_v28, %v6868_v42 }
 0x5a2   : > { %v2009_v35 = vrot.slane %v1981_v29, %v6868_v42  ;;  %v2189_v36 = vcombine.low %v1988_v30, %v2002_v31  ;;  %v6006_v37 = vcombine.high %v1988_v30, %v2002_v31  ;;  %v2028_v38 = vrot.slane %v2014_v32, %v6868_v42 }
 0x5a3   : > { %v2029_v39 = vcombine.high %v2021_v34, %v2021_v34  ;;  %v2037_v48 = vrot.slane %v2021_v34, %v6868_v42  ;;  %v2076_v29 = vrot.slane %v2069_v19, %v6868_v42 }
 0x5a4   : > { %v2191_v40 = vcombine.low %v1995_v33, %v2009_v35  ;;  %v6007_v43 = vcombine.high %v1995_v33, %v2009_v35  ;;  %v2199_v45 = vrot.slane %v2189_v36, %v6868_v42  ;;  %v2206_v46 = vrot.slane %v6006_v37, %v6868_v42 }
 0x5a5   : > { %v2030_v47 = vcombine.high %v2028_v38, %v2028_v38  ;;  %v2051_v49 = vrot.slane %v2029_v39, %v6868_v42  ;;  %v2044_v53 = vrot.slane %v2028_v38, %v6868_v42 }
 0x5a6   : > { %v2213_v50 = vrot.slane %v2191_v40, %v6868_v42  ;;  %v2220_v51 = vrot.slane %v6007_v43, %v6868_v42  ;;  %v2221_v52 = vcombine.low %v2199_v45, %v2206_v46 }
 0x5a7   : > { %v2058_v54 = vrot.slane %v2030_v47, %v6868_v42  ;;  %v2238_v55 = vcombine.low %v2037_v48, %v2051_v49  ;;  %v6008_v56 = vcombine.high %v2037_v48, %v2051_v49 }
 0x5a8   : > { %v2222_v57 = vcombine.low %v2213_v50, %v2220_v51  ;;  %v2229_v0 = vrot.slane %v2221_v52, %v6868_v42 }
 0x5a9   : > { %v2240_v59 = vcombine.low %v2044_v53, %v2058_v54  ;;  %v6009_v61 = vcombine.high %v2044_v53, %v2058_v54  ;;  %v2248_v62 = vrot.slane %v2238_v55, %v6868_v42  ;;  %v2255_v63 = vrot.slane %v6008_v56, %v6868_v42 }
 0x5aa   : > { %v2236_v1 = vrot.slane %v2222_v57, %v6868_v42 }
 0x5ab   : > { %v2262_v2 = vrot.slane %v2240_v59, %v6868_v42  ;;  %v2269_v41 = vrot.slane %v6009_v61, %v6868_v42  ;;  %v2270_v4 = vcombine.low %v2248_v62, %v2255_v63 }
 0x5ac   : > { %v2237_v5 = vcombine.low %v2229_v0, %v2236_v1 }
 0x5ad   : > { %v2271_v6 = vcombine.low %v2262_v2, %v2269_v41  ;;  %v2278_v7 = vrot.slane %v2270_v4, %v6868_v42 }
 0x5ae   : > { %2405 = vst.msk [vmem:[#allocation3] sm:$0xff] %vm1633_vm5, %v2237_v5 }
 0x5af   : > { %v2285_v8 = vrot.slane %v2271_v6, %v6868_v42 }
 0x5b1   : > { %v2286_v9 = vcombine.low %v2278_v7, %v2285_v8 }
 0x5b3   : > { %2406 = vst.msk [vmem:[#allocation3 + $0x8] sm:$0xff] %vm1633_vm5, %v2286_v9 }
 0x5c3   : > { %v7046_v10 = vpop.f32.mrf.mxu0 }
 0x5c4   : > { %v2553_v14 = vsel %vm1767_vm7, %v7046_v10, -inf }
 0x5c5   : > { %v7048_v11 = vpop.f32.mrf.mxu0 }
 0x5c6   : > { %v2547_v12 = vsel %vm1760_vm6, %v7048_v11, -inf }
 0x5c7   : > { %2548 = vmax.xlane.f32.xlu0 %v2547_v12  ;;  %v6234_v13 = vpop.f32.mrf.mxu0 }
 0x5c9   : > { %v7052_v15 = vpop.f32.mrf.mxu0 }
 0x5ca   : > { %v2550_v16 = vsel %vm1760_vm6, %v7052_v15, -inf }
 0x5cb   : > { %2554 = vmax.xlane.f32.xlu0 %v2553_v14  ;;  %2551 = vmax.xlane.f32.xlu1 %v2550_v16 }
 0x5ce   : > { %v6225_v18 = vpop.f32.mrf.mxu1 }
 0x5cf   : > { %v2181_v20 = vrot.slane %v6225_v18, %v6868_v42 }
 0x5d0   : > { %v1945_v21 = vpop.f32.mrf.mxu1 }
 0x5d1   : > { %v2077_v22 = vcombine.high %v1945_v21, %v1945_v21  ;;  %v2084_v23 = vrot.slane %v1945_v21, %v6868_v42  ;;  %v2188_v41 = vrot.slane %v2181_v20, %v6868_v42 }
 0x5d2   : > { %v6226_v24 = vpop.f32.mrf.mxu1 }
 0x5d3   : > { %v2091_v26 = vrot.slane %v2077_v22, %v6868_v42  ;;  %v2092_v27 = vcombine.high %v2084_v23, %v2084_v23  ;;  %v2100_v28 = vrot.slane %v2084_v23, %v6868_v42 }
 0x5d4   : > { %v1948_v30 = vpop.f32.mrf.mxu1 }
 0x5d5   : > { %v2093_v31 = vcombine.high %v2091_v26, %v2091_v26  ;;  %v2107_v32 = vrot.slane %v2091_v26, %v6868_v42  ;;  %v2114_v33 = vrot.slane %v2092_v27, %v6868_v42  ;;  %v2122_v34 = vcombine.high %v2100_v28, %v2100_v28 }
 0x5d6   : > { %v2287_v35 = vcombine.low %v2076_v29, %v2100_v28  ;;  %v2126_v36 = vcombine.high %v1948_v30, %v1948_v30  ;;  %v2133_v37 = vrot.slane %v1948_v30, %v6868_v42 }
 0x5d7   : > { %v2121_v38 = vrot.slane %v2093_v31, %v6868_v42  ;;  %v2123_v39 = vcombine.high %v2107_v32, %v2107_v32  ;;  %v2124_v40 = vcombine.high %v2114_v33, %v2114_v33  ;;  %v2288_v43 = vcombine.low %v2114_v33, %v2122_v34 }
 0x5d8   : > { %v2297_v45 = vrot.slane %v2287_v35, %v6868_v42  ;;  %v2140_v46 = vrot.slane %v2126_v36, %v6868_v42  ;;  %v2141_v47 = vcombine.high %v2133_v37, %v2133_v37  ;;  %v2149_v48 = vrot.slane %v2133_v37, %v6868_v42 }
 0x5d9   : > { %v2289_v49 = vcombine.low %v2124_v40, %v2107_v32  ;;  %v2290_v50 = vcombine.low %v2121_v38, %v2123_v39  ;;  %v2304_v51 = vrot.slane %v2288_v43, %v6868_v42  ;;  %v2125_v52 = vcombine.high %v2121_v38, %v2121_v38 }
 0x5da   : > { %v2142_v53 = vcombine.high %v2140_v46, %v2140_v46  ;;  %v2156_v54 = vrot.slane %v2140_v46, %v6868_v42  ;;  %v2163_v55 = vrot.slane %v2141_v47, %v6868_v42  ;;  %v2171_v56 = vcombine.high %v2149_v48, %v2149_v48 }
 0x5db   : > { %v2311_v57 = vrot.slane %v2289_v49, %v6868_v42  ;;  %v2318_v59 = vrot.slane %v2290_v50, %v6868_v42  ;;  %v2319_v61 = vcombine.low %v2297_v45, %v2304_v51  ;;  %v2336_v62 = vcombine.low %v2125_v52, %v2149_v48 }
 0x5dc   : > { %v2170_v63 = vrot.slane %v2142_v53, %v6868_v42  ;;  %v2172_v0 = vcombine.high %v2156_v54, %v2156_v54  ;;  %v2173_v1 = vcombine.high %v2163_v55, %v2163_v55  ;;  %v2337_v2 = vcombine.low %v2163_v55, %v2171_v56 }
 0x5dd   : > { %v2346_v4 = vrot.slane %v2336_v62, %v6868_v42  ;;  %v2320_v5 = vcombine.low %v2311_v57, %v2318_v59  ;;  %v2327_v14 = vrot.slane %v2319_v61, %v6868_v42 }
 0x5de   : > { %v2174_v6 = vcombine.high %v2170_v63, %v2170_v63  ;;  %v2338_v7 = vcombine.low %v2173_v1, %v2156_v54  ;;  %v2339_v8 = vcombine.low %v2170_v63, %v2172_v0  ;;  %v2353_v9 = vrot.slane %v2337_v2, %v6868_v42  ;;  %v7081_v12 = vpop.f32.mrf.mxu1 }
 0x5df   : > { %v2562_v13 = vsel %vm1767_vm7, %v7081_v12, -inf  ;;  %v2334_v16 = vrot.slane %v2320_v5, %v6868_v42 }
 0x5e0   : > { %v2360_v18 = vrot.slane %v2338_v7, %v6868_v42  ;;  %v2367_v19 = vrot.slane %v2339_v8, %v6868_v42  ;;  %v2368_v21 = vcombine.low %v2346_v4, %v2353_v9  ;;  %2563 = vmax.xlane.f32.xlu1 %v2562_v13  ;;  %v2533_v22 = vpop.f32.mrf.mxu1  ;;  %v2385_v23 = vcombine.low %v2174_v6, %v2188_v41 }
 0x5e1   : > { %v2556_v24 = vsel %vm1760_vm6, %v2533_v22, -inf  ;;  %v2335_v26 = vcombine.low %v2327_v14, %v2334_v16 }
 0x5e2   : > { %2557 = vmax.xlane.f32.xlu0 %v2556_v24  ;;  %v6242_v27 = vpop.f32.mrf.mxu1  ;;  %v2369_v28 = vcombine.low %v2360_v18, %v2367_v19  ;;  %v2392_v29 = vrot.slane %v2385_v23, %v6868_v42  ;;  %v2376_v31 = vrot.slane %v2368_v21, %v6868_v42 }
 0x5e3   : > { %2407 = vst.msk [vmem:[#allocation3 + $0x10] sm:$0xff] %vm1633_vm5, %v2335_v26 }
 0x5e4   : > { %v2536_v30 = vpop.f32.mrf.mxu1  ;;  %v2383_v32 = vrot.slane %v2369_v28, %v6868_v42  ;;  %v2399_v33 = vrot.slane %v2392_v29, %v6868_v42 }
 0x5e5   : > { %v2559_v34 = vsel %vm1760_vm6, %v2536_v30, -inf }
 0x5e6   : > { %2560 = vmax.xlane.f32.xlu0 %v2559_v34  ;;  %v2384_v20 = vcombine.low %v2376_v31, %v2383_v32  ;;  %2410 = vst.msk [vmem:[#allocation3 + $0x20] sm:$0x3] %vm2409_vm9, %v2399_v33 }
 0x5e8   : > { %2408 = vst.msk [vmem:[#allocation3 + $0x18] sm:$0xff] %vm1633_vm5, %v2384_v20 }
 0x650   : > { %v2549_v35 = vpop.xlane.xlu0 %2548 }
 0x651   : > { %v2565_v36 = vsub.f32 %v7048_v11, %v2549_v35 }
 0x653   : > { %v2571_v37 = vmul.f32 1.442695, %v2565_v36 }
 0x654   : > { %v2555_v38 = vpop.xlane.xlu0 %2554  ;;  %v2552_v39 = vpop.xlane.xlu1 %2551 }
 0x655   : > { %6480 = vpow2.f32 %v2571_v37  ;;  %v2567_v40 = vsub.f32 %v7046_v10, %v2555_v38  ;;  %v2566_v43 = vsub.f32 %v7052_v15, %v2552_v39 }
 0x657   : > { %v2575_v45 = vmul.f32 1.442695, %v2567_v40  ;;  %v2573_v46 = vmul.f32 1.442695, %v2566_v43 }
 0x659   : > { %6482 = vpow2.f32 %v2575_v45 }
 0x65a   : > { %6484 = vpow2.f32 %v2573_v46 }
 0x662   : > { %v7100_v47 = vpop.eup %6480 }
 0x663   : > { %v2583_v48 = vsel %vm1760_vm6, %v7100_v47, 0.0 }
 0x664   : > { %2584 = vadd.xlane.f32.xlu0 %v2583_v48 }
 0x666   : > { %v7104_v49 = vpop.eup %6482 }
 0x667   : > { %v7106_v11 = vpop.eup %6484  ;;  %v2589_v50 = vsel %vm1767_vm7, %v7104_v49, 0.0 }
 0x668   : > { %2590 = vadd.xlane.f32.xlu0 %v2589_v50  ;;  %v2586_v10 = vsel %vm1760_vm6, %v7106_v11, 0.0 }
 0x669   : > { %2587 = vadd.xlane.f32.xlu1 %v2586_v10  ;;  %v2564_v54 = vpop.xlane.xlu1 %2563 }
 0x66a   : > { %v2570_v55 = vsub.f32 %v7081_v12, %v2564_v54 }
 0x66b   : > { %v2558_v15 = vpop.xlane.xlu0 %2557 }
 0x66c   : > { %v2581_v56 = vmul.f32 1.442695, %v2570_v55  ;;  %v2568_v57 = vsub.f32 %v2533_v22, %v2558_v15 }
 0x66e   : > { %v2577_v59 = vmul.f32 1.442695, %v2568_v57 }
 0x66f   : > { %v2561_v51 = vpop.xlane.xlu0 %2560 }
 0x670   : > { %v2569_v52 = vsub.f32 %v2536_v30, %v2561_v51 }
 0x672   : > { %v2579_v53 = vmul.f32 1.442695, %v2569_v52 }
 0x674   : > { %6486 = vpow2.f32 %v2579_v53 }
 0x675   : > { %6488 = vpow2.f32 %v2581_v56 }
 0x676   : > { %6490 = vpow2.f32 %v2577_v59 }
 0x67a   : > { %2617 = vrot.lane.b32.xlu1 %v6913_v3, %s6613_s19 }
 0x67e   : > { %2681 = vrot.lane.b32.xlu1 %v6934_v17, %s6613_s19  ;;  %2619 = vrot.lane.b32.xlu0 %v6908_v60, %s6613_s19 }
 0x681   : > { %v7119_v61 = vpop.eup %6486 }
 0x682   : > { %3210 = vrot.lane.b32.xlu1 %v6908_v60, %s6614_s23  ;;  %2679 = vrot.lane.b32.xlu0 %v6944_v44, %s6613_s19  ;;  %v2595_v62 = vsel %vm1760_vm6, %v7119_v61, 0.0  ;;  %v7123_v63 = vpop.eup %6488 }
 0x683   : > { %v2598_v0 = vsel %vm1767_vm7, %v7123_v63, 0.0  ;;  %v7127_v1 = vpop.eup %6490 }
 0x684   : > { %v2592_v2 = vsel %vm1760_vm6, %v7127_v1, 0.0 }
 0x686   : > { %3208 = vrot.lane.b32.xlu1 %v6913_v3, %s6614_s23 }
 0x6a1   : > { %2596 = vadd.xlane.f32.xlu0 %v2595_v62 }
 0x6aa   : > { %2599 = vadd.xlane.f32.xlu1 %v2598_v0 }
 0x6ae   : > { %2593 = vadd.xlane.f32.xlu1 %v2592_v2 }
 0x6b7   : > { %3278 = vrot.lane.b32.xlu0 %v6934_v17, %s6614_s23 }
 0x6bb   : > { %3206 = vrot.lane.b32.xlu0 %v6908_v60, %s6615_s26 }
 0x6bf   : > { %3204 = vrot.lane.b32.xlu1 %v6913_v3, %s6615_s26  ;;  %3272 = vrot.lane.b32.xlu0 %v6944_v44, %s6615_s26 }
 0x6c3   : > { %3276 = vrot.lane.b32.xlu1 %v6944_v44, %s6614_s23  ;;  %s7807_s23 = scalar_lea.vmem %s7782_s6, %s6716_s29 }
 0x6c7   : > { %3274 = vrot.lane.b32.xlu1 %v6934_v17, %s6615_s26 }
 0x6ed   : > { %v2585_v41 = vpop.xlane.xlu0 %2584 }
 0x6ee   : > { %6492 = vrcp.f32 %v2585_v41 }
 0x6f1   : > { %v2591_v4 = vpop.xlane.xlu0 %2590 }
 0x6f2   : > { %6494 = vrcp.f32 %v2591_v4  ;;  %v2588_v5 = vpop.xlane.xlu1 %2587 }
 0x6f3   : > { %6496 = vrcp.f32 %v2588_v5 }
 0x6f5   : > { %v2620_v6 = vpop.permute.xlu0 %2619 }
 0x6f6   : > { %v2629_v7 = vand.u32 %v2620_v6, %v6981_v25  ;;  %v2618_v8 = vpop.permute.xlu1 %2617 }
 0x6f8   : > { %6243 = vmatprep.subr.bf16.mxu0 %v2629_v7 }
 0x6f9   : > { %6244 = vmatpush3.bf16.msra.mxu0 %v2629_v7  ;;  %v2680_v14 = vpop.permute.xlu0 %2679 }
 0x6fa   : > { %v2682_v9 = vpop.permute.xlu1 %2681  ;;  %6245 = vmatprep.subr.bf16.mxu0 %v2618_v8 }
 0x6fb   : > { %v2691_v12 = vand.u32 %v2682_v9, %v6981_v25  ;;  %v6493_v13 = vpop.eup %6492 }
 0x6fc   : > { %v2607_v22 = vmul.f32 %v6493_v13, %v7100_v47 }
 0x6fd   : > { %6251 = vmatprep.subr.bf16.mxu1 %v2691_v12  ;;  %6246 = vmatpush3.bf16.msra.mxu0 %v2618_v8 }
 0x6fe   : > { %6252 = vmatpush3.bf16.msra.mxu1 %v2691_v12  ;;  %v3211_v16 = vpop.permute.xlu1 %3210 }
 0x6ff   : > { %v6495_v18 = vpop.eup %6494  ;;  %6253 = vmatprep.subr.bf16.mxu1 %v2680_v14  ;;  %6383 = vmatprep.subr.msk.bf16.mxu0 %vm1633_vm5, %v3211_v16  ;;  %v3222_v27 = vsel %vm1633_vm5, %v3211_v16, 0 }
 0x700   : > { %v6497_v19 = vpop.eup %6496  ;;  %v2609_v21 = vmul.f32 %v6495_v18, %v7104_v49 }
 0x701   : > { %v2608_v23 = vmul.f32 %v6497_v19, %v7106_v11 }
 0x702   : > { %6254 = vmatpush3.bf16.msra.mxu1 %v2680_v14  ;;  %v2614_v24 = vpack.c.bf16 %v2609_v21, %v2609_v21  ;;  %v3209_v28 = vpop.permute.xlu1 %3208 }
 0x703   : > { %v2613_v26 = vpack.c.bf16 %v2608_v23, %v2607_v22  ;;  %v3219_v29 = vsel %vm1633_vm5, %v3209_v28, 0 }
 0x705   : > { %6247 = vmatprep.mubr.msk.bf16.mxu0 %vm1760_vm6, %v2613_v26 }
 0x706   : > { %6248 = vmatmul.mubr.msk.bf16.vlgmr.msra.gmra.mxu0 %vm1760_vm6, %v2614_v24 }
 0x707   : > { %6260 = vmatpush3.bf16.xpose.msra.mxu0 %v3222_v27 }
 0x708   : > { %6384 = vmatprep.subr.msk.bf16.mxu0 %vm1633_vm5, %v3209_v28 }
 0x70f   : > { %6262 = vmatpush3.bf16.xpose.msra.mxu0 %v3219_v29 }
 0x72a   : > { %v2597_v30 = vpop.xlane.xlu0 %2596 }
 0x72e   : > { %v3279_v31 = vpop.permute.xlu0 %3278 }
 0x72f   : > { %6385 = vmatprep.subr.msk.bf16.mxu1 %vm1633_vm5, %v3279_v31  ;;  %v3290_v46 = vsel %vm1633_vm5, %v3279_v31, 0 }
 0x732   : > { %v3207_v20 = vpop.permute.xlu0 %3206 }
 0x733   : > { %v2600_v32 = vpop.xlane.xlu1 %2599 }
 0x734   : > { %6498 = vrcp.f32 %v2600_v32 }
 0x735   : > { %6500 = vrcp.f32 %v2597_v30 }
 0x736   : > { %v3273_v47 = vpop.permute.xlu0 %3272 }
 0x737   : > { %v2594_v33 = vpop.xlane.xlu1 %2593 }
 0x738   : > { %6502 = vrcp.f32 %v2594_v33 }
 0x73b   : > { %v3205_v34 = vpop.permute.xlu1 %3204 }
 0x73c   : > { %6263 = vmatprep.mubr.msk.bf16.mxu0 %vm1633_vm5, %v3205_v34 }
 0x73d   : > { %6264 = vmatmul.mubr.msk.bf16.vlgmr.msra.gmra.mxu0 %vm1633_vm5, %v3207_v20 }
 0x73f   : > { %v3277_v48 = vpop.permute.xlu1 %3276 }
 0x740   : > { %v3287_v49 = vsel %vm1633_vm5, %v3277_v48, 0 }
 0x741   : > { %v6499_v35 = vpop.eup %6498 }
 0x742   : > { %v6501_v36 = vpop.eup %6500  ;;  %v2612_v38 = vmul.f32 %v6499_v35, %v7123_v63 }
 0x743   : > { %v2611_v40 = vmul.f32 %v6501_v36, %v7119_v61  ;;  %v3275_v11 = vpop.permute.xlu1 %3274 }
 0x744   : > { %v2616_v45 = vpack.c.bf16 %v2612_v38, %v2612_v38 }
 0x745   : > { %v6503_v37 = vpop.eup %6502 }
 0x746   : > { %v2610_v39 = vmul.f32 %v6503_v37, %v7127_v1 }
 0x748   : > { %v2615_v43 = vpack.c.bf16 %v2611_v40, %v2610_v39 }
 0x74a   : > { %6255 = vmatprep.mubr.msk.bf16.mxu1 %vm1760_vm6, %v2615_v43 }
 0x74b   : > { %6256 = vmatmul.mubr.msk.bf16.vlgmr.msra.gmra.mxu1 %vm1760_vm6, %v2616_v45 }
 0x74c   : > { %6268 = vmatpush3.bf16.xpose.msra.mxu1 %v3290_v46  ;;  %6271 = vmatprep.mubr.msk.bf16.mxu1 %vm1633_vm5, %v3273_v47 }
 0x74d   : > { %6386 = vmatprep.subr.msk.bf16.mxu1 %vm1633_vm5, %v3277_v48 }
 0x754   : > { %6270 = vmatpush3.bf16.xpose.msra.mxu1 %v3287_v49 }
 0x75b   : > { %6272 = vmatmul.mubr.msk.bf16.vlgmr.msra.gmra.mxu1 %vm1633_vm5, %v3275_v11 }
 0x7c6   : > { %v6249_v50 = vpop.f32.mrf.mxu0 }
 0x7c7   : > { %v2851_v62 = vrot.slane %v6249_v50, %v6868_v42 }
 0x7c8   : > { %v7161_v10 = vpop.f32.mrf.mxu0 }
 0x7c9   : > { %v2858_v6 = vrot.slane %v2851_v62, %v6868_v42 }
 0x7ca   : > { %v6250_v15 = vpop.f32.mrf.mxu0 }
 0x7cc   : > { %v7163_v51 = vpop.f32.mrf.mxu0 }
 0x7fd   : > { %v7165_v52 = vpop.f32.mrf.mxu0 }
 0x7fe   : > { %v3346_v57 = vsel %vm1767_vm7, %v7165_v52, -inf }
 0x7ff   : > { %v7167_v53 = vpop.f32.mrf.mxu0 }
 0x800   : > { %v3340_v54 = vsel %vm1760_vm6, %v7167_v53, -inf }
 0x801   : > { %3341 = vmax.xlane.f32.xlu0 %v3340_v54  ;;  %v6266_v55 = vpop.f32.mrf.mxu0 }
 0x803   : > { %v7171_v56 = vpop.f32.mrf.mxu0 }
 0x804   : > { %v3343_v59 = vsel %vm1760_vm6, %v7171_v56, -inf }
 0x805   : > { %3347 = vmax.xlane.f32.xlu0 %v3346_v57  ;;  %3344 = vmax.xlane.f32.xlu1 %v3343_v59 }
 0x80b   : > { %v6257_v61 = vpop.f32.mrf.mxu1 }
 0x80c   : > { %v2963_v14 = vrot.slane %v6257_v61, %v6868_v42 }
 0x80d   : > { %v2727_v63 = vpop.f32.mrf.mxu1 }
 0x80e   : > { %v2859_v0 = vcombine.high %v2727_v63, %v2727_v63  ;;  %v2866_v1 = vrot.slane %v2727_v63, %v6868_v42  ;;  %v2970_v48 = vrot.slane %v2963_v14, %v6868_v42 }
 0x80f   : > { %v6258_v2 = vpop.f32.mrf.mxu1 }
 0x810   : > { %v2873_v41 = vrot.slane %v2859_v0, %v6868_v42  ;;  %v2874_v4 = vcombine.high %v2866_v1, %v2866_v1  ;;  %v2882_v5 = vrot.slane %v2866_v1, %v6868_v42 }
 0x811   : > { %v2730_v7 = vpop.f32.mrf.mxu1 }
 0x812   : > { %v2875_v8 = vcombine.high %v2873_v41, %v2873_v41  ;;  %v2889_v9 = vrot.slane %v2873_v41, %v6868_v42  ;;  %v2896_v12 = vrot.slane %v2874_v4, %v6868_v42  ;;  %v2904_v13 = vcombine.high %v2882_v5, %v2882_v5 }
 0x813   : > { %v3069_v16 = vcombine.low %v2858_v6, %v2882_v5  ;;  %v2908_v18 = vcombine.high %v2730_v7, %v2730_v7  ;;  %v2915_v19 = vrot.slane %v2730_v7, %v6868_v42 }
 0x814   : > { %v2903_v21 = vrot.slane %v2875_v8, %v6868_v42  ;;  %v2905_v22 = vcombine.high %v2889_v9, %v2889_v9  ;;  %v2906_v23 = vcombine.high %v2896_v12, %v2896_v12  ;;  %v3070_v24 = vcombine.low %v2896_v12, %v2904_v13 }
 0x815   : > { %v3079_v26 = vrot.slane %v3069_v16, %v6868_v42  ;;  %v2922_v27 = vrot.slane %v2908_v18, %v6868_v42  ;;  %v2923_v28 = vcombine.high %v2915_v19, %v2915_v19  ;;  %v2931_v29 = vrot.slane %v2915_v19, %v6868_v42 }
 0x816   : > { %v3071_v30 = vcombine.low %v2906_v23, %v2889_v9  ;;  %v3072_v31 = vcombine.low %v2903_v21, %v2905_v22  ;;  %v3086_v32 = vrot.slane %v3070_v24, %v6868_v42  ;;  %v2907_v33 = vcombine.high %v2903_v21, %v2903_v21 }
 0x817   : > { %v2924_v34 = vcombine.high %v2922_v27, %v2922_v27  ;;  %v2938_v20 = vrot.slane %v2922_v27, %v6868_v42  ;;  %v2945_v35 = vrot.slane %v2923_v28, %v6868_v42  ;;  %v2953_v36 = vcombine.high %v2931_v29, %v2931_v29 }
 0x818   : > { %v3093_v37 = vrot.slane %v3071_v30, %v6868_v42  ;;  %v3100_v38 = vrot.slane %v3072_v31, %v6868_v42  ;;  %v3101_v39 = vcombine.low %v3079_v26, %v3086_v32  ;;  %v3118_v40 = vcombine.low %v2907_v33, %v2931_v29 }
 0x819   : > { %v2952_v43 = vrot.slane %v2924_v34, %v6868_v42  ;;  %v2954_v45 = vcombine.high %v2938_v20, %v2938_v20  ;;  %v2955_v46 = vcombine.high %v2945_v35, %v2945_v35  ;;  %v3119_v47 = vcombine.low %v2945_v35, %v2953_v36 }
 0x81a   : > { %v3128_v49 = vrot.slane %v3118_v40, %v6868_v42  ;;  %v3102_v11 = vcombine.low %v3093_v37, %v3100_v38  ;;  %v3109_v61 = vrot.slane %v3101_v39, %v6868_v42 }
 0x81b   : > { %v2956_v50 = vcombine.high %v2952_v43, %v2952_v43  ;;  %v3120_v15 = vcombine.low %v2955_v46, %v2938_v20  ;;  %v3121_v54 = vcombine.low %v2952_v43, %v2954_v45  ;;  %v3135_v55 = vrot.slane %v3119_v47, %v6868_v42  ;;  %v6273_v57 = vpop.f32.mrf.mxu1 }
 0x81c   : > { %v3355_v59 = vsel %vm1767_vm7, %v6273_v57, -inf  ;;  %v3116_v62 = vrot.slane %v3102_v11, %v6868_v42 }
 0x81d   : > { %v3142_v63 = vrot.slane %v3120_v15, %v6868_v42  ;;  %v3149_v0 = vrot.slane %v3121_v54, %v6868_v42  ;;  %v3150_v1 = vcombine.low %v3128_v49, %v3135_v55  ;;  %3356 = vmax.xlane.f32.xlu1 %v3355_v59  ;;  %v3326_v2 = vpop.f32.mrf.mxu1  ;;  %v7204_v41 = vcombine.low %v2956_v50, %v2970_v48 }
 0x81e   : > { %v3349_v4 = vsel %vm1760_vm6, %v3326_v2, -inf  ;;  %v7207_v5 = vcombine.low %v3109_v61, %v3116_v62 }
 0x81f   : > { %3350 = vmax.xlane.f32.xlu0 %v3349_v4  ;;  %v6274_v6 = vpop.f32.mrf.mxu1  ;;  %v3151_v7 = vcombine.low %v3142_v63, %v3149_v0  ;;  %v3158_v9 = vrot.slane %v3150_v1, %v6868_v42 }
 0x821   : > { %v3329_v8 = vpop.f32.mrf.mxu1  ;;  %v3165_v12 = vrot.slane %v3151_v7, %v6868_v42 }
 0x822   : > { %v3352_v13 = vsel %vm1760_vm6, %v3329_v8, -inf }
 0x823   : > { %3353 = vmax.xlane.f32.xlu0 %v3352_v13  ;;  %v7212_v14 = vcombine.low %v3158_v9, %v3165_v12 }
 0x88a   : > { %v3342_v16 = vpop.xlane.xlu0 %3341 }
 0x88b   : > { %v3358_v18 = vsub.f32 %v7167_v53, %v3342_v16 }
 0x88d   : > { %v3364_v19 = vmul.f32 1.442695, %v3358_v18 }
 0x88e   : > { %v3348_v21 = vpop.xlane.xlu0 %3347  ;;  %v3345_v22 = vpop.xlane.xlu1 %3344 }
 0x88f   : > { %6504 = vpow2.f32 %v3364_v19  ;;  %v3360_v23 = vsub.f32 %v7165_v52, %v3348_v21  ;;  %v3359_v24 = vsub.f32 %v7171_v56, %v3345_v22 }
 0x891   : > { %v3368_v26 = vmul.f32 1.442695, %v3360_v23  ;;  %v3366_v27 = vmul.f32 1.442695, %v3359_v24 }
 0x893   : > { %6506 = vpow2.f32 %v3368_v26 }
 0x894   : > { %6508 = vpow2.f32 %v3366_v27 }
 0x89c   : > { %v7217_v28 = vpop.eup %6504 }
 0x89d   : > { %v3376_v29 = vsel %vm1760_vm6, %v7217_v28, 0.0 }
 0x89e   : > { %3377 = vadd.xlane.f32.xlu0 %v3376_v29 }
 0x8a0   : > { %v7221_v30 = vpop.eup %6506 }
 0x8a1   : > { %v7223_v53 = vpop.eup %6508  ;;  %v3382_v31 = vsel %vm1767_vm7, %v7221_v30, 0.0 }
 0x8a2   : > { %3383 = vadd.xlane.f32.xlu0 %v3382_v31  ;;  %v3379_v52 = vsel %vm1760_vm6, %v7223_v53, 0.0 }
 0x8a3   : > { %3380 = vadd.xlane.f32.xlu1 %v3379_v52 }
 0x8a6   : > { %v3357_v20 = vpop.xlane.xlu1 %3356 }
 0x8a7   : > { %v3363_v35 = vsub.f32 %v6273_v57, %v3357_v20 }
 0x8a8   : > { %v3351_v56 = vpop.xlane.xlu0 %3350 }
 0x8a9   : > { %v3374_v36 = vmul.f32 1.442695, %v3363_v35  ;;  %v3361_v37 = vsub.f32 %v3326_v2, %v3351_v56 }
 0x8ab   : > { %v3370_v38 = vmul.f32 1.442695, %v3361_v37 }
 0x8ac   : > { %v3354_v32 = vpop.xlane.xlu0 %3353 }
 0x8ad   : > { %v3362_v33 = vsub.f32 %v3329_v8, %v3354_v32 }
 0x8af   : > { %v3372_v34 = vmul.f32 1.442695, %v3362_v33 }
 0x8b1   : > { %6510 = vpow2.f32 %v3372_v34 }
 0x8b2   : > { %6512 = vpow2.f32 %v3374_v36 }
 0x8b3   : > { %6514 = vpow2.f32 %v3370_v38 }
 0x8b4   : > { %3410 = vrot.lane.b32.xlu1 %v6913_v3, %s6616_s24 }
 0x8b8   : > { %3474 = vrot.lane.b32.xlu1 %v6934_v17, %s6616_s24  ;;  %3412 = vrot.lane.b32.xlu0 %v6908_v60, %s6616_s24 }
 0x8bc   : > { %4003 = vrot.lane.b32.xlu1 %v6908_v60, %s6617_s28  ;;  %3472 = vrot.lane.b32.xlu0 %v6944_v44, %s6616_s24 }
 0x8be   : > { %v7235_v39 = vpop.eup %6510 }
 0x8bf   : > { %v3388_v40 = vsel %vm1760_vm6, %v7235_v39, 0.0  ;;  %v7239_v43 = vpop.eup %6512 }
 0x8c0   : > { %4001 = vrot.lane.b32.xlu1 %v6913_v3, %s6617_s28  ;;  %v3391_v45 = vsel %vm1767_vm7, %v7239_v43, 0.0  ;;  %v7243_v46 = vpop.eup %6514 }
 0x8c1   : > { %v3385_v47 = vsel %vm1760_vm6, %v7243_v46, 0.0 }
 0x8db   : > { %3389 = vadd.xlane.f32.xlu0 %v3388_v40 }
 0x8e4   : > { %3392 = vadd.xlane.f32.xlu1 %v3391_v45 }
 0x8e8   : > { %3386 = vadd.xlane.f32.xlu1 %v3385_v47 }
 0x8f1   : > { %4071 = vrot.lane.b32.xlu0 %v6934_v17, %s6617_s28 }
 0x8f5   : > { %3999 = vrot.lane.b32.xlu0 %v6908_v60, %s6618_s14 }
 0x8f9   : > { %3997 = vrot.lane.b32.xlu1 %v6913_v3, %s6618_s14  ;;  %4065 = vrot.lane.b32.xlu0 %v6944_v44, %s6618_s14 }
 0x8fd   : > { %4069 = vrot.lane.b32.xlu1 %v6944_v44, %s6617_s28 }
 0x901   : > { %4067 = vrot.lane.b32.xlu1 %v6934_v17, %s6618_s14 }
 0x927   : > { %v3378_v48 = vpop.xlane.xlu0 %3377 }
 0x928   : > { %6516 = vrcp.f32 %v3378_v48 }
 0x92b   : > { %v3384_v49 = vpop.xlane.xlu0 %3383 }
 0x92c   : > { %6518 = vrcp.f32 %v3384_v49  ;;  %v3381_v11 = vpop.xlane.xlu1 %3380 }
 0x92d   : > { %6520 = vrcp.f32 %v3381_v11 }
 0x92f   : > { %v3413_v50 = vpop.permute.xlu0 %3412 }
 0x930   : > { %v3422_v15 = vand.u32 %v3413_v50, %v6981_v25  ;;  %v3411_v54 = vpop.permute.xlu1 %3410 }
 0x932   : > { %6275 = vmatprep.subr.bf16.mxu0 %v3422_v15 }
 0x933   : > { %6276 = vmatpush3.bf16.msra.mxu0 %v3422_v15  ;;  %v3473_v61 = vpop.permute.xlu0 %3472 }
 0x934   : > { %v3475_v55 = vpop.permute.xlu1 %3474  ;;  %6277 = vmatprep.subr.bf16.mxu0 %v3411_v54 }
 0x935   : > { %v3484_v57 = vand.u32 %v3475_v55, %v6981_v25  ;;  %v6517_v59 = vpop.eup %6516 }
 0x936   : > { %v3400_v2 = vmul.f32 %v6517_v59, %v7217_v28 }
 0x937   : > { %6283 = vmatprep.subr.bf16.mxu1 %v3484_v57  ;;  %6278 = vmatpush3.bf16.msra.mxu0 %v3411_v54 }
 0x938   : > { %6284 = vmatpush3.bf16.msra.mxu1 %v3484_v57  ;;  %v4004_v62 = vpop.permute.xlu1 %4003 }
 0x939   : > { %v6519_v63 = vpop.eup %6518  ;;  %6285 = vmatprep.subr.bf16.mxu1 %v3473_v61  ;;  %6387 = vmatprep.subr.msk.bf16.mxu0 %vm1633_vm5, %v4004_v62  ;;  %v4015_v8 = vsel %vm1633_vm5, %v4004_v62, 0 }
 0x93a   : > { %v6521_v0 = vpop.eup %6520  ;;  %v3402_v1 = vmul.f32 %v6519_v63, %v7221_v30 }
 0x93b   : > { %v3401_v4 = vmul.f32 %v6521_v0, %v7223_v53 }
 0x93c   : > { %6286 = vmatpush3.bf16.msra.mxu1 %v3473_v61  ;;  %v3407_v6 = vpack.c.bf16 %v3402_v1, %v3402_v1  ;;  %v4002_v9 = vpop.permute.xlu1 %4001 }
 0x93d   : > { %v3406_v7 = vpack.c.bf16 %v3401_v4, %v3400_v2  ;;  %v4012_v12 = vsel %vm1633_vm5, %v4002_v9, 0 }
 0x93f   : > { %6279 = vmatprep.mubr.msk.bf16.mxu0 %vm1760_vm6, %v3406_v7 }
 0x940   : > { %6280 = vmatmul.mubr.msk.bf16.vlgmr.msra.gmra.mxu0 %vm1760_vm6, %v3407_v6 }
 0x941   : > { %6292 = vmatpush3.bf16.xpose.msra.mxu0 %v4015_v8 }
 0x942   : > { %6388 = vmatprep.subr.msk.bf16.mxu0 %vm1633_vm5, %v4002_v9 }
 0x949   : > { %6294 = vmatpush3.bf16.xpose.msra.mxu0 %v4012_v12 }
 0x964   : > { %v3390_v13 = vpop.xlane.xlu0 %3389 }
 0x968   : > { %v4072_v16 = vpop.permute.xlu0 %4071 }
 0x969   : > { %6389 = vmatprep.subr.msk.bf16.mxu1 %vm1633_vm5, %v4072_v16  ;;  %v4083_v31 = vsel %vm1633_vm5, %v4072_v16, 0 }
 0x96c   : > { %v4000_v22 = vpop.permute.xlu0 %3999 }
 0x96d   : > { %v3393_v18 = vpop.xlane.xlu1 %3392 }
 0x96e   : > { %6522 = vrcp.f32 %v3393_v18 }
 0x96f   : > { %6524 = vrcp.f32 %v3390_v13 }
 0x970   : > { %v4066_v52 = vpop.permute.xlu0 %4065 }
 0x971   : > { %v3387_v19 = vpop.xlane.xlu1 %3386 }
 0x972   : > { %6526 = vrcp.f32 %v3387_v19 }
 0x975   : > { %v3998_v21 = vpop.permute.xlu1 %3997 }
 0x976   : > { %6295 = vmatprep.mubr.msk.bf16.mxu0 %vm1633_vm5, %v3998_v21 }
 0x977   : > { %6296 = vmatmul.mubr.msk.bf16.vlgmr.msra.gmra.mxu0 %vm1633_vm5, %v4000_v22 }
 0x979   : > { %v4070_v56 = vpop.permute.xlu1 %4069 }
 0x97a   : > { %v4080_v32 = vsel %vm1633_vm5, %v4070_v56, 0 }
 0x97b   : > { %v6523_v23 = vpop.eup %6522 }
 0x97c   : > { %v6525_v24 = vpop.eup %6524  ;;  %v3405_v27 = vmul.f32 %v6523_v23, %v7239_v43 }
 0x97d   : > { %v3404_v29 = vmul.f32 %v6525_v24, %v7235_v39  ;;  %v4068_v33 = vpop.permute.xlu1 %4067 }
 0x97e   : > { %v3409_v53 = vpack.c.bf16 %v3405_v27, %v3405_v27 }
 0x97f   : > { %v6527_v26 = vpop.eup %6526 }
 0x980   : > { %v3403_v28 = vmul.f32 %v6527_v26, %v7243_v46 }
 0x982   : > { %v3408_v30 = vpack.c.bf16 %v3404_v29, %v3403_v28 }
 0x984   : > { %6287 = vmatprep.mubr.msk.bf16.mxu1 %vm1760_vm6, %v3408_v30 }
 0x985   : > { %6288 = vmatmul.mubr.msk.bf16.vlgmr.msra.gmra.mxu1 %vm1760_vm6, %v3409_v53 }
 0x986   : > { %6300 = vmatpush3.bf16.xpose.msra.mxu1 %v4083_v31  ;;  %6303 = vmatprep.mubr.msk.bf16.mxu1 %vm1633_vm5, %v4066_v52 }
 0x987   : > { %6390 = vmatprep.subr.msk.bf16.mxu1 %vm1633_vm5, %v4070_v56 }
 0x98e   : > { %6302 = vmatpush3.bf16.xpose.msra.mxu1 %v4080_v32 }
 0x995   : > { %6304 = vmatmul.mubr.msk.bf16.vlgmr.msra.gmra.mxu1 %vm1633_vm5, %v4068_v33 }
 0xa00   : > { %v6281_v34 = vpop.f32.mrf.mxu0 }
 0xa01   : > { %v3644_v48 = vrot.slane %v6281_v34, %v6868_v42 }
 0xa02   : > { %v7277_v20 = vpop.f32.mrf.mxu0 }
 0xa03   : > { %v3651_v59 = vrot.slane %v3644_v48, %v6868_v42 }
 0xa04   : > { %v6282_v35 = vpop.f32.mrf.mxu0 }
 0xa06   : > { %v7279_v36 = vpop.f32.mrf.mxu0 }
 0xa37   : > { %v7281_v37 = vpop.f32.mrf.mxu0 }
 0xa38   : > { %v4139_v45 = vsel %vm1767_vm7, %v7281_v37, -inf }
 0xa39   : > { %v7283_v38 = vpop.f32.mrf.mxu0 }
 0xa3a   : > { %v4133_v39 = vsel %vm1760_vm6, %v7283_v38, -inf }
 0xa3b   : > { %4134 = vmax.xlane.f32.xlu0 %v4133_v39  ;;  %v6298_v40 = vpop.f32.mrf.mxu0 }
 0xa3d   : > { %v7287_v43 = vpop.f32.mrf.mxu0 }
 0xa3e   : > { %v4136_v46 = vsel %vm1760_vm6, %v7287_v43, -inf }
 0xa3f   : > { %4140 = vmax.xlane.f32.xlu0 %v4139_v45  ;;  %4137 = vmax.xlane.f32.xlu1 %v4136_v46 }
 0xa45   : > { %v6289_v47 = vpop.f32.mrf.mxu1 }
 0xa46   : > { %v3756_v2 = vrot.slane %v6289_v47, %v6868_v42 }
 0xa47   : > { %v3520_v49 = vpop.f32.mrf.mxu1 }
 0xa48   : > { %v3652_v11 = vcombine.high %v3520_v49, %v3520_v49  ;;  %v3659_v50 = vrot.slane %v3520_v49, %v6868_v42  ;;  %v3763_v39 = vrot.slane %v3756_v2, %v6868_v42 }
 0xa49   : > { %v6290_v15 = vpop.f32.mrf.mxu1 }
 0xa4a   : > { %v3666_v54 = vrot.slane %v3652_v11, %v6868_v42  ;;  %v3667_v55 = vcombine.high %v3659_v50, %v3659_v50  ;;  %v3675_v57 = vrot.slane %v3659_v50, %v6868_v42 }
 0xa4b   : > { %v3523_v61 = vpop.f32.mrf.mxu1 }
 0xa4c   : > { %v3668_v62 = vcombine.high %v3666_v54, %v3666_v54  ;;  %v3682_v63 = vrot.slane %v3666_v54, %v6868_v42  ;;  %v3689_v0 = vrot.slane %v3667_v55, %v6868_v42  ;;  %v3697_v1 = vcombine.high %v3675_v57, %v3675_v57 }
 0xa4d   : > { %v3862_v4 = vcombine.low %v3651_v59, %v3675_v57  ;;  %v3701_v6 = vcombine.high %v3523_v61, %v3523_v61  ;;  %v3708_v7 = vrot.slane %v3523_v61, %v6868_v42 }
 0xa4e   : > { %v3696_v8 = vrot.slane %v3668_v62, %v6868_v42  ;;  %v3698_v9 = vcombine.high %v3682_v63, %v3682_v63  ;;  %v3699_v12 = vcombine.high %v3689_v0, %v3689_v0  ;;  %v3863_v13 = vcombine.low %v3689_v0, %v3697_v1 }
 0xa4f   : > { %v3872_v16 = vrot.slane %v3862_v4, %v6868_v42  ;;  %v3715_v18 = vrot.slane %v3701_v6, %v6868_v42  ;;  %v3716_v19 = vcombine.high %v3708_v7, %v3708_v7  ;;  %v3724_v21 = vrot.slane %v3708_v7, %v6868_v42 }
 0xa50   : > { %v3864_v22 = vcombine.low %v3699_v12, %v3682_v63  ;;  %v3865_v23 = vcombine.low %v3696_v8, %v3698_v9  ;;  %v3879_v24 = vrot.slane %v3863_v13, %v6868_v42  ;;  %v3700_v26 = vcombine.high %v3696_v8, %v3696_v8 }
 0xa51   : > { %v3717_v27 = vcombine.high %v3715_v18, %v3715_v18  ;;  %v3731_v28 = vrot.slane %v3715_v18, %v6868_v42  ;;  %v3738_v29 = vrot.slane %v3716_v19, %v6868_v42  ;;  %v3746_v30 = vcombine.high %v3724_v21, %v3724_v21 }
 0xa52   : > { %v3886_v53 = vrot.slane %v3864_v22, %v6868_v42  ;;  %v3893_v31 = vrot.slane %v3865_v23, %v6868_v42  ;;  %v3894_v52 = vcombine.low %v3872_v16, %v3879_v24  ;;  %v3911_v56 = vcombine.low %v3700_v26, %v3724_v21 }
 0xa53   : > { %v3745_v32 = vrot.slane %v3717_v27, %v6868_v42  ;;  %v3747_v33 = vcombine.high %v3731_v28, %v3731_v28  ;;  %v3748_v34 = vcombine.high %v3738_v29, %v3738_v29  ;;  %v3912_v35 = vcombine.low %v3738_v29, %v3746_v30 }
 0xa54   : > { %v3921_v40 = vrot.slane %v3911_v56, %v6868_v42  ;;  %v3895_v45 = vcombine.low %v3886_v53, %v3893_v31  ;;  %v3902_v15 = vrot.slane %v3894_v52, %v6868_v42 }
 0xa55   : > { %v3749_v46 = vcombine.high %v3745_v32, %v3745_v32  ;;  %v3913_v47 = vcombine.low %v3748_v34, %v3731_v28  ;;  %v3914_v48 = vcombine.low %v3745_v32, %v3747_v33  ;;  %v3928_v49 = vrot.slane %v3912_v35, %v6868_v42  ;;  %v6305_v11 = vpop.f32.mrf.mxu1 }
 0xa56   : > { %v4148_v50 = vsel %vm1767_vm7, %v6305_v11, -inf  ;;  %v3909_v54 = vrot.slane %v3895_v45, %v6868_v42  ;;  %v2747_v35 = vcombine.high %v7161_v10, %v7161_v10 }
 0xa57   : > { %v3935_v55 = vrot.slane %v3913_v47, %v6868_v42  ;;  %v3942_v57 = vrot.slane %v3914_v48, %v6868_v42  ;;  %v3943_v59 = vcombine.low %v3921_v40, %v3928_v49  ;;  %4149 = vmax.xlane.f32.xlu1 %v4148_v50  ;;  %v4119_v61 = vpop.f32.mrf.mxu1  ;;  %v7320_v62 = vcombine.low %v3749_v46, %v3763_v39 }
 0xa58   : > { %v4142_v63 = vsel %vm1760_vm6, %v4119_v61, -inf  ;;  %v7323_v0 = vcombine.low %v3902_v15, %v3909_v54  ;;  %v2796_v40 = vcombine.high %v7163_v51, %v7163_v51  ;;  %v2761_v47 = vrot.slane %v2747_v35, %v6868_v42 }
 0xa59   : > { %4143 = vmax.xlane.f32.xlu0 %v4142_v63  ;;  %v6306_v1 = vpop.f32.mrf.mxu1  ;;  %v3944_v2 = vcombine.low %v3935_v55, %v3942_v57  ;;  %v3951_v6 = vrot.slane %v3943_v59, %v6868_v42  ;;  %v2754_v48 = vrot.slane %v7161_v10, %v6868_v42  ;;  %v3589_v50 = vcombine.high %v7279_v36, %v7279_v36 }
 0xa5a   : > { %v2810_v49 = vrot.slane %v2796_v40, %v6868_v42  ;;  %v2763_v55 = vcombine.high %v2761_v47, %v2761_v47  ;;  %v2803_v57 = vrot.slane %v7163_v51, %v6868_v42  ;;  %v2777_v51 = vrot.slane %v2761_v47, %v6868_v42 }
 0xa5b   : > { %v4122_v4 = vpop.f32.mrf.mxu1  ;;  %v3958_v7 = vrot.slane %v3944_v2, %v6868_v42  ;;  %v2762_v59 = vcombine.high %v2754_v48, %v2754_v48  ;;  %v3603_v1 = vrot.slane %v3589_v50, %v6868_v42 }
 0xa5c   : > { %v4145_v8 = vsel %vm1760_vm6, %v4122_v4, -inf  ;;  %v2791_v2 = vrot.slane %v2763_v55, %v6868_v42 }
 0xa5d   : > { %4146 = vmax.xlane.f32.xlu0 %v4145_v8  ;;  %v7328_v9 = vcombine.low %v3951_v6, %v3958_v7  ;;  %v2811_v6 = vcombine.high %v2803_v57, %v2803_v57  ;;  %v3596_v7 = vrot.slane %v7279_v36, %v6868_v42  ;;  %v2784_v8 = vrot.slane %v2762_v59, %v6868_v42 }
 0xa5e   : > { %v3619_v35 = vrot.slane %v3603_v1, %v6868_v42 }
 0xa5f   : > { %v3612_v50 = vrot.slane %v3596_v7, %v6868_v42 }
 0xac4   : > { %v4135_v12 = vpop.xlane.xlu0 %4134 }
 0xac5   : > { %v4151_v13 = vsub.f32 %v7283_v38, %v4135_v12 }
 0xac7   : > { %v4157_v16 = vmul.f32 1.442695, %v4151_v13 }
 0xac8   : > { %v4141_v18 = vpop.xlane.xlu0 %4140  ;;  %v4138_v19 = vpop.xlane.xlu1 %4137 }
 0xac9   : > { %6528 = vpow2.f32 %v4157_v16  ;;  %v4153_v21 = vsub.f32 %v7281_v37, %v4141_v18  ;;  %v4152_v22 = vsub.f32 %v7287_v43, %v4138_v19  ;;  %v2770_v16 = vrot.slane %v2754_v48, %v6868_v42 }
 0xaca   : > { %v3605_v18 = vcombine.high %v3603_v1, %v3603_v1  ;;  %v2973_v19 = vcombine.low %v2777_v51, %v2791_v2 }
 0xacb   : > { %v4161_v23 = vmul.f32 1.442695, %v4153_v21  ;;  %v4159_v24 = vmul.f32 1.442695, %v4152_v22  ;;  %v6019_v21 = vcombine.high %v2777_v51, %v2791_v2  ;;  %v2826_v22 = vrot.slane %v2810_v49, %v6868_v42 }
 0xacd   : > { %6530 = vpow2.f32 %v4161_v23 }
 0xace   : > { %6532 = vpow2.f32 %v4159_v24  ;;  %v3604_v24 = vcombine.high %v3596_v7, %v3596_v7 }
 0xad0   : > { %v3626_v40 = vrot.slane %v3604_v24, %v6868_v42 }
 0xad2   : > { %v3813_v2 = vcombine.low %v3612_v50, %v3626_v40 }
 0xad6   : > { %v7333_v26 = vpop.eup %6528 }
 0xad7   : > { %v4169_v27 = vsel %vm1760_vm6, %v7333_v26, 0.0 }
 0xad8   : > { %4170 = vadd.xlane.f32.xlu0 %v4169_v27  ;;  %v2971_v27 = vcombine.low %v2770_v16, %v2784_v8 }
 0xada   : > { %v7337_v28 = vpop.eup %6530 }
 0xadb   : > { %v7339_v38 = vpop.eup %6532  ;;  %v4175_v29 = vsel %vm1767_vm7, %v7337_v28, 0.0 }
 0xadc   : > { %4176 = vadd.xlane.f32.xlu0 %v4175_v29  ;;  %v4172_v37 = vsel %vm1760_vm6, %v7339_v38, 0.0 }
 0xadd   : > { %4173 = vadd.xlane.f32.xlu1 %v4172_v37  ;;  %v6018_v37 = vcombine.high %v2770_v16, %v2784_v8 }
 0xae0   : > { %v4150_v43 = vpop.xlane.xlu1 %4149 }
 0xae1   : > { %v4156_v30 = vsub.f32 %v6305_v11, %v4150_v43  ;;  %v3540_v11 = vcombine.high %v7277_v20, %v7277_v20  ;;  %v2819_v43 = vrot.slane %v2803_v57, %v6868_v42  ;;  %v2981_v57 = vrot.slane %v2971_v27, %v6868_v42 }
 0xae2   : > { %v4144_v53 = vpop.xlane.xlu0 %4143 }
 0xae3   : > { %v4167_v31 = vmul.f32 1.442695, %v4156_v30  ;;  %v4154_v52 = vsub.f32 %v4119_v61, %v4144_v53  ;;  %v2812_v61 = vcombine.high %v2810_v49, %v2810_v49  ;;  %v3554_v63 = vrot.slane %v3540_v11, %v6868_v42 }
 0xae4   : > { %v3633_v53 = vrot.slane %v3605_v18, %v6868_v42 }
 0xae5   : > { %6534 = vpow2.f32 %v4167_v31  ;;  %v4163_v56 = vmul.f32 1.442695, %v4154_v52  ;;  %v2840_v12 = vrot.slane %v2812_v61, %v6868_v42  ;;  %v3556_v13 = vcombine.high %v3554_v63, %v3554_v63 }
 0xae6   : > { %v4147_v32 = vpop.xlane.xlu0 %4146  ;;  %v2995_v31 = vrot.slane %v2973_v19, %v6868_v42  ;;  %v3002_v52 = vrot.slane %v6019_v21, %v6868_v42  ;;  %v6033_v55 = vcombine.high %v3619_v35, %v3633_v53 }
 0xae7   : > { %6536 = vpow2.f32 %v4163_v56  ;;  %v4155_v33 = vsub.f32 %v4122_v4, %v4147_v32  ;;  %v3547_v4 = vrot.slane %v7277_v20, %v6868_v42  ;;  %v2833_v20 = vrot.slane %v2811_v6, %v6868_v42 }
 0xae8   : > { %v3022_v36 = vcombine.low %v2826_v22, %v2840_v12  ;;  %v3584_v29 = vrot.slane %v3556_v13, %v6868_v42  ;;  %v6021_v30 = vcombine.high %v2826_v22, %v2840_v12  ;;  %v3570_v56 = vrot.slane %v3554_v63, %v6868_v42 }
 0xae9   : > { %v4165_v34 = vmul.f32 1.442695, %v4155_v33  ;;  %v3555_v23 = vcombine.high %v3547_v4, %v3547_v4  ;;  %v3020_v33 = vcombine.low %v2819_v43, %v2833_v20  ;;  %v3563_v47 = vrot.slane %v3547_v4, %v6868_v42 }
 0xaea   : > { %v3766_v48 = vcombine.low %v3570_v56, %v3584_v29  ;;  %v6031_v49 = vcombine.high %v3570_v56, %v3584_v29  ;;  %v3051_v11 = vrot.slane %v6021_v30, %v6868_v42  ;;  %v6032_v4 = vcombine.high %v3612_v50, %v3626_v40 }
 0xaeb   : > { %6538 = vpow2.f32 %v4165_v34  ;;  %v3577_v32 = vrot.slane %v3555_v23, %v6868_v42  ;;  %v6020_v34 = vcombine.high %v2819_v43, %v2833_v20  ;;  %v3030_v63 = vrot.slane %v3020_v33, %v6868_v42 }
 0xaec   : > { %v3788_v6 = vrot.slane %v3766_v48, %v6868_v42  ;;  %v3795_v7 = vrot.slane %v6031_v49, %v6868_v42  ;;  %v3004_v51 = vcombine.low %v2995_v31, %v3002_v52  ;;  %v3844_v12 = vrot.slane %v6033_v55, %v6868_v42 }
 0xaed   : > { %v3764_v59 = vcombine.low %v3563_v47, %v3577_v32  ;;  %v6030_v61 = vcombine.high %v3563_v47, %v3577_v32  ;;  %v3037_v1 = vrot.slane %v6020_v34, %v6868_v42  ;;  %v3823_v22 = vrot.slane %v3813_v2, %v6868_v42 }
 0xaee   : > { %v3018_v23 = vrot.slane %v3004_v51, %v6868_v42  ;;  %v3797_v20 = vcombine.low %v3788_v6, %v3795_v7 }
 0xaef   : > { %v3774_v18 = vrot.slane %v3764_v59, %v6868_v42  ;;  %v3781_v19 = vrot.slane %v6030_v61, %v6868_v42  ;;  %v3052_v21 = vcombine.low %v3030_v63, %v3037_v1 }
 0xaf1   : > { %v3060_v43 = vrot.slane %v3052_v21, %v6868_v42 }
 0xaf2   : > { %v7347_v39 = vpop.eup %6534 }
 0xaf3   : > { %v4184_v45 = vsel %vm1767_vm7, %v7347_v39, 0.0 }
 0xaf4   : > { %v7353_v46 = vpop.eup %6536  ;;  %4185 = vadd.xlane.f32.xlu1 %v4184_v45  ;;  %v3044_v45 = vrot.slane %v3022_v36, %v6868_v42  ;;  %v3796_v36 = vcombine.low %v3774_v18, %v3781_v19 }
 0xaf5   : > { %v4178_v15 = vsel %vm1760_vm6, %v7353_v46, 0.0 }
 0xaf6   : > { %v3053_v13 = vcombine.low %v3044_v45, %v3051_v11  ;;  %v3804_v52 = vrot.slane %v3796_v36, %v6868_v42 }
 0xaf8   : > { %v7365_v54 = vpop.eup %6538  ;;  %4179 = vadd.xlane.f32.xlu1 %v4178_v15  ;;  %v3815_v15 = vcombine.low %v3619_v35, %v3633_v53  ;;  %v3067_v24 = vrot.slane %v3053_v13, %v6868_v42  ;;  %v3811_v53 = vrot.slane %v3797_v20, %v6868_v42 }
 0xaf9   : > { %v4181_v10 = vsel %vm1760_vm6, %v7365_v54, 0.0 }
 0xafa   : > { %4182 = vadd.xlane.f32.xlu0 %v4181_v10  ;;  %v2988_v10 = vrot.slane %v6018_v37, %v6868_v42  ;;  %v3837_v8 = vrot.slane %v3815_v15, %v6868_v42  ;;  %v3812_v56 = vcombine.low %v3804_v52, %v3811_v53 }
 0xafc   : > { %v3003_v16 = vcombine.low %v2981_v57, %v2988_v10  ;;  %v3846_v27 = vcombine.low %v3837_v8, %v3844_v12 }
 0xafe   : > { %v3011_v29 = vrot.slane %v3003_v16, %v6868_v42  ;;  %v3860_v31 = vrot.slane %v3846_v27, %v6868_v42 }
 0xb00   : > { %v3019_v30 = vcombine.low %v3011_v29, %v3018_v23 }
 0xb09   : > { %4203 = vrot.lane.b32.xlu1 %v6913_v3, %s6619_s27  ;;  %v3830_v3 = vrot.slane %v6032_v4, %v6868_v42 }
 0xb0b   : > { %v3845_v37 = vcombine.low %v3823_v22, %v3830_v3 }
 0xb0d   : > { %4267 = vrot.lane.b32.xlu1 %v6934_v17, %s6619_s27  ;;  %v3068_v17 = vcombine.low %v3060_v43, %v3067_v24 }
 0xb10   : > { %4205 = vrot.lane.b32.xlu0 %v6908_v60, %s6619_s27  ;;  %v3853_v60 = vrot.slane %v3845_v37, %v6868_v42 }
 0xb11   : > { %4265 = vrot.lane.b32.xlu1 %v6944_v44, %s6619_s27 }
 0xb12   : > { %v3861_v32 = vcombine.low %v3853_v60, %v3860_v31 }
 0xb14   : > { %3182 = vrot.lane.b32.xlu0 %v3019_v30, %s6620_s15 }
 0xb15   : > { %3184 = vrot.lane.b32.xlu1 %v3068_v17, %s6620_s15 }
 0xb18   : > { %3975 = vrot.lane.b32.xlu0 %v3812_v56, %s6621_s18 }
 0xb19   : > { %3977 = vrot.lane.b32.xlu1 %v3861_v32, %s6621_s18 }
 0xb61   : > { %v4171_v44 = vpop.xlane.xlu0 %4170 }
 0xb62   : > { %6540 = vrcp.f32 %v4171_v44 }
 0xb65   : > { %v4177_v48 = vpop.xlane.xlu0 %4176 }
 0xb66   : > { %v4174_v33 = vpop.xlane.xlu1 %4173 }
 0xb67   : > { %6542 = vrcp.f32 %v4174_v33 }
 0xb68   : > { %6544 = vrcp.f32 %v4177_v48 }
 0xb6f   : > { %v6541_v34 = vpop.eup %6540 }
 0xb70   : > { %v4193_v40 = vmul.f32 %v6541_v34, %v7333_v26 }
 0xb74   : > { %v6543_v35 = vpop.eup %6542 }
 0xb75   : > { %v4194_v45 = vmul.f32 %v6543_v35, %v7339_v38  ;;  %v6545_v10 = vpop.eup %6544 }
 0xb76   : > { %v4195_v61 = vmul.f32 %v6545_v10, %v7337_v28 }
 0xb77   : > { %v4199_v47 = vpack.c.bf16 %v4194_v45, %v4193_v40 }
 0xb79   : > { %6311 = vmatprep.mubr.msk.bf16.mxu0 %vm1760_vm6, %v4199_v47 }
 0xb7d   : > { %v4186_v49 = vpop.xlane.xlu1 %4185 }
 0xb7e   : > { %6546 = vrcp.f32 %v4186_v49 }
 0xb81   : > { %v4180_v11 = vpop.xlane.xlu1 %4179 }
 0xb82   : > { %6548 = vrcp.f32 %v4180_v11 }
 0xb83   : > { %v4183_v50 = vpop.xlane.xlu0 %4182 }
 0xb84   : > { %6550 = vrcp.f32 %v4183_v50 }
 0xb85   : > { %v4204_v15 = vpop.permute.xlu1 %4203 }
 0xb87   : > { %v4206_v55 = vpop.permute.xlu0 %4205 }
 0xb88   : > { %v4215_v57 = vand.u32 %v4206_v55, %v6981_v25 }
 0xb89   : > { %v4268_v59 = vpop.permute.xlu1 %4267 }
 0xb8a   : > { %v4277_v26 = vand.u32 %v4268_v59, %v6981_v25  ;;  %6307 = vmatprep.subr.bf16.mxu0 %v4215_v57  ;;  %v4200_v25 = vpack.c.bf16 %v4195_v61, %v4195_v61 }
 0xb8b   : > { %6308 = vmatpush3.bf16.msra.mxu0 %v4215_v57  ;;  %v3183_v38 = vpop.permute.xlu0 %3182  ;;  %v6547_v1 = vpop.eup %6546 }
 0xb8c   : > { %3198 = vst.msk [vmem:[#allocation3] sm:$0xff] %vm3197_vm10, %v3183_v38  ;;  %6309 = vmatprep.subr.bf16.mxu0 %v4204_v15  ;;  %6315 = vmatprep.subr.bf16.mxu1 %v4277_v26  ;;  %v4198_v51 = vmul.f32 %v6547_v1, %v7347_v39 }
 0xb8d   : > { %6316 = vmatpush3.bf16.msra.mxu1 %v4277_v26  ;;  %v4266_v63 = vpop.permute.xlu1 %4265 }
 0xb8e   : > { %6317 = vmatprep.subr.bf16.mxu1 %v4266_v63  ;;  %v4202_v16 = vpack.c.bf16 %v4198_v51, %v4198_v51 }
 0xb8f   : > { %v6549_v2 = vpop.eup %6548  ;;  %v3976_v4 = vpop.permute.xlu0 %3975  ;;  %6310 = vmatpush3.bf16.msra.mxu0 %v4204_v15 }
 0xb90   : > { %3991 = vst.msk [vmem:[#allocation3] sm:$0xff] %vm3990_vm11, %v3976_v4  ;;  %6323 = vmatprep.subr.bf16.mxu0 %v6605_v58  ;;  %v4196_v28 = vmul.f32 %v6549_v2, %v7353_v46 }
 0xb91   : > { %v6551_v6 = vpop.eup %6550  ;;  %6318 = vmatpush3.bf16.msra.mxu1 %v4266_v63  ;;  %v3185_v7 = vpop.permute.xlu1 %3184 }
 0xb92   : > { %3199 = vst.msk [vmem:[#allocation3 + $0x8] sm:$0xff] %vm3197_vm10, %v3185_v7  ;;  %6312 = vmatmul.mubr.msk.bf16.vlgmr.msra.gmra.mxu0 %vm1760_vm6, %v4200_v25  ;;  %v4197_v8 = vmul.f32 %v6551_v6, %v7365_v54  ;;  %6339 = vmatprep.subr.bf16.mxu1 %v6605_v58 }
 0xb93   : > { %6327 = vmatprep.mubr.msk.bf16.mxu0 %vm6606_vm4, %v6605_v58 }
 0xb94   : > { %v4201_v12 = vpack.c.bf16 %v4197_v8, %v4196_v28 }
 0xb95   : > { %v3978_v13 = vpop.permute.xlu1 %3977 }
 0xb96   : > { %3992 = vst.msk [vmem:[#allocation3 + $0x8] sm:$0xff] %vm3990_vm11, %v3978_v13  ;;  %6319 = vmatprep.mubr.msk.bf16.mxu1 %vm1760_vm6, %v4201_v12 }
 0xb97   : > { %6320 = vmatmul.mubr.msk.bf16.vlgmr.msra.gmra.mxu1 %vm1760_vm6, %v4202_v16  ;;  %v6438_v16 = vld [vmem:[%s7806_s17 + $0x8] sm:$0xff]  }
 0xb98   : > { %6343 = vmatprep.mubr.msk.bf16.mxu1 %vm6606_vm4, %v6605_v58  ;;  %6324 = vmatpush3.bf16.msra.mxu0 %v6438_v16 }
 0xb99   : > { %6325 = vmatprep.subr.bf16.mxu0 %v6605_v58 }
 0xc52   : > { %v6313_v39 = vpop.f32.mrf.mxu0 }
 0xc53   : > { %v4437_v23 = vrot.slane %v6313_v39, %v6868_v42 }
 0xc54   : > { %v4251_v46 = vpop.f32.mrf.mxu0 }
 0xc55   : > { %v4333_v54 = vcombine.high %v4251_v46, %v4251_v46  ;;  %v4340_v18 = vrot.slane %v4251_v46, %v6868_v42  ;;  %v7461_v34 = vrot.slane %v4437_v23, %v6868_v42 }
 0xc56   : > { %v6314_v19 = vpop.f32.mrf.mxu0 }
 0xc57   : > { %v4347_v21 = vrot.slane %v4333_v54, %v6868_v42  ;;  %v4348_v22 = vcombine.high %v4340_v18, %v4340_v18  ;;  %v7449_v3 = vpop.f32.mrf.mxu1  ;;  %v4356_v27 = vrot.slane %v4340_v18, %v6868_v42 }
 0xc58   : > { %v4254_v20 = vpop.f32.mrf.mxu0 }
 0xc59   : > { %v4349_v24 = vcombine.high %v4347_v21, %v4347_v21  ;;  %v4370_v36 = vrot.slane %v4348_v22, %v6868_v42  ;;  %v4382_v29 = vcombine.high %v4254_v20, %v4254_v20  ;;  %v4313_v37 = vpop.f32.mrf.mxu1  ;;  %v4363_v43 = vrot.slane %v4347_v21, %v6868_v42 }
 0xc5a   : > { %v4389_v30 = vrot.slane %v4254_v20, %v6868_v42  ;;  %v4445_v53 = vcombine.high %v4313_v37, %v4313_v37  ;;  %v4452_v17 = vrot.slane %v4313_v37, %v6868_v42 }
 0xc5b   : > { %v4377_v31 = vrot.slane %v4349_v24, %v6868_v42  ;;  %v4557_v52 = vcombine.low %v4356_v27, %v4370_v36  ;;  %v6042_v60 = vcombine.high %v4356_v27, %v4370_v36  ;;  %v4396_v56 = vrot.slane %v4382_v29, %v6868_v42  ;;  %v6322_v32 = vpop.f32.mrf.mxu1 }
 0xc5c   : > { %v4397_v44 = vcombine.high %v4389_v30, %v4389_v30  ;;  %v4459_v33 = vrot.slane %v4445_v53, %v6868_v42  ;;  %v4460_v45 = vcombine.high %v4452_v17, %v4452_v17  ;;  %v4405_v48 = vrot.slane %v4389_v30, %v6868_v42  ;;  %v6439_v30 = vld [vmem:[%s7806_s17] sm:$0xff]  }
 0xc5d   : > { %v4559_v35 = vcombine.low %v4363_v43, %v4377_v31  ;;  %v6043_v40 = vcombine.high %v4363_v43, %v4377_v31  ;;  %v4398_v47 = vcombine.high %v4396_v56, %v4396_v56  ;;  %v4567_v50 = vrot.slane %v4557_v52, %v6868_v42  ;;  %v4316_v51 = vpop.f32.mrf.mxu1  ;;  %6326 = vmatpush3.bf16.msra.mxu0 %v6439_v30 }
 0xc5e   : > { %v4419_v49 = vrot.slane %v4397_v44, %v6868_v42  ;;  %v4461_v11 = vcombine.high %v4459_v33, %v4459_v33  ;;  %v4574_v15 = vrot.slane %v6042_v60, %v6868_v42  ;;  %v4412_v55 = vrot.slane %v4396_v56, %v6868_v42  ;;  %6355 = vmatprep.subr.bf16.mxu0 %v6605_v58 }
 0xc5f   : > { %v7469_v57 = vrot.slane %v4452_v17, %v6868_v42  ;;  %v4426_v10 = vrot.slane %v4398_v47, %v6868_v42  ;;  %v4475_v38 = vrot.slane %v4459_v33, %v6868_v42  ;;  %v4581_v61 = vrot.slane %v4559_v35, %v6868_v42 }
 0xc60   : > { %v4606_v59 = vcombine.low %v4405_v48, %v4419_v49  ;;  %v6044_v26 = vcombine.high %v4405_v48, %v4419_v49  ;;  %v4588_v63 = vrot.slane %v6043_v40, %v6868_v42  ;;  %v4482_v1 = vrot.slane %v4460_v45, %v6868_v42 }
 0xc61   : > { %v4489_v2 = vrot.slane %v4461_v11, %v6868_v42  ;;  %v4608_v4 = vcombine.low %v4412_v55, %v4426_v10  ;;  %v6045_v25 = vcombine.high %v4412_v55, %v4426_v10  ;;  %v4589_v28 = vcombine.low %v4567_v50, %v4574_v15 }
 0xc62   : > { %v4616_v6 = vrot.slane %v4606_v59, %v6868_v42  ;;  %v4623_v7 = vrot.slane %v6044_v26, %v6868_v42  ;;  %v4490_v8 = vcombine.high %v7469_v57, %v7469_v57  ;;  %v4491_v12 = vcombine.high %v4475_v38, %v4475_v38 }
 0xc63   : > { %v4492_v13 = vcombine.high %v4482_v1, %v4482_v1  ;;  %v4630_v39 = vrot.slane %v4608_v4, %v6868_v42  ;;  %v4637_v46 = vrot.slane %v6045_v25, %v6868_v42  ;;  %v4655_v54 = vcombine.low %v7461_v34, %v7469_v57 }
 0xc64   : > { %v4638_v18 = vcombine.low %v4616_v6, %v4623_v7  ;;  %v4658_v21 = vcombine.low %v4489_v2, %v4491_v12  ;;  %v4494_v22 = vcombine.high %v4316_v51, %v4316_v51  ;;  %v4493_v23 = vcombine.high %v4489_v2, %v4489_v2 }
 0xc65   : > { %v4657_v19 = vcombine.low %v4492_v13, %v4475_v38  ;;  %v4501_v20 = vrot.slane %v4316_v51, %v6868_v42  ;;  %v4590_v24 = vcombine.low %v4581_v61, %v4588_v63  ;;  %v4639_v27 = vcombine.low %v4630_v39, %v4637_v46 }
 0xc66   : > { %v4656_v36 = vcombine.low %v4482_v1, %v4490_v8  ;;  %v4508_v37 = vrot.slane %v4494_v22, %v6868_v42  ;;  %v4597_v43 = vrot.slane %v4589_v28, %v6868_v42  ;;  %v4686_v53 = vrot.slane %v4658_v21, %v6868_v42 }
 0xc67   : > { %v4679_v29 = vrot.slane %v4657_v19, %v6868_v42  ;;  %v4509_v17 = vcombine.high %v4501_v20, %v4501_v20  ;;  %v4517_v31 = vrot.slane %v4501_v20, %v6868_v42  ;;  %v4604_v52 = vrot.slane %v4590_v24, %v6868_v42 }
 0xc68   : > { %v4510_v60 = vcombine.high %v4508_v37, %v4508_v37  ;;  %v4524_v56 = vrot.slane %v4508_v37, %v6868_v42  ;;  %v4646_v32 = vrot.slane %v4638_v18, %v6868_v42  ;;  %v4653_v44 = vrot.slane %v4639_v27, %v6868_v42 }
 0xc69   : > { %v4531_v33 = vrot.slane %v4509_v17, %v6868_v42  ;;  %v4539_v34 = vcombine.high %v4517_v31, %v4517_v31  ;;  %v4704_v35 = vcombine.low %v4493_v23, %v4517_v31  ;;  %v4605_v40 = vcombine.low %v4597_v43, %v4604_v52  ;;  %v6046_v31 = vld [vmem:[%s7807_s23] ss:$0 sm:$0xff] }
 0xc6a   : > { %v4538_v45 = vrot.slane %v4510_v60, %v6868_v42  ;;  %v4540_v47 = vcombine.high %v4524_v56, %v4524_v56  ;;  %v4654_v48 = vcombine.low %v4646_v32, %v4653_v44  ;;  %v4672_v49 = vrot.slane %v4656_v36, %v6868_v42  ;;  %v6574_v32 = vld [vmem:[#allocation2] sm:$0xff] }
 0xc6b   : > { %v4541_v11 = vcombine.high %v4531_v33, %v4531_v33  ;;  %v4705_v50 = vcombine.low %v4531_v33, %v4539_v34  ;;  %4768 = vrot.lane.b32.xlu0 %v4605_v40, %s6622_s21  ;;  %v4714_v55 = vrot.slane %v4704_v35, %v6868_v42  ;;  %v4665_v57 = vrot.slane %v4655_v54, %v6868_v42 }
 0xc6c   : > { %v4707_v15 = vcombine.low %v4538_v45, %v4540_v47  ;;  %4770 = vrot.lane.b32.xlu1 %v4654_v48, %s6622_s21  ;;  %v4688_v26 = vcombine.low %v4679_v29, %v4686_v53  ;;  %v4549_v61 = vrot.slane %v7449_v3, %v6868_v42  ;;  %v4542_v4 = vcombine.high %v4538_v45, %v4538_v45  ;;  %v6575_v45 = vld [vmem:[#allocation2 + $0x8] sm:$0xff] }
 0xc6d   : > { %v4706_v10 = vcombine.low %v4541_v11, %v4524_v56  ;;  %v4721_v59 = vrot.slane %v4705_v50, %v6868_v42  ;;  %v4687_v63 = vcombine.low %v4665_v57, %v4672_v49  ;;  %v3967_v13 = vrot.slane %v7320_v62, %v6868_v42 }
 0xc6e   : > { %v4735_v38 = vrot.slane %v4707_v15, %v6868_v42  ;;  %v4702_v25 = vrot.slane %v4688_v26, %v6868_v42  ;;  %v4556_v7 = vrot.slane %v4549_v61, %v6868_v42  ;;  %v6576_v15 = vld [vmem:[#allocation2 + $0x10] sm:$0xff] }
 0xc6f   : > { %v4728_v1 = vrot.slane %v4706_v10, %v6868_v42  ;;  %3186 = vrot.lane.b32.xlu0 %v7207_v5, %s6620_s15  ;;  %v4736_v2 = vcombine.low %v4714_v55, %v4721_v59  ;;  %v4695_v3 = vrot.slane %v4687_v63, %v6868_v42 }
 0xc70   : > { %3188 = vrot.lane.b32.xlu1 %v7212_v14, %s6620_s15  ;;  %v3174_v14 = vrot.slane %v7204_v41, %v6868_v42  ;;  %v4753_v8 = vcombine.low %v4542_v4, %v4556_v7 }
 0xc71   : > { %v4737_v6 = vcombine.low %v4728_v1, %v4735_v38  ;;  %v4744_v5 = vrot.slane %v4736_v2, %v6868_v42  ;;  %v4703_v28 = vcombine.low %v4695_v3, %v4702_v25  ;;  %v6577_v38 = vld [vmem:[#allocation2 + $0x18] sm:$0xff]  ;;  %v6578_v25 = vld [vmem:[#allocation2 + $0x20] sm:$0x3] }
 0xc72   : > { %v4760_v16 = vrot.slane %v4753_v8, %v6868_v42 }
 0xc73   : > { %3979 = vrot.lane.b32.xlu0 %v7323_v0, %s6621_s18  ;;  %v4751_v51 = vrot.slane %v4737_v6, %v6868_v42  ;;  %v3181_v0 = vrot.slane %v3174_v14, %v6868_v42 }
 0xc74   : > { %3981 = vrot.lane.b32.xlu1 %v7328_v9, %s6621_s18  ;;  %v3974_v9 = vrot.slane %v3967_v13, %v6868_v42  ;;  %v4767_v41 = vrot.slane %v4760_v16, %v6868_v42 }
 0xc75   : > { %v4752_v12 = vcombine.low %v4744_v5, %v4751_v51 }
 0xc77   : > { %4772 = vrot.lane.b32.xlu0 %v4703_v28, %s6622_s21 }
 0xc78   : > { %4774 = vrot.lane.b32.xlu1 %v4752_v12, %s6622_s21 }
 0xc7b   : > { %3190 = vrot.lane.b32.xlu0 %v3181_v0, %s6620_s15 }
 0xc7c   : > { %3983 = vrot.lane.b32.xlu1 %v3974_v9, %s6621_s18 }
 0xc7f   : > { %4776 = vrot.lane.b32.xlu0 %v4767_v41, %s6622_s21 }
 0xcdd   : > { %v4769_v62 = vpop.permute.xlu0 %4768 }
 0xcde   : > { %4784 = vst.msk [vmem:[#allocation3] sm:$0xff] %vm4783_vm12, %v4769_v62  ;;  %v4771_v39 = vpop.permute.xlu1 %4770 }
 0xcdf   : > { %4785 = vst.msk [vmem:[#allocation3 + $0x8] sm:$0xff] %vm4783_vm12, %v4771_v39 }
 0xce1   : > { %v3187_v46 = vpop.permute.xlu0 %3186 }
 0xce2   : > { %3200 = vst.msk [vmem:[#allocation3 + $0x10] sm:$0xff] %vm3197_vm10, %v3187_v46  ;;  %v3189_v54 = vpop.permute.xlu1 %3188 }
 0xce3   : > { %3201 = vst.msk [vmem:[#allocation3 + $0x18] sm:$0xff] %vm3197_vm10, %v3189_v54 }
 0xce5   : > { %v3980_v18 = vpop.permute.xlu0 %3979  ;;  %v4790_v21 = vld [vmem:[#allocation3] sm:$0xff] }
 0xce6   : > { %3993 = vst.msk [vmem:[#allocation3 + $0x10] sm:$0xff] %vm3990_vm11, %v3980_v18  ;;  %v3982_v19 = vpop.permute.xlu1 %3981  ;;  %v4791_v22 = vld [vmem:[#allocation3 + $0x8] sm:$0xff] }
 0xce7   : > { %3994 = vst.msk [vmem:[#allocation3 + $0x18] sm:$0xff] %vm3990_vm11, %v3982_v19  ;;  %v4795_v23 = vpack.c.bf16 %v4791_v22, %v4790_v21 }
 0xce9   : > { %v4773_v20 = vpop.permute.xlu0 %4772  ;;  %6328 = vmatmul.mubr.msk.bf16.vlgmr.msra.gmra.mxu0 %vm989_vm2, %v4795_v23 }
 0xcea   : > { %4786 = vst.msk [vmem:[#allocation3 + $0x10] sm:$0xff] %vm4783_vm12, %v4773_v20  ;;  %v4775_v24 = vpop.permute.xlu1 %4774  ;;  %6331 = vmatprep.mubr.msk.bf16.mxu0 %vm6606_vm4, %v6605_v58 }
 0xceb   : > { %4787 = vst.msk [vmem:[#allocation3 + $0x18] sm:$0xff] %vm4783_vm12, %v4775_v24 }
 0xced   : > { %v3191_v27 = vpop.permute.xlu0 %3190 }
 0xcee   : > { %3203 = vst.msk [vmem:[#allocation3 + $0x20] sm:$0x3] %vm3202_vm13, %v3191_v27  ;;  %v3984_v36 = vpop.permute.xlu1 %3983 }
 0xcef   : > { %3996 = vst.msk [vmem:[#allocation3 + $0x20] sm:$0x3] %vm3995_vm14, %v3984_v36 }
 0xcf1   : > { %v4777_v29 = vpop.permute.xlu0 %4776  ;;  %v4792_v37 = vld [vmem:[#allocation3 + $0x10] sm:$0xff] }
 0xcf2   : > { %4789 = vst.msk [vmem:[#allocation3 + $0x20] sm:$0x3] %vm4788_vm15, %v4777_v29  ;;  %v4793_v43 = vld [vmem:[#allocation3 + $0x18] sm:$0xff] }
 0xcf3   : > { %v4796_v30 = vpack.c.bf16 %v4793_v43, %v4792_v37  ;;  %v6440_v43 = vld [vmem:[%s6756_s3 + $0x8] sm:$0xff]  }
 0xcf4   : > { %6340 = vmatpush3.bf16.msra.mxu1 %v6440_v43 }
 0xcf5   : > { %6332 = vmatmul.mubr.msk.bf16.gmra.mxu0 %vm989_vm2, %v4796_v30  ;;  %v6441_v30 = vld [vmem:[%s6756_s3] sm:$0xff]   ;;  %6341 = vmatprep.subr.bf16.mxu1 %v6605_v58 }
 0xcf6   : > { %6335 = vmatprep.mubr.msk.bf16.mxu0 %vm6606_vm4, %v6605_v58 }
 0xcf8   : > { %6342 = vmatpush3.bf16.msra.mxu1 %v6441_v30 }
 0xcf9   : > { %v4794_v53 = vld [vmem:[#allocation3 + $0x20] sm:$0x3] }
 0xcfa   : > { %v4797_v17 = vpack.c.bf16 %v4794_v53, %v4794_v53 }
 0xcfd   : > { %6336 = vmatmul.mubr.msk.bf16.gmra.mxu0 %vm989_vm2, %v4797_v17 }
 0xcfe   : > { %6363 = vmatprep.mubr.msk.bf16.mxu0 %vm6606_vm4, %v6605_v58 }
 0xda9   : > { %v4864_v52 = vpop.f32.mrf.mxu0 }
 0xdaa   : > { %v4865_v60 = vadd.f32 %v6046_v31, %v4864_v52 }
 0xdab   : > { %v6329_v56 = vpop.f32.mrf.mxu0 }
 0xdac   : > { %v7559_v44 = vadd.f32 %v6574_v32, %v4865_v60 }
 0xdad   : > { %v4867_v33 = vpop.f32.mrf.mxu0 }
 0xdae   : > { %v4868_v34 = vadd.f32 %v6046_v31, %v4867_v33  ;;  %v4893_v35 = vsel %vm989_vm2, %v7559_v44, 0.0 }
 0xdaf   : > { %4894 = vadd.xlane.f32.xlu1 %v4893_v35  ;;  %v6330_v40 = vpop.f32.mrf.mxu0 }
 0xdb0   : > { %v7563_v47 = vadd.f32 %v6575_v45, %v4868_v34 }
 0xdb2   : > { %v4896_v48 = vsel %vm989_vm2, %v7563_v47, 0.0 }
 0xdb3   : > { %4897 = vadd.xlane.f32.xlu0 %v4896_v48 }
 0xdb5   : > { %v4872_v49 = vpop.f32.mrf.mxu0 }
 0xdb6   : > { %v4873_v11 = vadd.f32 %v6046_v31, %v4872_v49 }
 0xdb7   : > { %v6333_v50 = vpop.f32.mrf.mxu0 }
 0xdb8   : > { %v7567_v55 = vadd.f32 %v6576_v15, %v4873_v11  ;;  %v6052_v50 = vld [vmem:[%s626_s13] ss:$0 sm:$0xff] }
 0xdb9   : > { %v4875_v57 = vpop.f32.mrf.mxu0 }
 0xdba   : > { %v4876_v10 = vadd.f32 %v6046_v31, %v4875_v57  ;;  %v4899_v59 = vsel %vm989_vm2, %v7567_v55, 0.0 }
 0xdbb   : > { %4900 = vadd.xlane.f32.xlu0 %v4899_v59  ;;  %v6334_v26 = vpop.f32.mrf.mxu0 }
 0xdbc   : > { %v7571_v61 = vadd.f32 %v6577_v38, %v4876_v10  ;;  %v6053_v38 = vld [vmem:[%s629_s22] ss:$0 sm:$0xff] }
 0xdbd   : > { %v4880_v63 = vpop.f32.mrf.mxu0 }
 0xdbe   : > { %v4881_v1 = vadd.f32 %v6046_v31, %v4880_v63  ;;  %v4902_v2 = vsel %vm989_vm2, %v7571_v61, 0.0 }
 0xdbf   : > { %4903 = vadd.xlane.f32.xlu0 %v4902_v2  ;;  %v6337_v4 = vpop.f32.mrf.mxu0 }
 0xdc0   : > { %v7575_v6 = vadd.f32 %v6578_v25, %v4881_v1 }
 0xdc1   : > { %v4883_v7 = vpop.f32.mrf.mxu0 }
 0xdc2   : > { %v4905_v3 = vsel %vm1002_vm3, %v7575_v6, 0.0 }
 0xdc3   : > { %4906 = vadd.xlane.f32.xlu1 %v4905_v3  ;;  %v6338_v51 = vpop.f32.mrf.mxu0 }
 0xe38   : > { %v4895_v5 = vpop.xlane.xlu1 %4894 }
 0xe39   : > { %v4908_v28 = vmul.f32 0.03125, %v4895_v5 }
 0xe3b   : > { %v4913_v14 = vsub.f32 %v7559_v44, %v4908_v28 }
 0xe3c   : > { %v4898_v8 = vpop.xlane.xlu0 %4897 }
 0xe3d   : > { %v4909_v12 = vmul.f32 0.03125, %v4898_v8  ;;  %v4918_v13 = vmul.f32 %v4913_v14, %v4913_v14 }
 0xe3f   : > { %v4914_v0 = vsub.f32 %v7563_v47, %v4909_v12  ;;  %v4923_v16 = vsel %vm989_vm2, %v4918_v13, 0.0 }
 0xe40   : > { %4924 = vadd.xlane.f32.xlu0 %v4923_v16 }
 0xe41   : > { %v4919_v9 = vmul.f32 %v4914_v0, %v4914_v0 }
 0xe43   : > { %v4926_v41 = vsel %vm989_vm2, %v4919_v9, 0.0 }
 0xe44   : > { %v4901_v62 = vpop.xlane.xlu0 %4900  ;;  %4927 = vadd.xlane.f32.xlu1 %v4926_v41 }
 0xe45   : > { %v4910_v39 = vmul.f32 0.03125, %v4901_v62  ;;  %v6442_v62 = vld [vmem:[%s6766_s16 + $0x18] sm:$0xff]  }
 0xe46   : > { %6356 = vmatpush3.bf16.msra.mxu0 %v6442_v62 }
 0xe47   : > { %v4915_v46 = vsub.f32 %v7567_v55, %v4910_v39  ;;  %6357 = vmatprep.subr.bf16.mxu0 %v6605_v58  ;;  %v6443_v39 = vld [vmem:[%s6766_s16 + $0x10] sm:$0xff]  }
 0xe48   : > { %v4904_v54 = vpop.xlane.xlu0 %4903 }
 0xe49   : > { %v4911_v18 = vmul.f32 0.03125, %v4904_v54  ;;  %v4920_v19 = vmul.f32 %v4915_v46, %v4915_v46  ;;  %v6445_v54 = vld [vmem:[%s6766_s16] sm:$0xff]  }
 0xe4a   : > { %6358 = vmatpush3.bf16.msra.mxu0 %v6443_v39 }
 0xe4b   : > { %v4916_v21 = vsub.f32 %v7571_v61, %v4911_v18  ;;  %v4929_v22 = vsel %vm989_vm2, %v4920_v19, 0.0  ;;  %6359 = vmatprep.subr.bf16.mxu0 %v6605_v58  ;;  %v6054_v19 = vld [vmem:[%s637_s5] ss:$0 sm:$0xff] }
 0xe4c   : > { %4930 = vadd.xlane.f32.xlu0 %v4929_v22  ;;  %v4907_v23 = vpop.xlane.xlu1 %4906 }
 0xe4d   : > { %v4912_v20 = vmul.f32 0.03125, %v4907_v23  ;;  %v4921_v24 = vmul.f32 %v4916_v21, %v4916_v21 }
 0xe4f   : > { %v4917_v27 = vsub.f32 %v7575_v6, %v4912_v20  ;;  %v4932_v36 = vsel %vm989_vm2, %v4921_v24, 0.0 }
 0xe50   : > { %4933 = vadd.xlane.f32.xlu1 %v4932_v36 }
 0xe51   : > { %v4922_v29 = vmul.f32 %v4917_v27, %v4917_v27 }
 0xe53   : > { %v4935_v37 = vsel %vm1002_vm3, %v4922_v29, 0.0 }
 0xe54   : > { %4936 = vadd.xlane.f32.xlu0 %v4935_v37 }
 0xec9   : > { %v4925_v53 = vpop.xlane.xlu0 %4924 }
 0xeca   : > { %v4938_v17 = vmul.f32 0.03125, %v4925_v53 }
 0xecc   : > { %v4943_v31 = vadd.f32 1e-05, %v4938_v17 }
 0xecd   : > { %v4928_v52 = vpop.xlane.xlu1 %4927 }
 0xece   : > { %6552 = vrsqrt.f32 %v4943_v31  ;;  %v4939_v60 = vmul.f32 0.03125, %v4928_v52 }
 0xed0   : > { %v4944_v56 = vadd.f32 1e-05, %v4939_v60 }
 0xed2   : > { %6554 = vrsqrt.f32 %v4944_v56 }
 0xed5   : > { %v4931_v32 = vpop.xlane.xlu0 %4930 }
 0xed6   : > { %v4940_v33 = vmul.f32 0.03125, %v4931_v32 }
 0xed8   : > { %v4945_v34 = vadd.f32 1e-05, %v4940_v33 }
 0xed9   : > { %v4934_v35 = vpop.xlane.xlu1 %4933 }
 0xeda   : > { %6556 = vrsqrt.f32 %v4945_v34  ;;  %v4941_v40 = vmul.f32 0.03125, %v4934_v35 }
 0xedb   : > { %v6553_v45 = vpop.eup %6552 }
 0xedc   : > { %v4953_v48 = vmul.f32 %v6553_v45, %v4913_v14  ;;  %v4946_v49 = vadd.f32 1e-05, %v4941_v40 }
 0xedd   : > { %v4937_v11 = vpop.xlane.xlu0 %4936 }
 0xede   : > { %6558 = vrsqrt.f32 %v4946_v49  ;;  %v4942_v15 = vmul.f32 0.03125, %v4937_v11  ;;  %v4964_v26 = vmul.f32 %v6052_v50, %v4953_v48 }
 0xedf   : > { %v6555_v57 = vpop.eup %6554 }
 0xee0   : > { %v4954_v10 = vmul.f32 %v6555_v57, %v4914_v0  ;;  %v4947_v59 = vadd.f32 1e-05, %v4942_v15  ;;  %v4975_v1 = vadd.f32 %v6053_v38, %v4964_v26 }
 0xee2   : > { %6560 = vrsqrt.f32 %v4947_v59  ;;  %v4965_v63 = vmul.f32 %v6052_v50, %v4954_v10 }
 0xee4   : > { %v4976_v2 = vadd.f32 %v6053_v38, %v4965_v63 }
 0xee6   : > { %v4980_v4 = vpack.c.bf16 %v4976_v2, %v4975_v1 }
 0xee7   : > { %v6557_v25 = vpop.eup %6556 }
 0xee8   : > { %6344 = vmatmul.mubr.msk.bf16.vlgmr.msra.gmra.mxu1 %vm989_vm2, %v4980_v4  ;;  %v4955_v7 = vmul.f32 %v6557_v25, %v4915_v46  ;;  %v6444_v46 = vld [vmem:[%s6766_s16 + $0x8] sm:$0xff]  }
 0xee9   : > { %6347 = vmatprep.mubr.msk.bf16.mxu1 %vm6606_vm4, %v6605_v58  ;;  %6360 = vmatpush3.bf16.msra.mxu0 %v6444_v46 }
 0xeea   : > { %v4966_v5 = vmul.f32 %v6052_v50, %v4955_v7  ;;  %6361 = vmatprep.subr.bf16.mxu0 %v6605_v58 }
 0xeeb   : > { %v6559_v3 = vpop.eup %6558 }
 0xeec   : > { %v4956_v51 = vmul.f32 %v6559_v3, %v4916_v21  ;;  %v4977_v8 = vadd.f32 %v6053_v38, %v4966_v5 }
 0xeed   : > { %6362 = vmatpush3.bf16.msra.mxu0 %v6445_v54 }
 0xeee   : > { %v4967_v28 = vmul.f32 %v6052_v50, %v4956_v51 }
 0xeef   : > { %v6561_v14 = vpop.eup %6560 }
 0xef0   : > { %v4978_v12 = vadd.f32 %v6053_v38, %v4967_v28  ;;  %v4957_v13 = vmul.f32 %v6561_v14, %v4917_v27 }
 0xef2   : > { %v4981_v0 = vpack.c.bf16 %v4978_v12, %v4977_v8  ;;  %v4968_v16 = vmul.f32 %v6052_v50, %v4957_v13 }
 0xef4   : > { %6348 = vmatmul.mubr.msk.bf16.gmra.mxu1 %vm989_vm2, %v4981_v0  ;;  %v4979_v9 = vadd.f32 %v6053_v38, %v4968_v16 }
 0xef5   : > { %6351 = vmatprep.mubr.msk.bf16.mxu1 %vm6606_vm4, %v6605_v58 }
 0xef6   : > { %v4982_v41 = vpack.c.bf16 %v4979_v9, %v4979_v9 }
 0xefc   : > { %6352 = vmatmul.mubr.msk.bf16.gmra.mxu1 %vm989_vm2, %v4982_v41 }
 0xfa8   : > { %v5049_v18 = vpop.f32.mrf.mxu1 }
 0xfa9   : > { %v5050_v23 = vadd.f32 %v6054_v19, %v5049_v18 }
 0xfaa   : > { %v6345_v21 = vpop.f32.mrf.mxu1 }
 0xfac   : > { %v5052_v22 = vpop.f32.mrf.mxu1 }
 0xfad   : > { %v5053_v20 = vadd.f32 %v6054_v19, %v5052_v22 }
 0xfae   : > { %v6346_v24 = vpop.f32.mrf.mxu1 }
 0xfaf   : > { %v7621_v27 = vpack.c.bf16 %v5053_v20, %v5050_v23 }
 0xfb1   : > { %v5077_v36 = vmul.bf16 1060454197, %v7621_v27 }
 0xfb3   : > { %v5086_v29 = vand.u32 2147450879, %v5077_v36  ;;  %vm5080_vm0 = vcmp.ge.bf16.partialorder %v5077_v36, 0 }
 0xfb4   : > { %v5057_v37 = vpop.f32.mrf.mxu1 }
 0xfb5   : > { %v5089_v43 = vmul.bf16 1051213480, %v5086_v29  ;;  %v5058_v31 = vadd.f32 %v6054_v19, %v5057_v37  ;;  %v5128_v49 = vsub.bf16 0, %v5086_v29 }
 0xfb6   : > { %v6349_v30 = vpop.f32.mrf.mxu1 }
 0xfb7   : > { %v5092_v53 = vadd.bf16 1065369472, %v5089_v43  ;;  %v5131_v59 = vmul.bf16 %v5128_v49, %v5086_v29  ;;  %v6623_v30 = vmov 3212885888  }
 0xfb8   : > { %v5060_v17 = vpop.f32.mrf.mxu1 }
 0xfb9   : > { %6562 = vrcp.bf16 %v5092_v53  ;;  %v5061_v52 = vadd.f32 %v6054_v19, %v5060_v17  ;;  %v5135_v2 = vmul.bf16 1069105081, %v5131_v59  ;;  %v5083_v53 = vsel %vm5080_vm0, 1065369472, %v6623_v30 }
 0xfba   : > { %v6350_v60 = vpop.f32.mrf.mxu1 }
 0xfbb   : > { %v7624_v56 = vpack.c.bf16 %v5061_v52, %v5058_v31 }
 0xfbc   : > { %v5065_v32 = vpop.f32.mrf.mxu1 }
 0xfbd   : > { %v5078_v33 = vmul.bf16 1060454197, %v7624_v56  ;;  %v5066_v34 = vadd.f32 %v6054_v19, %v5065_v32  ;;  %v5074_v32 = vmul.bf16 1056980736, %v7621_v27 }
 0xfbe   : > { %v6353_v35 = vpop.f32.mrf.mxu1 }
 0xfbf   : > { %v5087_v40 = vand.u32 2147450879, %v5078_v33  ;;  %v7629_v45 = vpack.c.bf16 %v5066_v34, %v5066_v34  ;;  %vm5081_vm5 = vcmp.ge.bf16.partialorder %v5078_v33, 0 }
 0xfc0   : > { %v5068_v48 = vpop.f32.mrf.mxu1 }
 0xfc1   : > { %v5090_v11 = vmul.bf16 1051213480, %v5087_v40  ;;  %v5079_v50 = vmul.bf16 1060454197, %v7629_v45  ;;  %v5129_v7 = vsub.bf16 0, %v5087_v40 }
 0xfc2   : > { %v6354_v15 = vpop.f32.mrf.mxu1 }
 0xfc3   : > { %v5093_v57 = vadd.bf16 1065369472, %v5090_v11  ;;  %v5088_v10 = vand.u32 2147450879, %v5079_v50  ;;  %v5132_v5 = vmul.bf16 %v5129_v7, %v5087_v40  ;;  %vm5082_vm6 = vcmp.ge.bf16.partialorder %v5079_v50, 0 }
 0xfc5   : > { %6564 = vrcp.bf16 %v5093_v57  ;;  %v5091_v26 = vmul.bf16 1051213480, %v5088_v10  ;;  %v5130_v14 = vsub.bf16 0, %v5088_v10  ;;  %v5138_v0 = vmul.bf16 1069105081, %v5132_v5 }
 0xfc7   : > { %v6563_v38 = vpop.eup %6562  ;;  %v5094_v1 = vadd.bf16 1065369472, %v5091_v26  ;;  %v5133_v41 = vmul.bf16 %v5130_v14, %v5088_v10  ;;  %v5084_v26 = vsel %vm5081_vm5, 1065369472, %v6623_v30 }
 0xfc8   : > { %v5096_v63 = vmul.bf16 1065369472, %v6563_v38 }
 0xfc9   : > { %6566 = vrcp.bf16 %v5094_v1  ;;  %v5141_v21 = vmul.bf16 1069105081, %v5133_v41 }
 0xfca   : > { %v5101_v4 = vmul.bf16 1065893768, %v5096_v63  ;;  %6568 = vpow.bf16 %v5135_v2 }
 0xfcb   : > { %6570 = vpow.bf16 %v5138_v0 }
 0xfcc   : > { %v5104_v25 = vadd.bf16 3216687034, %v5101_v4  ;;  %6572 = vpow.bf16 %v5141_v21  ;;  %v5075_v4 = vmul.bf16 1056980736, %v7624_v56  ;;  %v6060_v56 = vld [vmem:[%s645_s20] ss:$0 sm:$0xff] }
 0xfcd   : > { %s7810_s20 = sld [smem:[#allocation10_spill]] (!%p6068_p6) }
 0xfce   : > { %v5107_v3 = vmul.bf16 %v5104_v25, %v5096_v63 }
 0xfd0   : > { %v5110_v51 = vadd.bf16 1068908470, %v5107_v3 }
 0xfd2   : > { %v5113_v28 = vmul.bf16 %v5110_v51, %v5096_v63  ;;  %v5085_v51 = vsel %vm5082_vm6, 1065369472, %v6623_v30 }
 0xfd3   : > { %v6565_v8 = vpop.eup %6564 }
 0xfd4   : > { %v5116_v12 = vadd.bf16 3197288082, %v5113_v28  ;;  %v5098_v13 = vmul.bf16 1065369472, %v6565_v8  ;;  %v5076_v28 = vmul.bf16 1056980736, %v7629_v45 }
 0xfd6   : > { %v5119_v16 = vmul.bf16 %v5116_v12, %v5096_v63  ;;  %v5102_v9 = vmul.bf16 1065893768, %v5098_v13 }
 0xfd7   : > { %v6567_v62 = vpop.eup %6566 }
 0xfd8   : > { %v5122_v39 = vadd.bf16 1048723074, %v5119_v16  ;;  %v5105_v46 = vadd.bf16 3216687034, %v5102_v9  ;;  %v5100_v54 = vmul.bf16 1065369472, %v6567_v62  ;;  %v6569_v22 = vpop.eup %6568 }
 0xfd9   : > { %v6571_v15 = vpop.eup %6570 }
 0xfda   : > { %v5125_v18 = vmul.bf16 %v5122_v39, %v5096_v63  ;;  %v5108_v19 = vmul.bf16 %v5105_v46, %v5098_v13  ;;  %v5103_v23 = vmul.bf16 1065893768, %v5100_v54  ;;  %v6573_v63 = vpop.eup %6572 }
 0xfdc   : > { %v5143_v20 = vmul.bf16 %v6569_v22, %v5125_v18  ;;  %v5111_v24 = vadd.bf16 1068908470, %v5108_v19  ;;  %v5106_v29 = vadd.bf16 3216687034, %v5103_v23 }
 0xfde   : > { %v5146_v37 = vsub.bf16 1065369472, %v5143_v20  ;;  %v5114_v43 = vmul.bf16 %v5111_v24, %v5098_v13  ;;  %v5109_v17 = vmul.bf16 %v5106_v29, %v5100_v54 }
 0xfe0   : > { %v5149_v31 = vmul.bf16 %v5146_v37, %v5083_v53  ;;  %v5117_v52 = vadd.bf16 3197288082, %v5114_v43  ;;  %v5112_v60 = vadd.bf16 1068908470, %v5109_v17 }
 0xfe2   : > { %v5152_v34 = vadd.bf16 1065369472, %v5149_v31  ;;  %v5120_v35 = vmul.bf16 %v5117_v52, %v5098_v13  ;;  %v5115_v40 = vmul.bf16 %v5112_v60, %v5100_v54 }
 0xfe4   : > { %v5155_v48 = vmul.bf16 %v5152_v34, %v5074_v32  ;;  %v5123_v36 = vadd.bf16 1048723074, %v5120_v35  ;;  %v5118_v49 = vadd.bf16 3197288082, %v5115_v40 }
 0xfe6   : > { %v5126_v11 = vmul.bf16 %v5123_v36, %v5098_v13  ;;  %6364 = vmatmul.mubr.msk.bf16.vlgmr.msra.gmra.mxu0 %vm5197_vm1, %v5155_v48  ;;  %v5121_v57 = vmul.bf16 %v5118_v49, %v5100_v54 }
 0xfe7   : > { %6367 = vmatprep.mubr.msk.bf16.mxu0 %vm6606_vm4, %v6605_v58 }
 0xfe8   : > { %v5144_v10 = vmul.bf16 %v6571_v15, %v5126_v11  ;;  %v5124_v27 = vadd.bf16 1048723074, %v5121_v57 }
 0xfea   : > { %v5147_v59 = vsub.bf16 1065369472, %v5144_v10  ;;  %v5127_v38 = vmul.bf16 %v5124_v27, %v5100_v54 }
 0xfec   : > { %v5150_v1 = vmul.bf16 %v5147_v59, %v5084_v26  ;;  %v5145_v2 = vmul.bf16 %v6573_v63, %v5127_v38 }
 0xfee   : > { %v5153_v25 = vadd.bf16 1065369472, %v5150_v1  ;;  %v5148_v7 = vsub.bf16 1065369472, %v5145_v2 }
 0xff0   : > { %v5156_v3 = vmul.bf16 %v5153_v25, %v5075_v4  ;;  %v5151_v5 = vmul.bf16 %v5148_v7, %v5085_v51 }
 0xff2   : > { %6368 = vmatmul.mubr.msk.bf16.gmra.mxu0 %vm5197_vm1, %v5156_v3  ;;  %v5154_v33 = vadd.bf16 1065369472, %v5151_v5 }
 0xff3   : > { %6371 = vmatprep.mubr.msk.bf16.mxu0 %vm6606_vm4, %v6605_v58 }
 0xff4   : > { %v5157_v14 = vmul.bf16 %v5154_v33, %v5076_v28 }
 0xffa   : > { %6372 = vmatmul.mubr.msk.bf16.gmra.mxu0 %vm5197_vm1, %v5157_v14 }
0x10a6   : > { %v5241_v50 = vpop.f32.mrf.mxu0 }
0x10a7   : > { %v5242_v8 = vadd.f32 %v6060_v56, %v5241_v50 }
0x10a8   : > { %v6365_v12 = vpop.f32.mrf.mxu0 }
0x10a9   : > { %v5263_v13 = vadd.f32 %v5242_v8, %v7559_v44 }
0x10aa   : > { %v5244_v0 = vpop.f32.mrf.mxu0 }
0x10ab   : > { %5268 = vst.msk [vmem:[#allocation2] sm:$0xff] %vm989_vm2, %v5263_v13  ;;  %v5245_v58 = vadd.f32 %v6060_v56, %v5244_v0 }
0x10ac   : > { %v6366_v16 = vpop.f32.mrf.mxu0 }
0x10ad   : > { %v5264_v45 = vadd.f32 %v5245_v58, %v7563_v47 }
0x10af   : > { %5269 = vst.msk [vmem:[#allocation2 + $0x8] sm:$0xff] %vm989_vm2, %v5264_v45 }
0x10b2   : > { %v5249_v9 = vpop.f32.mrf.mxu0 }
0x10b3   : > { %v5250_v41 = vadd.f32 %v6060_v56, %v5249_v9 }
0x10b4   : > { %v6369_v62 = vpop.f32.mrf.mxu0 }
0x10b5   : > { %v5265_v39 = vadd.f32 %v5250_v41, %v7567_v55 }
0x10b6   : > { %v5252_v46 = vpop.f32.mrf.mxu0 }
0x10b7   : > { %5270 = vst.msk [vmem:[#allocation2 + $0x10] sm:$0xff] %vm989_vm2, %v5265_v39  ;;  %v5253_v54 = vadd.f32 %v6060_v56, %v5252_v46 }
0x10b8   : > { %v6370_v18 = vpop.f32.mrf.mxu0 }
0x10b9   : > { %v7660_v44 = vadd.f32 %v5253_v54, %v7571_v61 }
0x10ba   : > { %v5257_v19 = vpop.f32.mrf.mxu0 }
0x10bb   : > { %5271 = vst.msk [vmem:[#allocation2 + $0x18] sm:$0xff] %vm989_vm2, %v7660_v44  ;;  %v5258_v47 = vadd.f32 %v6060_v56, %v5257_v19 }
0x10bc   : > { %v6373_v21 = vpop.f32.mrf.mxu0  ;;  %5276 = sbr.rel (%p6068_p6) target bundleno = 4327 (0x10e7), region = 80 }
0x10bd   : > { %v7665_v22 = vadd.f32 %v5258_v47, %v7575_v6 }
0x10be   : > { %v5260_v23 = vpop.f32.mrf.mxu0 }
0x10bf   : > { %5272 = vst.msk [vmem:[#allocation2 + $0x20] sm:$0x3] %vm1002_vm3, %v7665_v22 }
0x10c0   : > { %v6374_v55 = vpop.f32.mrf.mxu0 }
0x10c1   : > { %v5282_v20 = vcombine.high %v5263_v13, %v5263_v13  ;;  %v5289_v61 = vrot.slane %v5263_v13, %v6868_v42  ;;  %v5331_v24 = vcombine.high %v5264_v45, %v5264_v45  ;;  %v5338_v29 = vrot.slane %v5264_v45, %v6868_v42  ;;  %v5762_v28 = vld [vmem:[%s7810_s20 + $0x8] sm:$0x1] }
0x10c2   : > { %v5387_v37 = vrot.slane %v5265_v39, %v6868_v42  ;;  %vm5759_vm2 = vcmask 253952   ;;  %vm5760_vm4 = vsmask.f32 256  ;;  %v5380_v60 = vcombine.high %v5265_v39, %v5265_v39 }
0x10c3   : > { %v5296_v6 = vrot.slane %v5282_v20, %v6868_v42  ;;  %v5297_v43 = vcombine.high %v5289_v61, %v5289_v61  ;;  %v5305_v30 = vrot.slane %v5289_v61, %v6868_v42  ;;  %v5345_v53 = vrot.slane %v5331_v24, %v6868_v42  ;;  %vm7693_vm7 = vmand %vm5759_vm2, %vm5760_vm4 }
0x10c4   : > { %v5346_v17 = vcombine.high %v5338_v29, %v5338_v29  ;;  %v5354_v31 = vrot.slane %v5338_v29, %v6868_v42  ;;  %v5403_v52 = vrot.slane %v5387_v37, %v6868_v42  ;;  %v5394_v11 = vrot.slane %v5380_v60, %v6868_v42 }
0x10c5   : > { %v5298_v32 = vcombine.high %v5296_v6, %v5296_v6  ;;  %v5312_v34 = vrot.slane %v5296_v6, %v6868_v42  ;;  %v5319_v35 = vrot.slane %v5297_v43, %v6868_v42  ;;  %v5347_v40 = vcombine.high %v5345_v53, %v5345_v53 }
0x10c6   : > { %v5361_v48 = vrot.slane %v5345_v53, %v6868_v42  ;;  %v5368_v36 = vrot.slane %v5346_v17, %v6868_v42  ;;  %v5604_v49 = vrot.slane %v5403_v52, %v6868_v42  ;;  %v5395_v63 = vcombine.high %v5387_v37, %v5387_v37 }
0x10c7   : > { %v5326_v15 = vrot.slane %v5298_v32, %v6868_v42  ;;  %v5500_v57 = vcombine.low %v5305_v30, %v5319_v35  ;;  %v6069_v10 = vcombine.high %v5305_v30, %v5319_v35  ;;  %v5375_v27 = vrot.slane %v5347_v40, %v6868_v42 }
0x10c8   : > { %v5549_v59 = vcombine.low %v5354_v31, %v5368_v36  ;;  %v6071_v26 = vcombine.high %v5354_v31, %v5368_v36  ;;  %v5611_v38 = vrot.slane %v5604_v49, %v6868_v42  ;;  %vm5756_vm3 = vcmask 257024  }
0x10c9   : > { %v5502_v1 = vcombine.low %v5312_v34, %v5326_v15  ;;  %v6070_v2 = vcombine.high %v5312_v34, %v5326_v15  ;;  %v5510_v4 = vrot.slane %v5500_v57, %v6868_v42  ;;  %v5517_v25 = vrot.slane %v6069_v10, %v6868_v42 }
0x10ca   : > { %v5551_v7 = vcombine.low %v5361_v48, %v5375_v27  ;;  %v6072_v3 = vcombine.high %v5361_v48, %v5375_v27  ;;  %v5559_v51 = vrot.slane %v5549_v59, %v6868_v42  ;;  %v5566_v5 = vrot.slane %v6071_v26, %v6868_v42 }
0x10cb   : > { %v5524_v14 = vrot.slane %v5502_v1, %v6868_v42  ;;  %v5531_v56 = vrot.slane %v6070_v2, %v6868_v42  ;;  %v5532_v50 = vcombine.low %v5510_v4, %v5517_v25  ;;  %v6089_v8 = vpack.c.bf16 %v5611_v38, %v5611_v38 }
0x10cc   : > { %v5573_v12 = vrot.slane %v5551_v7, %v6868_v42  ;;  %v5580_v13 = vrot.slane %v6072_v3, %v6868_v42  ;;  %v5581_v0 = vcombine.low %v5559_v51, %v5566_v5  ;;  %v5396_v58 = vcombine.high %v5394_v11, %v5394_v11 }
0x10cd   : > { %v5533_v16 = vcombine.low %v5524_v14, %v5531_v56  ;;  %v5540_v45 = vrot.slane %v5532_v50, %v6868_v42  ;;  %v5763_v9 = vsel %vm7693_vm7, %v6089_v8, %v5762_v28  ;;  %v5410_v41 = vrot.slane %v5394_v11, %v6868_v42 }
0x10ce   : > { %v5582_v62 = vcombine.low %v5573_v12, %v5580_v13  ;;  %v5589_v39 = vrot.slane %v5581_v0, %v6868_v42  ;;  %5764 = vst [vmem:[%s7810_s20 + $0x8] sm:$0x1] %v5763_v9  ;;  %v5417_v46 = vrot.slane %v5395_v63, %v6868_v42  ;;  %v5424_v54 = vrot.slane %v5396_v58, %v6868_v42 }
0x10cf   : > { %v5547_v18 = vrot.slane %v5533_v16, %v6868_v42  ;;  %v5425_v19 = vcombine.high %v5403_v52, %v5403_v52  ;;  %v5426_v47 = vcombine.high %v5410_v41, %v5410_v41  ;;  %v5436_v21 = vrot.slane %v7660_v44, %v6868_v42  ;;  %v5767_v16 = vld [vmem:[%s7810_s20 + $0x14] sm:$0x1] }
0x10d0   : > { %v5596_v23 = vrot.slane %v5582_v62, %v6868_v42  ;;  %v5427_v55 = vcombine.high %v5417_v46, %v5417_v46  ;;  %v5428_v20 = vcombine.high %v5424_v54, %v5424_v54  ;;  %v5429_v61 = vcombine.high %v7660_v44, %v7660_v44 }
0x10d1   : > { %v5548_v24 = vcombine.low %v5540_v45, %v5547_v18  ;;  %v5452_v29 = vrot.slane %v5436_v21, %v6868_v42  ;;  %v5612_v37 = vcombine.low %v5417_v46, %v5425_v19  ;;  %v5614_v6 = vcombine.low %v5424_v54, %v5426_v47 }
0x10d2   : > { %v5597_v43 = vcombine.low %v5589_v39, %v5596_v23  ;;  %v5613_v30 = vcombine.low %v5427_v55, %v5410_v41  ;;  %v5443_v53 = vrot.slane %v5429_v61, %v6868_v42  ;;  %v5444_v17 = vcombine.high %v5436_v21, %v5436_v21 }
0x10d3   : > { %v6087_v31 = vpack.c.bf16 %v5548_v24, %v5548_v24  ;;  %v5615_v52 = vcombine.low %v5428_v20, %v5452_v29  ;;  %v5622_v60 = vrot.slane %v5612_v37, %v6868_v42  ;;  %v5636_v32 = vrot.slane %v5614_v6, %v6868_v42 }
0x10d4   : > { %v6088_v34 = vpack.c.bf16 %v5597_v43, %v5597_v43  ;;  %v5629_v35 = vrot.slane %v5613_v30, %v6868_v42  ;;  %v5445_v44 = vcombine.high %v5443_v53, %v5443_v53  ;;  %v5459_v40 = vrot.slane %v5443_v53, %v6868_v42 }
0x10d5   : > { %5757 = vst.msk [vmem:[%s7810_s20] sm:$0xf] %vm5756_vm3, %v6087_v31  ;;  %v5643_v48 = vrot.slane %v5615_v52, %v6868_v42  ;;  %v5466_v36 = vrot.slane %v5444_v17, %v6868_v42  ;;  %v5474_v49 = vcombine.high %v5452_v29, %v5452_v29  ;;  %v5484_v11 = vrot.slane %v7665_v22, %v6868_v42 }
0x10d6   : > { %5758 = vst.msk [vmem:[%s7810_s20 + $0x4] sm:$0xf] %vm5756_vm3, %v6088_v34  ;;  %v5644_v15 = vcombine.low %v5622_v60, %v5629_v35  ;;  %v5473_v57 = vrot.slane %v5445_v44, %v6868_v42  ;;  %v5475_v10 = vcombine.high %v5459_v40, %v5459_v40 }
0x10d7   : > { %v5645_v27 = vcombine.low %v5636_v32, %v5643_v48  ;;  %v5476_v59 = vcombine.high %v5466_v36, %v5466_v36  ;;  %v5492_v26 = vrot.slane %v5484_v11, %v6868_v42  ;;  %v5661_v38 = vcombine.low %v5466_v36, %v5474_v49 }
0x10d8   : > { %v5652_v63 = vrot.slane %v5644_v15, %v6868_v42  ;;  %v5477_v1 = vcombine.high %v5473_v57, %v5473_v57  ;;  %v5663_v2 = vcombine.low %v5473_v57, %v5475_v10  ;;  %v5485_v4 = vcombine.high %v5484_v11, %v5484_v11 }
0x10d9   : > { %v5659_v22 = vrot.slane %v5645_v27, %v6868_v42  ;;  %v5662_v25 = vcombine.low %v5476_v59, %v5459_v40  ;;  %v5671_v7 = vrot.slane %v5661_v38, %v6868_v42 }
0x10da   : > { %v5664_v3 = vcombine.low %v5477_v1, %v5492_v26  ;;  %v5685_v51 = vrot.slane %v5663_v2, %v6868_v42  ;;  %v5499_v5 = vrot.slane %v5485_v4, %v6868_v42 }
0x10db   : > { %v5660_v28 = vcombine.low %v5652_v63, %v5659_v22  ;;  %v5678_v14 = vrot.slane %v5662_v25, %v6868_v42 }
0x10dc   : > { %v5692_v56 = vrot.slane %v5664_v3, %v6868_v42  ;;  %v5716_v50 = vrot.slane %v5499_v5, %v6868_v42 }
0x10dd   : > { %v6090_v8 = vpack.c.bf16 %v5660_v28, %v5660_v28  ;;  %v5693_v12 = vcombine.low %v5671_v7, %v5678_v14 }
0x10de   : > { %v5694_v13 = vcombine.low %v5685_v51, %v5692_v56  ;;  %v5723_v0 = vrot.slane %v5716_v50, %v6868_v42 }
0x10df   : > { %5765 = vst.msk [vmem:[%s7810_s20 + $0xc] sm:$0xf] %vm5756_vm3, %v6090_v8  ;;  %v5701_v58 = vrot.slane %v5693_v12, %v6868_v42 }
0x10e0   : > { %v5708_v45 = vrot.slane %v5694_v13, %v6868_v42  ;;  %v6092_v9 = vpack.c.bf16 %v5723_v0, %v5723_v0 }
0x10e2   : > { %v5709_v41 = vcombine.low %v5701_v58, %v5708_v45  ;;  %v5768_v62 = vsel %vm7693_vm7, %v6092_v9, %v5767_v16 }
0x10e3   : > { %5769 = vst [vmem:[%s7810_s20 + $0x14] sm:$0x1] %v5768_v62 }
0x10e4   : > { %v6091_v39 = vpack.c.bf16 %v5709_v41, %v5709_v41 }
0x10e6   : > { %5766 = vst.msk [vmem:[%s7810_s20 + $0x10] sm:$0xf] %vm5756_vm3, %v6091_v39 }
0x10e7 PF: > { %s7811_s22 = sld [smem:[#allocation5_spill]] }
0x10e8   : > { %s7812_s25 = sld [smem:[#allocation4_spill]] }
0x10e9   : > { %s7813_s26 = sld [smem:[#allocation6_spill]] }
0x10ed   : > { %s23_s27 = sadd.s32 1, %s7811_s22  }
0x10ee   : > { %p20_p7 = scmp.ge.s32.totalorder %s23_s27, 4  }
0x10f0   :  { %22 = sbr.rel (!%p20_p7) target bundleno = 4 (0x4), region = 146 }

</bundles_post_ra>
